<compile_context>
chip_gen: v7x
topology: tpu7x:2x2x1
jax: 0.10.0
libtpu: 0.0.40
codegen_flags: <defaults>
</compile_context>

<pallas_src>
import jax
import jax.numpy as jnp
from jax.experimental import pallas as pl
from jax.experimental.pallas import tpu as pltpu

BN_EPS = 1e-5
LANE = 128
SUB = 8


def _rup(x, m):
    return ((x + m - 1) // m) * m


def _pad2(x, rows, cols):
    out = jnp.zeros((rows, cols), x.dtype)
    return out.at[: x.shape[0], : x.shape[1]].set(x)


def _full_spec(shape):
    return pl.BlockSpec(shape, lambda: (0,) * len(shape))


# ----------------------------------------------------------------------------
# Deterministic parameter initialization (PyTorch-style shapes / defaults)
# ----------------------------------------------------------------------------
def _init_linear(key, d_in, d_out):
    kw, kb = jax.random.split(key)
    bound = 1.0 / jnp.sqrt(jnp.float32(d_in))
    w = jax.random.uniform(kw, (d_in, d_out), jnp.float32, -bound, bound)
    b = jax.random.uniform(kb, (d_out,), jnp.float32, -bound, bound)
    return w, b


def _bn_affine(d_out):
    # PyTorch defaults: gamma=1, beta=0, running_mean=0, running_var=1.
    gamma = jnp.ones((d_out,), jnp.float32)
    beta = jnp.zeros((d_out,), jnp.float32)
    running_mean = jnp.zeros((d_out,), jnp.float32)
    running_var = jnp.ones((d_out,), jnp.float32)
    scale = gamma / jnp.sqrt(running_var + BN_EPS)
    shift = beta - running_mean * scale
    return scale, shift


def init_network_params(key, n_neuroni):
    keys = jax.random.split(key, 8)
    params = {}

    w, b = _init_linear(keys[0], 1000, 512)
    params["image"] = (w, b, *_bn_affine(512))

    w, b = _init_linear(keys[1], n_neuroni, n_neuroni)
    params["tabular"] = (w, b, *_bn_affine(n_neuroni))

    w, b = _init_linear(keys[2], 768, 300)
    params["description"] = (w, b, *_bn_affine(300))

    n_cat = n_neuroni + 512 + 300
    final = []
    dims = [(n_cat, 512), (512, 256), (256, 100), (100, 50)]
    for i, (d_in, d_out) in enumerate(dims):
        w, b = _init_linear(keys[3 + i], d_in, d_out)
        final.append((w, b, *_bn_affine(d_out)))
    # Last layer: Linear(50, 1) + ReLU, no BatchNorm -> scale=1, shift=0.
    w, b = _init_linear(keys[7], 50, 1)
    final.append((w, b, jnp.ones((1,), jnp.float32), jnp.zeros((1,), jnp.float32)))
    params["final"] = final
    return params


# ----------------------------------------------------------------------------
# Padded / bf16 parameter preparation (done once, outside the hot path)
# ----------------------------------------------------------------------------
def _pad_w(w, din_pad, dout_pad):
    return _pad2(w.astype(jnp.float32), din_pad, dout_pad).astype(jnp.bfloat16)


def _affine_slab(b, scale, shift, dout_pad):
    """(SUB, dout_pad) f32 slab with rows [bias, scale, shift]; padded lanes = 0."""
    d = b.shape[0]
    aff = jnp.zeros((SUB, dout_pad), jnp.float32)
    aff = aff.at[0, :d].set(b.astype(jnp.float32))
    aff = aff.at[1, :d].set(scale.astype(jnp.float32))
    aff = aff.at[2, :d].set(shift.astype(jnp.float32))
    return aff


def _prep_layer(w, b, scale, shift, din_pad, dout_pad):
    return _pad_w(w, din_pad, dout_pad), _affine_slab(b, scale, shift, dout_pad)


def prepare_padded_params(params, n_neuroni):
    n = n_neuroni
    p_tab = _rup(n, LANE)          # padded tabular width (e.g. 32 -> 128)
    pp = {}

    w, b, s, t = params["image"]
    pp["w0"], pp["a0"] = _prep_layer(w, b, s, t, _rup(1000, LANE), 512)
    w, b, s, t = params["tabular"]
    pp["w1"], pp["a1"] = _prep_layer(w, b, s, t, p_tab, p_tab)
    w, b, s, t = params["description"]
    pp["w2"], pp["a2"] = _prep_layer(w, b, s, t, _rup(768, LANE), _rup(300, LANE))

    fin = params["final"]
    # First final layer: split along the input rows of the (512+n+300, 512)
    # weight, matching torch.cat((emb_image, emb_tab, emb_desc), 1) order.
    w, b, s, t = fin[0]
    pp["w3a"] = _pad_w(w[0:512, :], 512, 512)
    pp["w3b"] = _pad_w(w[512:512 + n, :], p_tab, 512)
    pp["w3c"] = _pad_w(w[512 + n:512 + n + 300, :], _rup(300, LANE), 512)
    pp["a3"] = _affine_slab(b, s, t, 512)

    pads = [(512, 256),
            (256, _rup(100, LANE)),
            (_rup(100, LANE), _rup(50, LANE)),
            (_rup(50, LANE), _rup(1, LANE))]
    for i, (din_p, dout_p) in enumerate(pads):
        w, b, s, t = fin[1 + i]
        pp[f"w{4 + i}"], pp[f"a{4 + i}"] = _prep_layer(w, b, s, t, din_p, dout_p)
    return pp


# ----------------------------------------------------------------------------
# Fully fused forward kernel (one pallas_call for the whole network)
# ----------------------------------------------------------------------------
def _fused_net_kernel(img_ref, tab_ref, desc_ref,
                      w0, a0, w1, a1, w2, a2,
                      a3, a4, a5, a6, a7,
                      w3a_h, w3b_h, w3c_h, w4_h, w5_h, w6_h, w7_h,
                      o_ref,
                      w3a_v, w3b_v, w3c_v, w4_v, w5_v, w6_v, w7_v, sems):
    # Kick off the final-stack weight DMAs immediately; they overlap with the
    # branch-head matmuls and are waited on only right before each use.
    hbm = (w3a_h, w3b_h, w3c_h, w4_h, w5_h, w6_h, w7_h)
    vmem = (w3a_v, w3b_v, w3c_v, w4_v, w5_v, w6_v, w7_v)
    copies = []
    for i in range(len(hbm)):
        cp = pltpu.make_async_copy(hbm[i], vmem[i], sems.at[i])
        cp.start()
        copies.append(cp)

    def affine_relu(y, a):
        y = jnp.maximum(y + a[0:1, :], 0.0)        # bias + ReLU
        return y * a[1:2, :] + a[2:3, :]           # folded BatchNorm

    def layer(x_bf16, w, a):
        y = jnp.dot(x_bf16, w, preferred_element_type=jnp.float32)
        return affine_relu(y, a)

    # Branch heads (inputs are already bf16; padded lanes compute exactly 0).
    h_img = layer(img_ref[...], w0[...], a0)
    h_tab = layer(tab_ref[...], w1[...], a1)
    h_desc = layer(desc_ref[...], w2[...], a2)

    # First final layer as the sum of three matmuls on the branch outputs held
    # in registers (no VMEM concat round-trip).
    copies[0].wait()
    copies[1].wait()
    copies[2].wait()
    y = (jnp.dot(h_img.astype(jnp.bfloat16), w3a_v[...],
                 preferred_element_type=jnp.float32)
         + jnp.dot(h_tab.astype(jnp.bfloat16), w3b_v[...],
                   preferred_element_type=jnp.float32)
         + jnp.dot(h_desc.astype(jnp.bfloat16), w3c_v[...],
                   preferred_element_type=jnp.float32))
    x = affine_relu(y, a3)

    copies[3].wait()
    x = layer(x.astype(jnp.bfloat16), w4_v[...], a4)
    copies[4].wait()
    x = layer(x.astype(jnp.bfloat16), w5_v[...], a5)
    copies[5].wait()
    x = layer(x.astype(jnp.bfloat16), w6_v[...], a6)
    copies[6].wait()
    x = layer(x.astype(jnp.bfloat16), w7_v[...], a7)   # Linear(50,1)+ReLU
    o_ref[...] = x


@jax.jit
def network_forward(pp, image, tab, desc):
    B = image.shape[0]
    b_pad = _rup(B, SUB)

    # Pre-cast to bf16 once (halves input DMA bytes) and pad to the lane-dense
    # widths the weights were prepared for.
    img_p = _pad2(image.astype(jnp.bfloat16), b_pad, pp["w0"].shape[0])
    tab_p = _pad2(tab.astype(jnp.bfloat16), b_pad, pp["w1"].shape[0])
    desc_p = _pad2(desc.astype(jnp.bfloat16), b_pad, pp["w2"].shape[0])

    p_out = pp["w7"].shape[1]

    vmem_ops = [img_p, tab_p, desc_p,
                pp["w0"], pp["a0"], pp["w1"], pp["a1"], pp["w2"], pp["a2"],
                pp["a3"], pp["a4"], pp["a5"], pp["a6"], pp["a7"]]
    hbm_ops = [pp["w3a"], pp["w3b"], pp["w3c"],
               pp["w4"], pp["w5"], pp["w6"], pp["w7"]]

    in_specs = ([_full_spec(x.shape) for x in vmem_ops]
                + [pl.BlockSpec(memory_space=pl.ANY)] * len(hbm_ops))

    scratch_shapes = [pltpu.VMEM(w.shape, jnp.bfloat16) for w in hbm_ops]
    scratch_shapes.append(pltpu.SemaphoreType.DMA((len(hbm_ops),)))

    out = pl.pallas_call(
        _fused_net_kernel,
        out_shape=jax.ShapeDtypeStruct((b_pad, p_out), jnp.float32),
        in_specs=in_specs,
        out_specs=_full_spec((b_pad, p_out)),
        scratch_shapes=scratch_shapes,
        compiler_params=pltpu.CompilerParams(vmem_limit_bytes=32 * 1024 * 1024),
    )(*vmem_ops, *hbm_ops)

    return out[:B, :1]


if __name__ == "__main__":
    n_neuroni = 32
    batch = 8

    root = jax.random.PRNGKey(0)
    k_params, k_img, k_tab, k_desc = jax.random.split(root, 4)

    raw_params = init_network_params(k_params, n_neuroni)
    pparams = prepare_padded_params(raw_params, n_neuroni)

    image = jax.random.normal(k_img, (batch, 1000), jnp.float32)
    tab = jax.random.normal(k_tab, (batch, n_neuroni), jnp.float32)
    desc = jax.random.normal(k_desc, (batch, 768), jnp.float32)

    out = network_forward(pparams, image, tab, desc)
    out = jax.block_until_ready(out)

    assert out.shape == (batch, 1), out.shape
    assert out.dtype == jnp.float32, out.dtype
    print("KERNEL_OK")
</pallas_src>

<mosaic_0001>
module attributes {stable_mosaic.version = 11 : i64} {
  func.func @_fused_net_kernel(%arg0: memref<8x1024xbf16, #tpu.memory_space<vmem>>, %arg1: memref<8x128xbf16, #tpu.memory_space<vmem>>, %arg2: memref<8x768xbf16, #tpu.memory_space<vmem>>, %arg3: memref<1024x512xbf16, #tpu.memory_space<vmem>>, %arg4: memref<8x512xf32, #tpu.memory_space<vmem>>, %arg5: memref<128x128xbf16, #tpu.memory_space<vmem>>, %arg6: memref<8x128xf32, #tpu.memory_space<vmem>>, %arg7: memref<768x384xbf16, #tpu.memory_space<vmem>>, %arg8: memref<8x384xf32, #tpu.memory_space<vmem>>, %arg9: memref<8x512xf32, #tpu.memory_space<vmem>>, %arg10: memref<8x256xf32, #tpu.memory_space<vmem>>, %arg11: memref<8x128xf32, #tpu.memory_space<vmem>>, %arg12: memref<8x128xf32, #tpu.memory_space<vmem>>, %arg13: memref<8x128xf32, #tpu.memory_space<vmem>>, %arg14: memref<512x512xbf16, #tpu.memory_space<any>>, %arg15: memref<128x512xbf16, #tpu.memory_space<any>>, %arg16: memref<384x512xbf16, #tpu.memory_space<any>>, %arg17: memref<512x256xbf16, #tpu.memory_space<any>>, %arg18: memref<256x128xbf16, #tpu.memory_space<any>>, %arg19: memref<128x128xbf16, #tpu.memory_space<any>>, %arg20: memref<128x128xbf16, #tpu.memory_space<any>>, %arg21: memref<8x128xf32, #tpu.memory_space<vmem>>, %arg22: memref<512x512xbf16, #tpu.memory_space<vmem>>, %arg23: memref<128x512xbf16, #tpu.memory_space<vmem>>, %arg24: memref<384x512xbf16, #tpu.memory_space<vmem>>, %arg25: memref<512x256xbf16, #tpu.memory_space<vmem>>, %arg26: memref<256x128xbf16, #tpu.memory_space<vmem>>, %arg27: memref<128x128xbf16, #tpu.memory_space<vmem>>, %arg28: memref<128x128xbf16, #tpu.memory_space<vmem>>, %arg29: memref<7x!tpu.dma_semaphore, #tpu.memory_space<semaphore_mem>>) attributes {dimension_semantics = [], scalar_prefetch = 0 : i64, scratch_operands = 8 : i64, tpu.core_type = #tpu.core_type<tc>} {
    %c0_i32 = arith.constant 0 : i32
    %0 = tpu.memref_slice %arg29[%c0_i32] : memref<7x!tpu.dma_semaphore, #tpu.memory_space<semaphore_mem>> -> memref<1x!tpu.dma_semaphore, #tpu.memory_space<semaphore_mem>>
    %1 = tpu.memref_squeeze %0 : memref<1x!tpu.dma_semaphore, #tpu.memory_space<semaphore_mem>> -> memref<!tpu.dma_semaphore, #tpu.memory_space<semaphore_mem>>
    tpu.enqueue_dma source(%arg14 : memref<512x512xbf16, #tpu.memory_space<any>>) target(%arg22 : memref<512x512xbf16, #tpu.memory_space<vmem>>) target_semaphore(%1 : memref<!tpu.dma_semaphore, #tpu.memory_space<semaphore_mem>>)
    %c1_i32 = arith.constant 1 : i32
    %2 = tpu.memref_slice %arg29[%c1_i32] : memref<7x!tpu.dma_semaphore, #tpu.memory_space<semaphore_mem>> -> memref<1x!tpu.dma_semaphore, #tpu.memory_space<semaphore_mem>>
    %3 = tpu.memref_squeeze %2 : memref<1x!tpu.dma_semaphore, #tpu.memory_space<semaphore_mem>> -> memref<!tpu.dma_semaphore, #tpu.memory_space<semaphore_mem>>
    tpu.enqueue_dma source(%arg15 : memref<128x512xbf16, #tpu.memory_space<any>>) target(%arg23 : memref<128x512xbf16, #tpu.memory_space<vmem>>) target_semaphore(%3 : memref<!tpu.dma_semaphore, #tpu.memory_space<semaphore_mem>>)
    %c2_i32 = arith.constant 2 : i32
    %4 = tpu.memref_slice %arg29[%c2_i32] : memref<7x!tpu.dma_semaphore, #tpu.memory_space<semaphore_mem>> -> memref<1x!tpu.dma_semaphore, #tpu.memory_space<semaphore_mem>>
    %5 = tpu.memref_squeeze %4 : memref<1x!tpu.dma_semaphore, #tpu.memory_space<semaphore_mem>> -> memref<!tpu.dma_semaphore, #tpu.memory_space<semaphore_mem>>
    tpu.enqueue_dma source(%arg16 : memref<384x512xbf16, #tpu.memory_space<any>>) target(%arg24 : memref<384x512xbf16, #tpu.memory_space<vmem>>) target_semaphore(%5 : memref<!tpu.dma_semaphore, #tpu.memory_space<semaphore_mem>>)
    %c3_i32 = arith.constant 3 : i32
    %6 = tpu.memref_slice %arg29[%c3_i32] : memref<7x!tpu.dma_semaphore, #tpu.memory_space<semaphore_mem>> -> memref<1x!tpu.dma_semaphore, #tpu.memory_space<semaphore_mem>>
    %7 = tpu.memref_squeeze %6 : memref<1x!tpu.dma_semaphore, #tpu.memory_space<semaphore_mem>> -> memref<!tpu.dma_semaphore, #tpu.memory_space<semaphore_mem>>
    tpu.enqueue_dma source(%arg17 : memref<512x256xbf16, #tpu.memory_space<any>>) target(%arg25 : memref<512x256xbf16, #tpu.memory_space<vmem>>) target_semaphore(%7 : memref<!tpu.dma_semaphore, #tpu.memory_space<semaphore_mem>>)
    %c4_i32 = arith.constant 4 : i32
    %8 = tpu.memref_slice %arg29[%c4_i32] : memref<7x!tpu.dma_semaphore, #tpu.memory_space<semaphore_mem>> -> memref<1x!tpu.dma_semaphore, #tpu.memory_space<semaphore_mem>>
    %9 = tpu.memref_squeeze %8 : memref<1x!tpu.dma_semaphore, #tpu.memory_space<semaphore_mem>> -> memref<!tpu.dma_semaphore, #tpu.memory_space<semaphore_mem>>
    tpu.enqueue_dma source(%arg18 : memref<256x128xbf16, #tpu.memory_space<any>>) target(%arg26 : memref<256x128xbf16, #tpu.memory_space<vmem>>) target_semaphore(%9 : memref<!tpu.dma_semaphore, #tpu.memory_space<semaphore_mem>>)
    %c5_i32 = arith.constant 5 : i32
    %10 = tpu.memref_slice %arg29[%c5_i32] : memref<7x!tpu.dma_semaphore, #tpu.memory_space<semaphore_mem>> -> memref<1x!tpu.dma_semaphore, #tpu.memory_space<semaphore_mem>>
    %11 = tpu.memref_squeeze %10 : memref<1x!tpu.dma_semaphore, #tpu.memory_space<semaphore_mem>> -> memref<!tpu.dma_semaphore, #tpu.memory_space<semaphore_mem>>
    tpu.enqueue_dma source(%arg19 : memref<128x128xbf16, #tpu.memory_space<any>>) target(%arg27 : memref<128x128xbf16, #tpu.memory_space<vmem>>) target_semaphore(%11 : memref<!tpu.dma_semaphore, #tpu.memory_space<semaphore_mem>>)
    %c6_i32 = arith.constant 6 : i32
    %12 = tpu.memref_slice %arg29[%c6_i32] : memref<7x!tpu.dma_semaphore, #tpu.memory_space<semaphore_mem>> -> memref<1x!tpu.dma_semaphore, #tpu.memory_space<semaphore_mem>>
    %13 = tpu.memref_squeeze %12 : memref<1x!tpu.dma_semaphore, #tpu.memory_space<semaphore_mem>> -> memref<!tpu.dma_semaphore, #tpu.memory_space<semaphore_mem>>
    tpu.enqueue_dma source(%arg20 : memref<128x128xbf16, #tpu.memory_space<any>>) target(%arg28 : memref<128x128xbf16, #tpu.memory_space<vmem>>) target_semaphore(%13 : memref<!tpu.dma_semaphore, #tpu.memory_space<semaphore_mem>>)
    %c0 = arith.constant 0 : index
    %c0_0 = arith.constant 0 : index
    %14 = vector.load %arg0[%c0, %c0_0] : memref<8x1024xbf16, #tpu.memory_space<vmem>>, vector<8x1024xbf16>
    %c0_1 = arith.constant 0 : index
    %c0_2 = arith.constant 0 : index
    %15 = vector.load %arg3[%c0_1, %c0_2] : memref<1024x512xbf16, #tpu.memory_space<vmem>>, vector<1024x512xbf16>
    %cst = arith.constant dense<0.000000e+00> : vector<8x512xf32>
    %16 = tpu.matmul %14, %15, %cst {dimension_numbers = #tpu.dot_dimension_numbers<[1], [0], [0], [1], [0, 0, 1, 1], [], []>} : vector<8x1024xbf16>, vector<1024x512xbf16>, vector<8x512xf32> -> vector<8x512xf32>
    %c0_3 = arith.constant 0 : index
    %c0_4 = arith.constant 0 : index
    %17 = vector.load %arg4[%c0_3, %c0_4] : memref<8x512xf32, #tpu.memory_space<vmem>>, vector<1x512xf32>
    %18 = vector.broadcast %17 : vector<1x512xf32> to vector<8x512xf32>
    %19 = arith.addf %16, %18 : vector<8x512xf32>
    %cst_5 = arith.constant 0.000000e+00 : f32
    %20 = vector.broadcast %cst_5 : f32 to vector<8x512xf32>
    %21 = arith.maximumf %19, %20 : vector<8x512xf32>
    %c1 = arith.constant 1 : index
    %c0_6 = arith.constant 0 : index
    %22 = vector.load %arg4[%c1, %c0_6] : memref<8x512xf32, #tpu.memory_space<vmem>>, vector<1x512xf32>
    %23 = vector.broadcast %22 : vector<1x512xf32> to vector<8x512xf32>
    %24 = arith.mulf %21, %23 : vector<8x512xf32>
    %c2 = arith.constant 2 : index
    %c0_7 = arith.constant 0 : index
    %25 = vector.load %arg4[%c2, %c0_7] : memref<8x512xf32, #tpu.memory_space<vmem>>, vector<1x512xf32>
    %26 = vector.broadcast %25 : vector<1x512xf32> to vector<8x512xf32>
    %27 = arith.addf %24, %26 : vector<8x512xf32>
    %c0_8 = arith.constant 0 : index
    %c0_9 = arith.constant 0 : index
    %28 = vector.load %arg1[%c0_8, %c0_9] : memref<8x128xbf16, #tpu.memory_space<vmem>>, vector<8x128xbf16>
    %c0_10 = arith.constant 0 : index
    %c0_11 = arith.constant 0 : index
    %29 = vector.load %arg5[%c0_10, %c0_11] : memref<128x128xbf16, #tpu.memory_space<vmem>>, vector<128x128xbf16>
    %cst_12 = arith.constant dense<0.000000e+00> : vector<8x128xf32>
    %30 = tpu.matmul %28, %29, %cst_12 {dimension_numbers = #tpu.dot_dimension_numbers<[1], [0], [0], [1], [0, 0, 1, 1], [], []>} : vector<8x128xbf16>, vector<128x128xbf16>, vector<8x128xf32> -> vector<8x128xf32>
    %c0_13 = arith.constant 0 : index
    %c0_14 = arith.constant 0 : index
    %31 = vector.load %arg6[%c0_13, %c0_14] : memref<8x128xf32, #tpu.memory_space<vmem>>, vector<1x128xf32>
    %32 = vector.broadcast %31 : vector<1x128xf32> to vector<8x128xf32>
    %33 = arith.addf %30, %32 : vector<8x128xf32>
    %cst_15 = arith.constant 0.000000e+00 : f32
    %34 = vector.broadcast %cst_15 : f32 to vector<8x128xf32>
    %35 = arith.maximumf %33, %34 : vector<8x128xf32>
    %c1_16 = arith.constant 1 : index
    %c0_17 = arith.constant 0 : index
    %36 = vector.load %arg6[%c1_16, %c0_17] : memref<8x128xf32, #tpu.memory_space<vmem>>, vector<1x128xf32>
    %37 = vector.broadcast %36 : vector<1x128xf32> to vector<8x128xf32>
    %38 = arith.mulf %35, %37 : vector<8x128xf32>
    %c2_18 = arith.constant 2 : index
    %c0_19 = arith.constant 0 : index
    %39 = vector.load %arg6[%c2_18, %c0_19] : memref<8x128xf32, #tpu.memory_space<vmem>>, vector<1x128xf32>
    %40 = vector.broadcast %39 : vector<1x128xf32> to vector<8x128xf32>
    %41 = arith.addf %38, %40 : vector<8x128xf32>
    %c0_20 = arith.constant 0 : index
    %c0_21 = arith.constant 0 : index
    %42 = vector.load %arg2[%c0_20, %c0_21] : memref<8x768xbf16, #tpu.memory_space<vmem>>, vector<8x768xbf16>
    %c0_22 = arith.constant 0 : index
    %c0_23 = arith.constant 0 : index
    %43 = vector.load %arg7[%c0_22, %c0_23] : memref<768x384xbf16, #tpu.memory_space<vmem>>, vector<768x384xbf16>
    %cst_24 = arith.constant dense<0.000000e+00> : vector<8x384xf32>
    %44 = tpu.matmul %42, %43, %cst_24 {dimension_numbers = #tpu.dot_dimension_numbers<[1], [0], [0], [1], [0, 0, 1, 1], [], []>} : vector<8x768xbf16>, vector<768x384xbf16>, vector<8x384xf32> -> vector<8x384xf32>
    %c0_25 = arith.constant 0 : index
    %c0_26 = arith.constant 0 : index
    %45 = vector.load %arg8[%c0_25, %c0_26] : memref<8x384xf32, #tpu.memory_space<vmem>>, vector<1x384xf32>
    %46 = vector.broadcast %45 : vector<1x384xf32> to vector<8x384xf32>
    %47 = arith.addf %44, %46 : vector<8x384xf32>
    %cst_27 = arith.constant 0.000000e+00 : f32
    %48 = vector.broadcast %cst_27 : f32 to vector<8x384xf32>
    %49 = arith.maximumf %47, %48 : vector<8x384xf32>
    %c1_28 = arith.constant 1 : index
    %c0_29 = arith.constant 0 : index
    %50 = vector.load %arg8[%c1_28, %c0_29] : memref<8x384xf32, #tpu.memory_space<vmem>>, vector<1x384xf32>
    %51 = vector.broadcast %50 : vector<1x384xf32> to vector<8x384xf32>
    %52 = arith.mulf %49, %51 : vector<8x384xf32>
    %c2_30 = arith.constant 2 : index
    %c0_31 = arith.constant 0 : index
    %53 = vector.load %arg8[%c2_30, %c0_31] : memref<8x384xf32, #tpu.memory_space<vmem>>, vector<1x384xf32>
    %54 = vector.broadcast %53 : vector<1x384xf32> to vector<8x384xf32>
    %55 = arith.addf %52, %54 : vector<8x384xf32>
    %c0_i32_32 = arith.constant 0 : i32
    %56 = tpu.memref_slice %arg29[%c0_i32_32] : memref<7x!tpu.dma_semaphore, #tpu.memory_space<semaphore_mem>> -> memref<1x!tpu.dma_semaphore, #tpu.memory_space<semaphore_mem>>
    %57 = tpu.memref_squeeze %56 : memref<1x!tpu.dma_semaphore, #tpu.memory_space<semaphore_mem>> -> memref<!tpu.dma_semaphore, #tpu.memory_space<semaphore_mem>>
    tpu.wait_dma2 semaphore(%57 : memref<!tpu.dma_semaphore, #tpu.memory_space<semaphore_mem>>) src(%arg14 : memref<512x512xbf16, #tpu.memory_space<any>>) dst(%arg22 : memref<512x512xbf16, #tpu.memory_space<vmem>>)
    %c1_i32_33 = arith.constant 1 : i32
    %58 = tpu.memref_slice %arg29[%c1_i32_33] : memref<7x!tpu.dma_semaphore, #tpu.memory_space<semaphore_mem>> -> memref<1x!tpu.dma_semaphore, #tpu.memory_space<semaphore_mem>>
    %59 = tpu.memref_squeeze %58 : memref<1x!tpu.dma_semaphore, #tpu.memory_space<semaphore_mem>> -> memref<!tpu.dma_semaphore, #tpu.memory_space<semaphore_mem>>
    tpu.wait_dma2 semaphore(%59 : memref<!tpu.dma_semaphore, #tpu.memory_space<semaphore_mem>>) src(%arg15 : memref<128x512xbf16, #tpu.memory_space<any>>) dst(%arg23 : memref<128x512xbf16, #tpu.memory_space<vmem>>)
    %c2_i32_34 = arith.constant 2 : i32
    %60 = tpu.memref_slice %arg29[%c2_i32_34] : memref<7x!tpu.dma_semaphore, #tpu.memory_space<semaphore_mem>> -> memref<1x!tpu.dma_semaphore, #tpu.memory_space<semaphore_mem>>
    %61 = tpu.memref_squeeze %60 : memref<1x!tpu.dma_semaphore, #tpu.memory_space<semaphore_mem>> -> memref<!tpu.dma_semaphore, #tpu.memory_space<semaphore_mem>>
    tpu.wait_dma2 semaphore(%61 : memref<!tpu.dma_semaphore, #tpu.memory_space<semaphore_mem>>) src(%arg16 : memref<384x512xbf16, #tpu.memory_space<any>>) dst(%arg24 : memref<384x512xbf16, #tpu.memory_space<vmem>>)
    %62 = arith.truncf %27 : vector<8x512xf32> to vector<8x512xbf16>
    %c0_35 = arith.constant 0 : index
    %c0_36 = arith.constant 0 : index
    %63 = vector.load %arg22[%c0_35, %c0_36] : memref<512x512xbf16, #tpu.memory_space<vmem>>, vector<512x512xbf16>
    %cst_37 = arith.constant dense<0.000000e+00> : vector<8x512xf32>
    %64 = tpu.matmul %62, %63, %cst_37 {dimension_numbers = #tpu.dot_dimension_numbers<[1], [0], [0], [1], [0, 0, 1, 1], [], []>} : vector<8x512xbf16>, vector<512x512xbf16>, vector<8x512xf32> -> vector<8x512xf32>
    %65 = arith.truncf %41 : vector<8x128xf32> to vector<8x128xbf16>
    %c0_38 = arith.constant 0 : index
    %c0_39 = arith.constant 0 : index
    %66 = vector.load %arg23[%c0_38, %c0_39] : memref<128x512xbf16, #tpu.memory_space<vmem>>, vector<128x512xbf16>
    %cst_40 = arith.constant dense<0.000000e+00> : vector<8x512xf32>
    %67 = tpu.matmul %65, %66, %cst_40 {dimension_numbers = #tpu.dot_dimension_numbers<[1], [0], [0], [1], [0, 0, 1, 1], [], []>} : vector<8x128xbf16>, vector<128x512xbf16>, vector<8x512xf32> -> vector<8x512xf32>
    %68 = arith.addf %64, %67 : vector<8x512xf32>
    %69 = arith.truncf %55 : vector<8x384xf32> to vector<8x384xbf16>
    %c0_41 = arith.constant 0 : index
    %c0_42 = arith.constant 0 : index
    %70 = vector.load %arg24[%c0_41, %c0_42] : memref<384x512xbf16, #tpu.memory_space<vmem>>, vector<384x512xbf16>
    %cst_43 = arith.constant dense<0.000000e+00> : vector<8x512xf32>
    %71 = tpu.matmul %69, %70, %cst_43 {dimension_numbers = #tpu.dot_dimension_numbers<[1], [0], [0], [1], [0, 0, 1, 1], [], []>} : vector<8x384xbf16>, vector<384x512xbf16>, vector<8x512xf32> -> vector<8x512xf32>
    %72 = arith.addf %68, %71 : vector<8x512xf32>
    %c0_44 = arith.constant 0 : index
    %c0_45 = arith.constant 0 : index
    %73 = vector.load %arg9[%c0_44, %c0_45] : memref<8x512xf32, #tpu.memory_space<vmem>>, vector<1x512xf32>
    %74 = vector.broadcast %73 : vector<1x512xf32> to vector<8x512xf32>
    %75 = arith.addf %72, %74 : vector<8x512xf32>
    %cst_46 = arith.constant 0.000000e+00 : f32
    %76 = vector.broadcast %cst_46 : f32 to vector<8x512xf32>
    %77 = arith.maximumf %75, %76 : vector<8x512xf32>
    %c1_47 = arith.constant 1 : index
    %c0_48 = arith.constant 0 : index
    %78 = vector.load %arg9[%c1_47, %c0_48] : memref<8x512xf32, #tpu.memory_space<vmem>>, vector<1x512xf32>
    %79 = vector.broadcast %78 : vector<1x512xf32> to vector<8x512xf32>
    %80 = arith.mulf %77, %79 : vector<8x512xf32>
    %c2_49 = arith.constant 2 : index
    %c0_50 = arith.constant 0 : index
    %81 = vector.load %arg9[%c2_49, %c0_50] : memref<8x512xf32, #tpu.memory_space<vmem>>, vector<1x512xf32>
    %82 = vector.broadcast %81 : vector<1x512xf32> to vector<8x512xf32>
    %83 = arith.addf %80, %82 : vector<8x512xf32>
    %c3_i32_51 = arith.constant 3 : i32
    %84 = tpu.memref_slice %arg29[%c3_i32_51] : memref<7x!tpu.dma_semaphore, #tpu.memory_space<semaphore_mem>> -> memref<1x!tpu.dma_semaphore, #tpu.memory_space<semaphore_mem>>
    %85 = tpu.memref_squeeze %84 : memref<1x!tpu.dma_semaphore, #tpu.memory_space<semaphore_mem>> -> memref<!tpu.dma_semaphore, #tpu.memory_space<semaphore_mem>>
    tpu.wait_dma2 semaphore(%85 : memref<!tpu.dma_semaphore, #tpu.memory_space<semaphore_mem>>) src(%arg17 : memref<512x256xbf16, #tpu.memory_space<any>>) dst(%arg25 : memref<512x256xbf16, #tpu.memory_space<vmem>>)
    %86 = arith.truncf %83 : vector<8x512xf32> to vector<8x512xbf16>
    %c0_52 = arith.constant 0 : index
    %c0_53 = arith.constant 0 : index
    %87 = vector.load %arg25[%c0_52, %c0_53] : memref<512x256xbf16, #tpu.memory_space<vmem>>, vector<512x256xbf16>
    %cst_54 = arith.constant dense<0.000000e+00> : vector<8x256xf32>
    %88 = tpu.matmul %86, %87, %cst_54 {dimension_numbers = #tpu.dot_dimension_numbers<[1], [0], [0], [1], [0, 0, 1, 1], [], []>} : vector<8x512xbf16>, vector<512x256xbf16>, vector<8x256xf32> -> vector<8x256xf32>
    %c0_55 = arith.constant 0 : index
    %c0_56 = arith.constant 0 : index
    %89 = vector.load %arg10[%c0_55, %c0_56] : memref<8x256xf32, #tpu.memory_space<vmem>>, vector<1x256xf32>
    %90 = vector.broadcast %89 : vector<1x256xf32> to vector<8x256xf32>
    %91 = arith.addf %88, %90 : vector<8x256xf32>
    %cst_57 = arith.constant 0.000000e+00 : f32
    %92 = vector.broadcast %cst_57 : f32 to vector<8x256xf32>
    %93 = arith.maximumf %91, %92 : vector<8x256xf32>
    %c1_58 = arith.constant 1 : index
    %c0_59 = arith.constant 0 : index
    %94 = vector.load %arg10[%c1_58, %c0_59] : memref<8x256xf32, #tpu.memory_space<vmem>>, vector<1x256xf32>
    %95 = vector.broadcast %94 : vector<1x256xf32> to vector<8x256xf32>
    %96 = arith.mulf %93, %95 : vector<8x256xf32>
    %c2_60 = arith.constant 2 : index
    %c0_61 = arith.constant 0 : index
    %97 = vector.load %arg10[%c2_60, %c0_61] : memref<8x256xf32, #tpu.memory_space<vmem>>, vector<1x256xf32>
    %98 = vector.broadcast %97 : vector<1x256xf32> to vector<8x256xf32>
    %99 = arith.addf %96, %98 : vector<8x256xf32>
    %c4_i32_62 = arith.constant 4 : i32
    %100 = tpu.memref_slice %arg29[%c4_i32_62] : memref<7x!tpu.dma_semaphore, #tpu.memory_space<semaphore_mem>> -> memref<1x!tpu.dma_semaphore, #tpu.memory_space<semaphore_mem>>
    %101 = tpu.memref_squeeze %100 : memref<1x!tpu.dma_semaphore, #tpu.memory_space<semaphore_mem>> -> memref<!tpu.dma_semaphore, #tpu.memory_space<semaphore_mem>>
    tpu.wait_dma2 semaphore(%101 : memref<!tpu.dma_semaphore, #tpu.memory_space<semaphore_mem>>) src(%arg18 : memref<256x128xbf16, #tpu.memory_space<any>>) dst(%arg26 : memref<256x128xbf16, #tpu.memory_space<vmem>>)
    %102 = arith.truncf %99 : vector<8x256xf32> to vector<8x256xbf16>
    %c0_63 = arith.constant 0 : index
    %c0_64 = arith.constant 0 : index
    %103 = vector.load %arg26[%c0_63, %c0_64] : memref<256x128xbf16, #tpu.memory_space<vmem>>, vector<256x128xbf16>
    %cst_65 = arith.constant dense<0.000000e+00> : vector<8x128xf32>
    %104 = tpu.matmul %102, %103, %cst_65 {dimension_numbers = #tpu.dot_dimension_numbers<[1], [0], [0], [1], [0, 0, 1, 1], [], []>} : vector<8x256xbf16>, vector<256x128xbf16>, vector<8x128xf32> -> vector<8x128xf32>
    %c0_66 = arith.constant 0 : index
    %c0_67 = arith.constant 0 : index
    %105 = vector.load %arg11[%c0_66, %c0_67] : memref<8x128xf32, #tpu.memory_space<vmem>>, vector<1x128xf32>
    %106 = vector.broadcast %105 : vector<1x128xf32> to vector<8x128xf32>
    %107 = arith.addf %104, %106 : vector<8x128xf32>
    %cst_68 = arith.constant 0.000000e+00 : f32
    %108 = vector.broadcast %cst_68 : f32 to vector<8x128xf32>
    %109 = arith.maximumf %107, %108 : vector<8x128xf32>
    %c1_69 = arith.constant 1 : index
    %c0_70 = arith.constant 0 : index
    %110 = vector.load %arg11[%c1_69, %c0_70] : memref<8x128xf32, #tpu.memory_space<vmem>>, vector<1x128xf32>
    %111 = vector.broadcast %110 : vector<1x128xf32> to vector<8x128xf32>
    %112 = arith.mulf %109, %111 : vector<8x128xf32>
    %c2_71 = arith.constant 2 : index
    %c0_72 = arith.constant 0 : index
    %113 = vector.load %arg11[%c2_71, %c0_72] : memref<8x128xf32, #tpu.memory_space<vmem>>, vector<1x128xf32>
    %114 = vector.broadcast %113 : vector<1x128xf32> to vector<8x128xf32>
    %115 = arith.addf %112, %114 : vector<8x128xf32>
    %c5_i32_73 = arith.constant 5 : i32
    %116 = tpu.memref_slice %arg29[%c5_i32_73] : memref<7x!tpu.dma_semaphore, #tpu.memory_space<semaphore_mem>> -> memref<1x!tpu.dma_semaphore, #tpu.memory_space<semaphore_mem>>
    %117 = tpu.memref_squeeze %116 : memref<1x!tpu.dma_semaphore, #tpu.memory_space<semaphore_mem>> -> memref<!tpu.dma_semaphore, #tpu.memory_space<semaphore_mem>>
    tpu.wait_dma2 semaphore(%117 : memref<!tpu.dma_semaphore, #tpu.memory_space<semaphore_mem>>) src(%arg19 : memref<128x128xbf16, #tpu.memory_space<any>>) dst(%arg27 : memref<128x128xbf16, #tpu.memory_space<vmem>>)
    %118 = arith.truncf %115 : vector<8x128xf32> to vector<8x128xbf16>
    %c0_74 = arith.constant 0 : index
    %c0_75 = arith.constant 0 : index
    %119 = vector.load %arg27[%c0_74, %c0_75] : memref<128x128xbf16, #tpu.memory_space<vmem>>, vector<128x128xbf16>
    %cst_76 = arith.constant dense<0.000000e+00> : vector<8x128xf32>
    %120 = tpu.matmul %118, %119, %cst_76 {dimension_numbers = #tpu.dot_dimension_numbers<[1], [0], [0], [1], [0, 0, 1, 1], [], []>} : vector<8x128xbf16>, vector<128x128xbf16>, vector<8x128xf32> -> vector<8x128xf32>
    %c0_77 = arith.constant 0 : index
    %c0_78 = arith.constant 0 : index
    %121 = vector.load %arg12[%c0_77, %c0_78] : memref<8x128xf32, #tpu.memory_space<vmem>>, vector<1x128xf32>
    %122 = vector.broadcast %121 : vector<1x128xf32> to vector<8x128xf32>
    %123 = arith.addf %120, %122 : vector<8x128xf32>
    %cst_79 = arith.constant 0.000000e+00 : f32
    %124 = vector.broadcast %cst_79 : f32 to vector<8x128xf32>
    %125 = arith.maximumf %123, %124 : vector<8x128xf32>
    %c1_80 = arith.constant 1 : index
    %c0_81 = arith.constant 0 : index
    %126 = vector.load %arg12[%c1_80, %c0_81] : memref<8x128xf32, #tpu.memory_space<vmem>>, vector<1x128xf32>
    %127 = vector.broadcast %126 : vector<1x128xf32> to vector<8x128xf32>
    %128 = arith.mulf %125, %127 : vector<8x128xf32>
    %c2_82 = arith.constant 2 : index
    %c0_83 = arith.constant 0 : index
    %129 = vector.load %arg12[%c2_82, %c0_83] : memref<8x128xf32, #tpu.memory_space<vmem>>, vector<1x128xf32>
    %130 = vector.broadcast %129 : vector<1x128xf32> to vector<8x128xf32>
    %131 = arith.addf %128, %130 : vector<8x128xf32>
    %c6_i32_84 = arith.constant 6 : i32
    %132 = tpu.memref_slice %arg29[%c6_i32_84] : memref<7x!tpu.dma_semaphore, #tpu.memory_space<semaphore_mem>> -> memref<1x!tpu.dma_semaphore, #tpu.memory_space<semaphore_mem>>
    %133 = tpu.memref_squeeze %132 : memref<1x!tpu.dma_semaphore, #tpu.memory_space<semaphore_mem>> -> memref<!tpu.dma_semaphore, #tpu.memory_space<semaphore_mem>>
    tpu.wait_dma2 semaphore(%133 : memref<!tpu.dma_semaphore, #tpu.memory_space<semaphore_mem>>) src(%arg20 : memref<128x128xbf16, #tpu.memory_space<any>>) dst(%arg28 : memref<128x128xbf16, #tpu.memory_space<vmem>>)
    %134 = arith.truncf %131 : vector<8x128xf32> to vector<8x128xbf16>
    %c0_85 = arith.constant 0 : index
    %c0_86 = arith.constant 0 : index
    %135 = vector.load %arg28[%c0_85, %c0_86] : memref<128x128xbf16, #tpu.memory_space<vmem>>, vector<128x128xbf16>
    %cst_87 = arith.constant dense<0.000000e+00> : vector<8x128xf32>
    %136 = tpu.matmul %134, %135, %cst_87 {dimension_numbers = #tpu.dot_dimension_numbers<[1], [0], [0], [1], [0, 0, 1, 1], [], []>} : vector<8x128xbf16>, vector<128x128xbf16>, vector<8x128xf32> -> vector<8x128xf32>
    %c0_88 = arith.constant 0 : index
    %c0_89 = arith.constant 0 : index
    %137 = vector.load %arg13[%c0_88, %c0_89] : memref<8x128xf32, #tpu.memory_space<vmem>>, vector<1x128xf32>
    %138 = vector.broadcast %137 : vector<1x128xf32> to vector<8x128xf32>
    %139 = arith.addf %136, %138 : vector<8x128xf32>
    %cst_90 = arith.constant 0.000000e+00 : f32
    %140 = vector.broadcast %cst_90 : f32 to vector<8x128xf32>
    %141 = arith.maximumf %139, %140 : vector<8x128xf32>
    %c1_91 = arith.constant 1 : index
    %c0_92 = arith.constant 0 : index
    %142 = vector.load %arg13[%c1_91, %c0_92] : memref<8x128xf32, #tpu.memory_space<vmem>>, vector<1x128xf32>
    %143 = vector.broadcast %142 : vector<1x128xf32> to vector<8x128xf32>
    %144 = arith.mulf %141, %143 : vector<8x128xf32>
    %c2_93 = arith.constant 2 : index
    %c0_94 = arith.constant 0 : index
    %145 = vector.load %arg13[%c2_93, %c0_94] : memref<8x128xf32, #tpu.memory_space<vmem>>, vector<1x128xf32>
    %146 = vector.broadcast %145 : vector<1x128xf32> to vector<8x128xf32>
    %147 = arith.addf %144, %146 : vector<8x128xf32>
    %c0_95 = arith.constant 0 : index
    %c0_96 = arith.constant 0 : index
    %148 = vector.load %arg21[%c0_95, %c0_96] : memref<8x128xf32, #tpu.memory_space<vmem>>, vector<8x128xf32>
    tpu.vector_store %arg21[%c0_95, %c0_96], %147 {strides = array<i32>} : memref<8x128xf32, #tpu.memory_space<vmem>>, vector<8x128xf32>,
    return
  }
}

</mosaic_0001>

<bundles_post_ra>
// kernel: network_forward.1
= control target key start
LH: loop header
LB: loop body
LE: loop exit
PB: predicated region body
PF: predicated region fallthrough
CT: control target
= control target key end

     0   :  { %s7640_s0 = inlined_call_operand.vmem [shape: bf16[8,1024], index: 0, kind: input, shape index: {}]   ;;  %s7641_s1 = inlined_call_operand.vmem [shape: bf16[8,128], index: 1, kind: input, shape index: {}]   ;;  %s7642_s2 = inlined_call_operand.vmem [shape: bf16[8,768], index: 2, kind: input, shape index: {}]   ;;  %s7643_s3 = inlined_call_operand.hbm [shape: bf16[1024,512], index: 3, kind: input, shape index: {}]   ;;  %s7644_s4 = inlined_call_operand.hbm [shape: f32[8,512], index: 4, kind: input, shape index: {}]   ;;  %s7645_s5 = inlined_call_operand.hbm [shape: bf16[128,128], index: 5, kind: input, shape index: {}]   ;;  %s7646_s6 = inlined_call_operand.hbm [shape: f32[8,128], index: 6, kind: input, shape index: {}]   ;;  %s7647_s7 = inlined_call_operand.hbm [shape: bf16[768,384], index: 7, kind: input, shape index: {}]   ;;  %s7648_s8 = inlined_call_operand.hbm [shape: f32[8,384], index: 8, kind: input, shape index: {}]   ;;  %s7649_s9 = inlined_call_operand.hbm [shape: f32[8,512], index: 9, kind: input, shape index: {}]   ;;  %s7650_s10 = inlined_call_operand.vmem [shape: f32[8,256], index: 10, kind: input, shape index: {}]   ;;  %s7651_s11 = inlined_call_operand.hbm [shape: f32[8,128], index: 11, kind: input, shape index: {}]   ;;  %s7652_s12 = inlined_call_operand.hbm [shape: f32[8,128], index: 12, kind: input, shape index: {}]   ;;  %s7653_s13 = inlined_call_operand.hbm [shape: f32[8,128], index: 13, kind: input, shape index: {}]   ;;  %s7654_s14 = inlined_call_operand.hbm [shape: bf16[512,512], index: 14, kind: input, shape index: {}]   ;;  %s7655_s15 = inlined_call_operand.vmem [shape: bf16[128,512], index: 15, kind: input, shape index: {}]   ;;  %s7656_s16 = inlined_call_operand.hbm [shape: bf16[384,512], index: 16, kind: input, shape index: {}]   ;;  %s7657_s17 = inlined_call_operand.hbm [shape: bf16[512,256], index: 17, kind: input, shape index: {}]   ;;  %s7658_s18 = inlined_call_operand.hbm [shape: bf16[256,128], index: 18, kind: input, shape index: {}]   ;;  %s7659_s19 = inlined_call_operand.hbm [shape: bf16[128,128], index: 19, kind: input, shape index: {}]   ;;  %s7660_s20 = inlined_call_operand.hbm [shape: bf16[128,128], index: 20, kind: input, shape index: {}]   ;;  %s7661_s21 = inlined_call_operand.vmem [shape: f32[8,128], index: 21, kind: output, shape index: {}]  }
   0x1   :  { %7669 = sst [smem:[#allocation54_spill]] %s7640_s0 }
   0x2   :  { %7670 = sst [smem:[#allocation55_spill]] %s7641_s1 }
   0x3   :  { %7671 = sst [smem:[#allocation56_spill]] %s7642_s2 }
   0x4   :  { %7672 = sst [smem:[#allocation57_spill]] %s7643_s3 }
   0x5   :  { %7673 = sst [smem:[#allocation58_spill]] %s7644_s4 }
   0x6   :  { %7674 = sst [smem:[#allocation59_spill]] %s7645_s5 }
   0x7   :  { %26 = vsyncpa [#allocation11], 0 }
   0x8   :  { %27 = vsyncpa [#allocation13], 0 }
   0x9   :  { %28 = vsyncpa [#allocation16], 0 }
   0xa   :  { %29 = vsyncpa [#allocation19], 0 }
   0xb   :  { %30 = vsyncpa [#allocation22], 0 }
   0xc   :  { %31 = vsyncpa [#allocation25], 0  ;;  %s6886_s2 = smov [#allocation12]   ;;  %s6887_s26 = smov [#allocation15]  }
   0xd   :  { %s56_s25 = sshll.u32 %s6886_s2, 4  ;;  %s78_s27 = sshll.u32 %s6887_s26, 4  ;;  %s57_s25 = int_to_ptr.vmem [resolvable:$true] %s56_s25  ;;  %s79_s27 = int_to_ptr.vmem [resolvable:$true] %s78_s27 }
   0xe   :  { %s7675_s29 = sld [smem:[#allocation58_spill]] }
  0x14   :  { %s6574_s0 = scalar_lea.hbm %s7675_s29, 512 }
  0x15   :  { %p6575_p0 = scmp.ne.s32.totalorder %s7675_s29, %s6574_s0  ;;  %p6578_p1 = scmp.lt.u32.totalorder %s6574_s0, %s7675_s29 }
  0x17   :  { %p6580_p2 = pnand %p6578_p1, %p6575_p0 }
  0x19   :  { %6583 = shalt.err (!%p6580_p2)
}
  0x1a   :  { %s6584_s23 = scalar_lea.vmem %s57_s25, 512  ;;  %p6589_p4 = scmp.lt.s32.totalorder %s57_s25, %s57_s25 }
  0x1b   :  { %p6585_p3 = scmp.ne.s32.totalorder %s57_s25, %s6584_s23  ;;  %p6590_p5 = scmp.lt.s32.totalorder %s6584_s23, %s6584_s23 }
  0x1d   :  { %p6591_p6 = por %p6590_p5, %p6589_p4 }
  0x1f   :  { %p6592_p7 = pnand %p6591_p6, %p6585_p3 }
  0x21   :  { %6595 = shalt.err (!%p6592_p7)
}
  0x22   :  { %59 = dma.hbm_to_vmem [thread:$0]  %s7675_s29, 512, %s57_s25, [#allocation13]  }
  0x23   :  { %s6596_s3 = scalar_lea.hbm %s7646_s6, 128 }
  0x24   :  { %p6597_p8 = scmp.ne.s32.totalorder %s7646_s6, %s6596_s3  ;;  %p6600_p9 = scmp.lt.u32.totalorder %s6596_s3, %s7646_s6 }
  0x26   :  { %p6602_p10 = pnand %p6600_p9, %p6597_p8 }
  0x28   :  { %6605 = shalt.err (!%p6602_p10)
}
  0x29   :  { %s6606_s5 = scalar_lea.vmem %s79_s27, 128  ;;  %p6611_p12 = scmp.lt.s32.totalorder %s79_s27, %s79_s27 }
  0x2a   :  { %p6607_p11 = scmp.ne.s32.totalorder %s79_s27, %s6606_s5  ;;  %p6612_p13 = scmp.lt.s32.totalorder %s6606_s5, %s6606_s5 }
  0x2c   :  { %p6613_p0 = por %p6612_p13, %p6611_p12 }
  0x2e   :  { %p6614_p1 = pnand %p6613_p0, %p6607_p11 }
  0x30   :  { %6617 = shalt.err (!%p6614_p1)
}
  0x31   :  { %81 = dma.hbm_to_vmem [thread:$0]  %s7646_s6, 128, %s79_s27, [#allocation16]  }
  0x32   :  { %s6888_s22 = smov [#allocation18]   ;;  %s6889_s1 = smov [#allocation21]  }
  0x33   :  { %s100_s23 = sshll.u32 %s6888_s22, 4  ;;  %s122_s24 = sshll.u32 %s6889_s1, 4  ;;  %s101_s23 = int_to_ptr.vmem [resolvable:$true] %s100_s23  ;;  %s123_s24 = int_to_ptr.vmem [resolvable:$true] %s122_s24 }
  0x34   :  { %s6618_s3 = scalar_lea.hbm %s7648_s8, 384 }
  0x35   :  { %p6619_p2 = scmp.ne.s32.totalorder %s7648_s8, %s6618_s3  ;;  %p6622_p3 = scmp.lt.u32.totalorder %s6618_s3, %s7648_s8 }
  0x37   :  { %p6624_p4 = pnand %p6622_p3, %p6619_p2 }
  0x39   :  { %6627 = shalt.err (!%p6624_p4)
}
  0x3a   :  { %s6628_s6 = scalar_lea.vmem %s101_s23, 384  ;;  %p6633_p6 = scmp.lt.s32.totalorder %s101_s23, %s101_s23 }
  0x3b   :  { %p6629_p5 = scmp.ne.s32.totalorder %s101_s23, %s6628_s6  ;;  %p6634_p7 = scmp.lt.s32.totalorder %s6628_s6, %s6628_s6 }
  0x3d   :  { %p6635_p8 = por %p6634_p7, %p6633_p6 }
  0x3f   :  { %p6636_p9 = pnand %p6635_p8, %p6629_p5 }
  0x41   :  { %6639 = shalt.err (!%p6636_p9)
}
  0x42   :  { %103 = dma.hbm_to_vmem [thread:$0]  %s7648_s8, 384, %s101_s23, [#allocation19]  }
  0x43   :  { %s6640_s22 = scalar_lea.hbm %s7651_s11, 128 }
  0x44   :  { %p6641_p10 = scmp.ne.s32.totalorder %s7651_s11, %s6640_s22  ;;  %p6644_p11 = scmp.lt.u32.totalorder %s6640_s22, %s7651_s11 }
  0x46   :  { %p6646_p12 = pnand %p6644_p11, %p6641_p10 }
  0x48   :  { %6649 = shalt.err (!%p6646_p12)
}
  0x49   :  { %s6650_s28 = scalar_lea.vmem %s123_s24, 128  ;;  %p6655_p0 = scmp.lt.s32.totalorder %s123_s24, %s123_s24 }
  0x4a   :  { %p6651_p13 = scmp.ne.s32.totalorder %s123_s24, %s6650_s28  ;;  %p6656_p1 = scmp.lt.s32.totalorder %s6650_s28, %s6650_s28 }
  0x4c   :  { %p6657_p2 = por %p6656_p1, %p6655_p0 }
  0x4e   :  { %p6658_p3 = pnand %p6657_p2, %p6651_p13 }
  0x50   :  { %6661 = shalt.err (!%p6658_p3)
}
  0x51   :  { %125 = dma.hbm_to_vmem [thread:$0]  %s7651_s11, 128, %s123_s24, [#allocation22]  }
  0x52   :  { %s6890_s4 = smov [#allocation10]   ;;  %s7676_s27 = sld [smem:[#allocation57_spill]] }
  0x53   :  { %s43_s0 = sshll.u32 %s6890_s4, 4  ;;  %s44_s0 = int_to_ptr.vmem [resolvable:$true] %s43_s0 }
  0x58   :  { %s6662_s5 = scalar_lea.hbm %s7676_s27, 32768 }
  0x59   :  { %p6663_p4 = scmp.ne.s32.totalorder %s7676_s27, %s6662_s5  ;;  %p6666_p5 = scmp.lt.u32.totalorder %s6662_s5, %s7676_s27 }
  0x5b   :  { %p6668_p6 = pnand %p6666_p5, %p6663_p4 }
  0x5d   :  { %6671 = shalt.err (!%p6668_p6)
}
  0x5e   :  { %s6672_s2 = scalar_lea.vmem %s44_s0, 32768  ;;  %p6677_p8 = scmp.lt.s32.totalorder %s44_s0, %s44_s0 }
  0x5f   :  { %p6673_p7 = scmp.ne.s32.totalorder %s44_s0, %s6672_s2  ;;  %p6678_p9 = scmp.lt.s32.totalorder %s6672_s2, %s6672_s2 }
  0x61   :  { %p6679_p10 = por %p6678_p9, %p6677_p8 }
  0x63   :  { %p6680_p11 = pnand %p6679_p10, %p6673_p7 }
  0x65   :  { %6683 = shalt.err (!%p6680_p11)
}
  0x66   :  { %s7667_s11 = smov 256   ;;  %s6892_s24 = smov 16  }
  0x67   :  { %49 = dma.hbm_to_vmem [thread:$0]  %s7676_s27, 32768, %s44_s0, [#allocation11], %s7667_s11, %s7667_s11, %s6892_s24  }
  0x68   :  { %s6893_s28 = smov [#allocation14]   ;;  %s7677_s30 = sld [smem:[#allocation59_spill]] }
  0x69   :  { %s65_s8 = sshll.u32 %s6893_s28, 4  ;;  %s66_s8 = int_to_ptr.vmem [resolvable:$true] %s65_s8 }
  0x6e   :  { %s6684_s6 = scalar_lea.hbm %s7677_s30, 1024 }
  0x6f   :  { %p6685_p12 = scmp.ne.s32.totalorder %s7677_s30, %s6684_s6  ;;  %p6688_p13 = scmp.lt.u32.totalorder %s6684_s6, %s7677_s30 }
  0x71   :  { %p6690_p0 = pnand %p6688_p13, %p6685_p12 }
  0x73   :  { %6693 = shalt.err (!%p6690_p0)
}
  0x74   :  { %s6694_s1 = scalar_lea.vmem %s66_s8, 1024  ;;  %p6699_p2 = scmp.lt.s32.totalorder %s66_s8, %s66_s8 }
  0x75   :  { %p6695_p1 = scmp.ne.s32.totalorder %s66_s8, %s6694_s1  ;;  %p6700_p3 = scmp.lt.s32.totalorder %s6694_s1, %s6694_s1 }
  0x77   :  { %p6701_p4 = por %p6700_p3, %p6699_p2 }
  0x79   :  { %p6702_p5 = pnand %p6701_p4, %p6695_p1 }
  0x7b   :  { %6705 = shalt.err (!%p6702_p5)
}
  0x7c   :  { %s6894_s0 = smov 64   ;;  %s6895_s27 = smov 4  }
  0x7d   :  { %71 = dma.hbm_to_vmem [thread:$0]  %s7677_s30, 1024, %s66_s8, [#allocation13], %s6894_s0, %s6894_s0, %s6895_s27  }
  0x7e   :  { %s6896_s26 = smov [#allocation17]   ;;  %s6706_s4 = scalar_lea.hbm %s7647_s7, 18432 }
  0x7f   :  { %s87_s3 = sshll.u32 %s6896_s26, 4  ;;  %p6707_p6 = scmp.ne.s32.totalorder %s7647_s7, %s6706_s4  ;;  %s88_s3 = int_to_ptr.vmem [resolvable:$true] %s87_s3 }
  0x80   :  { %p6710_p7 = scmp.lt.u32.totalorder %s6706_s4, %s7647_s7 }
  0x82   :  { %p6712_p8 = pnand %p6710_p7, %p6707_p6 }
  0x84   :  { %6715 = shalt.err (!%p6712_p8)
}
  0x85   :  { %s6716_s22 = scalar_lea.vmem %s88_s3, 18432  ;;  %p6721_p10 = scmp.lt.s32.totalorder %s88_s3, %s88_s3 }
  0x86   :  { %p6717_p9 = scmp.ne.s32.totalorder %s88_s3, %s6716_s22  ;;  %p6722_p11 = scmp.lt.s32.totalorder %s6716_s22, %s6716_s22 }
  0x88   :  { %p6723_p12 = por %p6722_p11, %p6721_p10 }
  0x8a   :  { %p6724_p13 = pnand %p6723_p12, %p6717_p9 }
  0x8c   :  { %6727 = shalt.err (!%p6724_p13)
}
  0x8d   :  { %s6897_s8 = smov 192   ;;  %s6898_s30 = smov 12  }
  0x8e   :  { %93 = dma.hbm_to_vmem [thread:$0]  %s7647_s7, 18432, %s88_s3, [#allocation16], %s6897_s8, %s6897_s8, %s6898_s30  }
  0x8f   :  { %s6899_s24 = smov [#allocation20]   ;;  %s6900_s28 = smov [#allocation23]  }
  0x90   :  { %s110_s26 = sshll.u32 %s6899_s24, 4  ;;  %s132_s23 = sshll.u32 %s6900_s28, 4  ;;  %s111_s26 = int_to_ptr.vmem [resolvable:$true] %s110_s26  ;;  %s133_s23 = int_to_ptr.vmem [resolvable:$true] %s132_s23 }
  0x91   :  { %s6728_s5 = scalar_lea.hbm %s7649_s9, 512 }
  0x92   :  { %p6729_p0 = scmp.ne.s32.totalorder %s7649_s9, %s6728_s5  ;;  %p6732_p1 = scmp.lt.u32.totalorder %s6728_s5, %s7649_s9 }
  0x94   :  { %p6734_p2 = pnand %p6732_p1, %p6729_p0 }
  0x96   :  { %6737 = shalt.err (!%p6734_p2)
}
  0x97   :  { %s6738_s7 = scalar_lea.vmem %s111_s26, 512  ;;  %p6743_p4 = scmp.lt.s32.totalorder %s111_s26, %s111_s26 }
  0x98   :  { %p6739_p3 = scmp.ne.s32.totalorder %s111_s26, %s6738_s7  ;;  %p6744_p5 = scmp.lt.s32.totalorder %s6738_s7, %s6738_s7 }
  0x9a   :  { %p6745_p6 = por %p6744_p5, %p6743_p4 }
  0x9c   :  { %p6746_p7 = pnand %p6745_p6, %p6739_p3 }
  0x9e   :  { %6749 = shalt.err (!%p6746_p7)
}
  0x9f   :  { %113 = dma.hbm_to_vmem [thread:$0]  %s7649_s9, 512, %s111_s26, [#allocation19]  }
  0xa0   :  { %s6750_s2 = scalar_lea.hbm %s7652_s12, 128 }
  0xa1   :  { %p6751_p8 = scmp.ne.s32.totalorder %s7652_s12, %s6750_s2  ;;  %p6754_p9 = scmp.lt.u32.totalorder %s6750_s2, %s7652_s12 }
  0xa3   :  { %p6756_p10 = pnand %p6754_p9, %p6751_p8 }
  0xa5   :  { %6759 = shalt.err (!%p6756_p10)
}
  0xa6   :  { %s6760_s6 = scalar_lea.vmem %s133_s23, 128  ;;  %p6765_p12 = scmp.lt.s32.totalorder %s133_s23, %s133_s23 }
  0xa7   :  { %p6761_p11 = scmp.ne.s32.totalorder %s133_s23, %s6760_s6  ;;  %p6766_p13 = scmp.lt.s32.totalorder %s6760_s6, %s6760_s6 }
  0xa9   :  { %p6767_p0 = por %p6766_p13, %p6765_p12 }
  0xab   :  { %p6768_p1 = pnand %p6767_p0, %p6761_p11 }
  0xad   :  { %6771 = shalt.err (!%p6768_p1)
}
  0xae   :  { %135 = dma.hbm_to_vmem [thread:$0]  %s7652_s12, 128, %s133_s23, [#allocation22]  }
  0xaf   :  { %s6901_s5 = smov [#allocation24]   ;;  %s6772_s7 = scalar_lea.hbm %s7653_s13, 128 }
  0xb0   :  { %s142_s25 = sshll.u32 %s6901_s5, 4  ;;  %p6773_p2 = scmp.ne.s32.totalorder %s7653_s13, %s6772_s7  ;;  %s143_s25 = int_to_ptr.vmem [resolvable:$true] %s142_s25 }
  0xb1   :  { %p6776_p3 = scmp.lt.u32.totalorder %s6772_s7, %s7653_s13 }
  0xb3   :  { %p6778_p4 = pnand %p6776_p3, %p6773_p2 }
  0xb5   :  { %6781 = shalt.err (!%p6778_p4)
}
  0xb6   :  { %s6782_s2 = scalar_lea.vmem %s143_s25, 128  ;;  %p6787_p6 = scmp.lt.s32.totalorder %s143_s25, %s143_s25 }
  0xb7   :  { %p6783_p5 = scmp.ne.s32.totalorder %s143_s25, %s6782_s2  ;;  %p6788_p7 = scmp.lt.s32.totalorder %s6782_s2, %s6782_s2 }
  0xb9   :  { %p6789_p8 = por %p6788_p7, %p6787_p6 }
  0xbb   :  { %p6790_p9 = pnand %p6789_p8, %p6783_p5 }
  0xbd   :  { %6793 = shalt.err (!%p6790_p9)
}
  0xbe   :  { %145 = dma.hbm_to_vmem [thread:$0]  %s7653_s13, 128, %s143_s25, [#allocation25]  }
  0xbf   :  { %6860 = dma.done.wait [#allocation11], 32768  }
  0xc0   :  { %6861 = vsyncadd [#allocation11], 4294934528 }
  0xc1   :  { %6862 = dma.done.wait [#allocation13], 1536  }
  0xc2   :  { %6863 = vsyncadd [#allocation13], 4294965760 }
  0xc3   :  { %6864 = dma.done.wait [#allocation16], 18560  }
  0xc4   :  { %6865 = vsyncadd [#allocation16], 4294948736 }
  0xc5   :  { %6866 = dma.done.wait [#allocation19], 896  }
  0xc6   :  { %6867 = vsyncadd [#allocation19], 4294966400 }
  0xc7   :  { %6868 = dma.done.wait [#allocation22], 256  }
  0xc8   :  { %6869 = vsyncadd [#allocation22], 4294967040 }
  0xc9   :  { %6870 = dma.done.wait [#allocation25], 128  }
  0xca   :  { %6871 = vsyncadd [#allocation25], 4294967168  ;;  %s181_s11 = sld [smem:[#allocation0]]   ;;  %s6902_s24 = smov 512  }
  0xcb   :  { %193 = sst [smem:[#allocation27]] %s6902_s24  ;;  %s6903_s13 = smov [#allocation2]  }
  0xcc   :  { %195 = sst [smem:[#allocation27 + $0x1]] %s6902_s24  ;;  %s189_s28 = sshll.u32 %s6903_s13, 4  ;;  %s190_s28 = int_to_ptr.vmem [resolvable:$true] %s189_s28 }
  0xcd   :  { %197 = sst [smem:[#allocation27 + $0x2]] %s6895_s27  ;;  %s6904_s4 = smov 128  }
  0xce   :  { %199 = sst [smem:[#allocation27 + $0x3]] %s6894_s0  ;;  %s6905_s6 = smov 2  }
  0xcf   :  { %201 = sst [smem:[#allocation27 + $0x4]] %s6904_s4  ;;  %s7678_s26 = smov 256  }
  0xd0   :  { %203 = sst [smem:[#allocation27 + $0x5]] %s6905_s6  ;;  %s5274_s9 = sshll.u32 %s181_s11, 26 }
  0xd1   :  { %205 = sst [smem:[#allocation27 + $0x6]] %s7678_s26  ;;  %s7162_s5 = sadd.s32 134217728, %s5274_s9 }
  0xd2   :  { %207 = sst [smem:[#allocation27 + $0x7]] %s6894_s0  ;;  %s6906_s25 = smov [#allocation9]  }
  0xd3   :  { %209 = sst [smem:[#allocation27 + $0x8]] %s6895_s27  ;;  %s6907_s29 = smov [#allocation26]  }
  0xd4   :  { %211 = dma.general %s7654_s14, 16384, %s190_s28, %s6906_s25, %s6907_s29, [#allocation27], %s7162_s5, 0  }
  0xd5   :  { %v230_v0 = vld [vmem:[%s7655_s15] sm:$0xf]  ;;  %v232_v1 = vld [vmem:[%s7655_s15 + $0x10] sm:$0xf]  ;;  %v234_v2 = vld [vmem:[%s7655_s15 + $0x4] sm:$0xf] }
  0xd6   :  { %231 = vst [vmem:[#allocation3] sm:$0xf] %v230_v0  ;;  %233 = vst [vmem:[#allocation3 + $0x4] sm:$0xf] %v232_v1  ;;  %v236_v3 = vld [vmem:[%s7655_s15 + $0x14] sm:$0xf] }
  0xd7   :  { %235 = vst [vmem:[#allocation3 + $0x8] sm:$0xf] %v234_v2  ;;  %v238_v4 = vld [vmem:[%s7655_s15 + $0x8] sm:$0xf]  ;;  %v240_v5 = vld [vmem:[%s7655_s15 + $0x18] sm:$0xf] }
  0xd8   :  { %237 = vst [vmem:[#allocation3 + $0xc] sm:$0xf] %v236_v3  ;;  %239 = vst [vmem:[#allocation3 + $0x10] sm:$0xf] %v238_v4  ;;  %v242_v6 = vld [vmem:[%s7655_s15 + $0xc] sm:$0xf] }
  0xd9   :  { %241 = vst [vmem:[#allocation3 + $0x14] sm:$0xf] %v240_v5  ;;  %v244_v7 = vld [vmem:[%s7655_s15 + $0x1c] sm:$0xff]   ;;  %v248_v8 = vld [vmem:[%s7655_s15 + $0x30] sm:$0xf] }
  0xda   :  { %243 = vst [vmem:[#allocation3 + $0x18] sm:$0xf] %v242_v6  ;;  %245 = vst [vmem:[#allocation3 + $0x1c] sm:$0xff] %v244_v7   ;;  %v250_v9 = vld [vmem:[%s7655_s15 + $0x24] sm:$0xf]  ;;  %v260_v14 = vld [vmem:[%s7655_s15 + $0x3c] sm:$0xff]  }
  0xdb   :  { %249 = vst [vmem:[#allocation3 + $0x24] sm:$0xf] %v248_v8  ;;  %v252_v10 = vld [vmem:[%s7655_s15 + $0x34] sm:$0xf]  ;;  %v254_v11 = vld [vmem:[%s7655_s15 + $0x28] sm:$0xf] }
  0xdc   :  { %251 = vst [vmem:[#allocation3 + $0x28] sm:$0xf] %v250_v9  ;;  %253 = vst [vmem:[#allocation3 + $0x2c] sm:$0xf] %v252_v10  ;;  %v256_v12 = vld [vmem:[%s7655_s15 + $0x38] sm:$0xf] }
  0xdd   :  { %255 = vst [vmem:[#allocation3 + $0x30] sm:$0xf] %v254_v11  ;;  %v258_v13 = vld [vmem:[%s7655_s15 + $0x2c] sm:$0xf]  ;;  %257 = vst [vmem:[#allocation3 + $0x34] sm:$0xf] %v256_v12 }
  0xde   :  { %259 = vst [vmem:[#allocation3 + $0x38] sm:$0xf] %v258_v13  ;;  %261 = vst [vmem:[#allocation3 + $0x3c] sm:$0xff] %v260_v14   ;;  %v264_v15 = vld [vmem:[%s7655_s15 + $0x50] sm:$0xf]  ;;  %v276_v21 = vld [vmem:[%s7655_s15 + $0x5c] sm:$0xff]  }
  0xdf   :  { %v266_v16 = vld [vmem:[%s7655_s15 + $0x44] sm:$0xf]  ;;  %v268_v17 = vld [vmem:[%s7655_s15 + $0x54] sm:$0xf]  ;;  %265 = vst [vmem:[#allocation3 + $0x44] sm:$0xf] %v264_v15 }
  0xe0   :  { %267 = vst [vmem:[#allocation3 + $0x48] sm:$0xf] %v266_v16  ;;  %269 = vst [vmem:[#allocation3 + $0x4c] sm:$0xf] %v268_v17  ;;  %v270_v18 = vld [vmem:[%s7655_s15 + $0x48] sm:$0xf] }
  0xe1   :  { %v272_v19 = vld [vmem:[%s7655_s15 + $0x58] sm:$0xf]  ;;  %v274_v20 = vld [vmem:[%s7655_s15 + $0x4c] sm:$0xf]  ;;  %271 = vst [vmem:[#allocation3 + $0x50] sm:$0xf] %v270_v18 }
  0xe2   :  { %273 = vst [vmem:[#allocation3 + $0x54] sm:$0xf] %v272_v19  ;;  %275 = vst [vmem:[#allocation3 + $0x58] sm:$0xf] %v274_v20  ;;  %v280_v22 = vld [vmem:[%s7655_s15 + $0x70] sm:$0xf] }
  0xe3   :  { %v282_v23 = vld [vmem:[%s7655_s15 + $0x64] sm:$0xf]  ;;  %277 = vst [vmem:[#allocation3 + $0x5c] sm:$0xff] %v276_v21   ;;  %281 = vst [vmem:[#allocation3 + $0x64] sm:$0xf] %v280_v22  ;;  %v292_v28 = vld [vmem:[%s7655_s15 + $0x7c] sm:$0xff]  }
  0xe4   :  { %283 = vst [vmem:[#allocation3 + $0x68] sm:$0xf] %v282_v23  ;;  %v284_v24 = vld [vmem:[%s7655_s15 + $0x74] sm:$0xf]  ;;  %v286_v25 = vld [vmem:[%s7655_s15 + $0x68] sm:$0xf] }
  0xe5   :  { %v288_v26 = vld [vmem:[%s7655_s15 + $0x78] sm:$0xf]  ;;  %285 = vst [vmem:[#allocation3 + $0x6c] sm:$0xf] %v284_v24  ;;  %287 = vst [vmem:[#allocation3 + $0x70] sm:$0xf] %v286_v25 }
  0xe6   :  { %289 = vst [vmem:[#allocation3 + $0x74] sm:$0xf] %v288_v26  ;;  %v290_v27 = vld [vmem:[%s7655_s15 + $0x6c] sm:$0xf]  ;;  %v296_v29 = vld [vmem:[%s7655_s15 + $0x90] sm:$0xf] }
  0xe7   :  { %291 = vst [vmem:[#allocation3 + $0x78] sm:$0xf] %v290_v27  ;;  %293 = vst [vmem:[#allocation3 + $0x7c] sm:$0xff] %v292_v28   ;;  %v298_v30 = vld [vmem:[%s7655_s15 + $0x84] sm:$0xf]  ;;  %v308_v35 = vld [vmem:[%s7655_s15 + $0x9c] sm:$0xff]  }
  0xe8   :  { %297 = vst [vmem:[#allocation3 + $0x84] sm:$0xf] %v296_v29  ;;  %v300_v31 = vld [vmem:[%s7655_s15 + $0x94] sm:$0xf]  ;;  %v302_v32 = vld [vmem:[%s7655_s15 + $0x88] sm:$0xf] }
  0xe9   :  { %299 = vst [vmem:[#allocation3 + $0x88] sm:$0xf] %v298_v30  ;;  %301 = vst [vmem:[#allocation3 + $0x8c] sm:$0xf] %v300_v31  ;;  %v304_v33 = vld [vmem:[%s7655_s15 + $0x98] sm:$0xf] }
  0xea   :  { %303 = vst [vmem:[#allocation3 + $0x90] sm:$0xf] %v302_v32  ;;  %v306_v34 = vld [vmem:[%s7655_s15 + $0x8c] sm:$0xf]  ;;  %305 = vst [vmem:[#allocation3 + $0x94] sm:$0xf] %v304_v33 }
  0xeb   :  { %307 = vst [vmem:[#allocation3 + $0x98] sm:$0xf] %v306_v34  ;;  %309 = vst [vmem:[#allocation3 + $0x9c] sm:$0xff] %v308_v35   ;;  %v312_v36 = vld [vmem:[%s7655_s15 + $0xb0] sm:$0xf]  ;;  %v324_v42 = vld [vmem:[%s7655_s15 + $0xbc] sm:$0xff]  }
  0xec   :  { %v314_v37 = vld [vmem:[%s7655_s15 + $0xa4] sm:$0xf]  ;;  %v316_v38 = vld [vmem:[%s7655_s15 + $0xb4] sm:$0xf]  ;;  %313 = vst [vmem:[#allocation3 + $0xa4] sm:$0xf] %v312_v36 }
  0xed   :  { %315 = vst [vmem:[#allocation3 + $0xa8] sm:$0xf] %v314_v37  ;;  %317 = vst [vmem:[#allocation3 + $0xac] sm:$0xf] %v316_v38  ;;  %v318_v39 = vld [vmem:[%s7655_s15 + $0xa8] sm:$0xf] }
  0xee   :  { %v320_v40 = vld [vmem:[%s7655_s15 + $0xb8] sm:$0xf]  ;;  %v322_v41 = vld [vmem:[%s7655_s15 + $0xac] sm:$0xf]  ;;  %319 = vst [vmem:[#allocation3 + $0xb0] sm:$0xf] %v318_v39 }
  0xef   :  { %321 = vst [vmem:[#allocation3 + $0xb4] sm:$0xf] %v320_v40  ;;  %323 = vst [vmem:[#allocation3 + $0xb8] sm:$0xf] %v322_v41  ;;  %v328_v43 = vld [vmem:[%s7655_s15 + $0xd0] sm:$0xf] }
  0xf0   :  { %v330_v44 = vld [vmem:[%s7655_s15 + $0xc4] sm:$0xf]  ;;  %325 = vst [vmem:[#allocation3 + $0xbc] sm:$0xff] %v324_v42   ;;  %329 = vst [vmem:[#allocation3 + $0xc4] sm:$0xf] %v328_v43  ;;  %v340_v49 = vld [vmem:[%s7655_s15 + $0xdc] sm:$0xff]  }
  0xf1   :  { %331 = vst [vmem:[#allocation3 + $0xc8] sm:$0xf] %v330_v44  ;;  %v332_v45 = vld [vmem:[%s7655_s15 + $0xd4] sm:$0xf]  ;;  %v334_v46 = vld [vmem:[%s7655_s15 + $0xc8] sm:$0xf] }
  0xf2   :  { %v336_v47 = vld [vmem:[%s7655_s15 + $0xd8] sm:$0xf]  ;;  %333 = vst [vmem:[#allocation3 + $0xcc] sm:$0xf] %v332_v45  ;;  %335 = vst [vmem:[#allocation3 + $0xd0] sm:$0xf] %v334_v46 }
  0xf3   :  { %337 = vst [vmem:[#allocation3 + $0xd4] sm:$0xf] %v336_v47  ;;  %v338_v48 = vld [vmem:[%s7655_s15 + $0xcc] sm:$0xf]  ;;  %v344_v50 = vld [vmem:[%s7655_s15 + $0xf0] sm:$0xf] }
  0xf4   :  { %339 = vst [vmem:[#allocation3 + $0xd8] sm:$0xf] %v338_v48  ;;  %341 = vst [vmem:[#allocation3 + $0xdc] sm:$0xff] %v340_v49   ;;  %v346_v51 = vld [vmem:[%s7655_s15 + $0xe4] sm:$0xf] }
  0xf5   :  { %345 = vst [vmem:[#allocation3 + $0xe4] sm:$0xf] %v344_v50  ;;  %v348_v52 = vld [vmem:[%s7655_s15 + $0xf4] sm:$0xf]  ;;  %v350_v53 = vld [vmem:[%s7655_s15 + $0xe8] sm:$0xf] }
  0xf6   :  { %347 = vst [vmem:[#allocation3 + $0xe8] sm:$0xf] %v346_v51  ;;  %349 = vst [vmem:[#allocation3 + $0xec] sm:$0xf] %v348_v52  ;;  %v352_v54 = vld [vmem:[%s7655_s15 + $0xf8] sm:$0xf] }
  0xf7   :  { %351 = vst [vmem:[#allocation3 + $0xf0] sm:$0xf] %v350_v53  ;;  %v354_v55 = vld [vmem:[%s7655_s15 + $0xec] sm:$0xf]  ;;  %v356_v56 = vld [vmem:[%s7655_s15 + $0xfc] sm:$0xf] }
  0xf8   :  { %353 = vst [vmem:[#allocation3 + $0xf4] sm:$0xf] %v352_v54  ;;  %355 = vst [vmem:[#allocation3 + $0xf8] sm:$0xf] %v354_v55 }
  0xf9   :  { %357 = vst [vmem:[#allocation3 + $0xfc] sm:$0xf] %v356_v56 }
  0xfa   :  { %516 = vsyncadd [#allocation9 + $0x1], 4096  ;;  %533 = sst [smem:[#allocation30]] %s6902_s24  ;;  %s6908_s30 = smov [#allocation4]   ;;  %vm6915_vm0 = vmmov 0  }
  0xfb   :  { %s529_s1 = sshll.u32 %s6908_s30, 4  ;;  %535 = sst [smem:[#allocation30 + $0x1]] %s6902_s24  ;;  %s530_s1 = int_to_ptr.vmem [resolvable:$true] %s529_s1 }
  0xfc   :  { %537 = sst [smem:[#allocation30 + $0x2]] %s6895_s27  ;;  %s6909_s15 = smov [#allocation9 + $0x2]  }
  0xfd   :  { %539 = sst [smem:[#allocation30 + $0x3]] %s6894_s0  ;;  %s6910_s2 = smov [#allocation29]  }
  0xfe   :  { %541 = sst [smem:[#allocation30 + $0x4]] %s6904_s4  ;;  %s6911_s24 = smov [#allocation5]  }
  0xff   :  { %543 = sst [smem:[#allocation30 + $0x5]] %s6905_s6  ;;  %s564_s11 = sshll.u32 %s6911_s24, 4  ;;  %s565_s11 = int_to_ptr.vmem [resolvable:$true] %s564_s11 }
 0x100   :  { %545 = sst [smem:[#allocation30 + $0x6]] %s7678_s26  ;;  %s6913_s14 = smov [#allocation31]  }
 0x101   :  { %547 = sst [smem:[#allocation30 + $0x7]] %s6894_s0  ;;  %s6916_s23 = smov [#allocation6]  }
 0x102   :  { %549 = sst [smem:[#allocation30 + $0x8]] %s6895_s27  ;;  %s595_s24 = sshll.u32 %s6916_s23, 4  ;;  %s596_s24 = int_to_ptr.vmem [resolvable:$true] %s595_s24 }
 0x103   :  { %551 = dma.general %s7656_s16, 12288, %s530_s1, %s6909_s15, %s6910_s2, [#allocation30], %s7162_s5, 0  }
 0x104   :  { %568 = sst [smem:[#allocation32]] %s7678_s26  ;;  %s6912_s16 = smov [#allocation9 + $0x3]  }
 0x105   :  { %570 = sst [smem:[#allocation32 + $0x1]] %s7678_s26  ;;  %s6794_s13 = scalar_lea.hbm %s7658_s18, 2048 }
 0x106   :  { %572 = sst [smem:[#allocation32 + $0x2]] %s6905_s6  ;;  %p6795_p10 = scmp.ne.s32.totalorder %s7658_s18, %s6794_s13 }
 0x107   :  { %574 = sst [smem:[#allocation32 + $0x3]] %s6894_s0  ;;  %p6798_p11 = scmp.lt.u32.totalorder %s6794_s13, %s7658_s18 }
 0x108   :  { %576 = sst [smem:[#allocation32 + $0x4]] %s6904_s4 }
 0x109   :  { %578 = sst [smem:[#allocation32 + $0x5]] %s6905_s6  ;;  %p6800_p12 = pnand %p6798_p11, %p6795_p10 }
 0x10a   :  { %580 = sst [smem:[#allocation32 + $0x6]] %s6904_s4 }
 0x10b   :  { %582 = sst [smem:[#allocation32 + $0x7]] %s6894_s0 }
 0x10c   :  { %584 = sst [smem:[#allocation32 + $0x8]] %s6895_s27 }
 0x10d   :  { %586 = dma.general %s7657_s17, 8192, %s565_s11, %s6912_s16, %s6913_s14, [#allocation32], %s7162_s5, 0  }
 0x10e   :  { %v5976_v57 = vld [vmem:[#allocation10 + $0x4] ss:$16 sps:$4 sm:$0xff]   ;;  %v5978_v58 = vld [vmem:[#allocation10 + $0xc] ss:$16 sps:$4 sm:$0xff]   ;;  %v5980_v59 = vld [vmem:[#allocation10] ss:$16 sps:$4 sm:$0xff]  }
 0x10f   :  { %2213 = vmatprep.subr.bf16.mxu0 %v5976_v57  ;;  %v5981_v60 = vld [vmem:[#allocation10 + $0x8] ss:$16 sps:$4 sm:$0xff]   ;;  %2377 = vmatprep.subr.bf16.mxu1 %v5978_v58  ;;  %v5982_v61 = vld [vmem:[#allocation10 + $0x24] ss:$16 sps:$4 sm:$0xff]   ;;  %v5984_v62 = vld [vmem:[#allocation10 + $0x2c] ss:$16 sps:$4 sm:$0xff]  }
 0x110   :  { %2214 = vmatpush1.bf16.msra.mxu0 %v5980_v59  ;;  %2378 = vmatpush1.bf16.msra.mxu1 %v5981_v60  ;;  %v5986_v63 = vld [vmem:[#allocation10 + $0x20] ss:$16 sps:$4 sm:$0xff]   ;;  %v5987_v0 = vld [vmem:[#allocation10 + $0x28] ss:$16 sps:$4 sm:$0xff]   ;;  %v5988_v1 = vld [vmem:[#allocation10 + $0x44] ss:$16 sps:$4 sm:$0xff]  }
 0x111   :  { %2215 = vmatprep.subr.bf16.mxu0 %v5982_v61  ;;  %2379 = vmatprep.subr.bf16.mxu1 %v5984_v62  ;;  %v5990_v2 = vld [vmem:[#allocation10 + $0x4c] ss:$16 sps:$4 sm:$0xff]   ;;  %v5992_v3 = vld [vmem:[#allocation10 + $0x40] ss:$16 sps:$4 sm:$0xff]   ;;  %v5993_v4 = vld [vmem:[#allocation10 + $0x48] ss:$16 sps:$4 sm:$0xff]  }
 0x112   :  { %v5994_v5 = vld [vmem:[#allocation10 + $0x64] ss:$16 sps:$4 sm:$0xff]   ;;  %v5996_v6 = vld [vmem:[#allocation10 + $0x6c] ss:$16 sps:$4 sm:$0xff]   ;;  %v5998_v7 = vld [vmem:[#allocation10 + $0x60] ss:$16 sps:$4 sm:$0xff]  }
 0x113   :  { %v5999_v8 = vld [vmem:[#allocation10 + $0x68] ss:$16 sps:$4 sm:$0xff]   ;;  %v6000_v9 = vld [vmem:[#allocation10 + $0x84] ss:$16 sps:$4 sm:$0xff]   ;;  %v6002_v10 = vld [vmem:[#allocation10 + $0x8c] ss:$16 sps:$4 sm:$0xff]  }
 0x114   :  { %2216 = vmatpush1.bf16.msra.mxu0 %v5986_v63  ;;  %2380 = vmatpush1.bf16.msra.mxu1 %v5987_v0  ;;  %v6004_v11 = vld [vmem:[#allocation10 + $0x80] ss:$16 sps:$4 sm:$0xff]   ;;  %v6005_v12 = vld [vmem:[#allocation10 + $0x88] ss:$16 sps:$4 sm:$0xff]   ;;  %v6006_v13 = vld [vmem:[#allocation10 + $0xa4] ss:$16 sps:$4 sm:$0xff]  }
 0x115   :  { %2217 = vmatprep.subr.bf16.mxu0 %v5988_v1  ;;  %2381 = vmatprep.subr.bf16.mxu1 %v5990_v2  ;;  %v6008_v14 = vld [vmem:[#allocation10 + $0xac] ss:$16 sps:$4 sm:$0xff]   ;;  %v6010_v15 = vld [vmem:[#allocation10 + $0xa0] ss:$16 sps:$4 sm:$0xff]   ;;  %v6011_v16 = vld [vmem:[#allocation10 + $0xa8] ss:$16 sps:$4 sm:$0xff]  }
 0x116   :  { %v6012_v17 = vld [vmem:[#allocation10 + $0xc4] ss:$16 sps:$4 sm:$0xff]   ;;  %v6014_v18 = vld [vmem:[#allocation10 + $0xcc] ss:$16 sps:$4 sm:$0xff]   ;;  %v6016_v19 = vld [vmem:[#allocation10 + $0xc0] ss:$16 sps:$4 sm:$0xff]  }
 0x117   :  { %v6017_v20 = vld [vmem:[#allocation10 + $0xc8] ss:$16 sps:$4 sm:$0xff]   ;;  %v6018_v21 = vld [vmem:[#allocation10 + $0xe4] ss:$16 sps:$4 sm:$0xff]   ;;  %v6020_v22 = vld [vmem:[#allocation10 + $0xec] ss:$16 sps:$4 sm:$0xff]  }
 0x118   :  { %2218 = vmatpush1.bf16.msra.mxu0 %v5992_v3  ;;  %2382 = vmatpush1.bf16.msra.mxu1 %v5993_v4  ;;  %v6022_v23 = vld [vmem:[#allocation10 + $0xe0] ss:$16 sps:$4 sm:$0xff]   ;;  %v6023_v24 = vld [vmem:[#allocation10 + $0xe8] ss:$16 sps:$4 sm:$0xff]   ;;  %v6024_v25 = vld [vmem:[#allocation10 + $0x104] ss:$16 sps:$4 sm:$0xff]  }
 0x119   :  { %2219 = vmatprep.subr.bf16.mxu0 %v5994_v5  ;;  %2383 = vmatprep.subr.bf16.mxu1 %v5996_v6  ;;  %v6026_v26 = vld [vmem:[#allocation10 + $0x10c] ss:$16 sps:$4 sm:$0xff]   ;;  %v6028_v27 = vld [vmem:[#allocation10 + $0x100] ss:$16 sps:$4 sm:$0xff]   ;;  %v6029_v28 = vld [vmem:[#allocation10 + $0x108] ss:$16 sps:$4 sm:$0xff]  }
 0x11a   :  { %v6030_v29 = vld [vmem:[#allocation10 + $0x124] ss:$16 sps:$4 sm:$0xff]   ;;  %v6032_v30 = vld [vmem:[#allocation10 + $0x12c] ss:$16 sps:$4 sm:$0xff]   ;;  %v6034_v31 = vld [vmem:[#allocation10 + $0x120] ss:$16 sps:$4 sm:$0xff]  }
 0x11b   :  { %v6035_v32 = vld [vmem:[#allocation10 + $0x128] ss:$16 sps:$4 sm:$0xff]   ;;  %v6036_v33 = vld [vmem:[#allocation10 + $0x144] ss:$16 sps:$4 sm:$0xff]   ;;  %v6038_v34 = vld [vmem:[#allocation10 + $0x14c] ss:$16 sps:$4 sm:$0xff]  }
 0x11c   :  { %2220 = vmatpush1.bf16.msra.mxu0 %v5998_v7  ;;  %2384 = vmatpush1.bf16.msra.mxu1 %v5999_v8  ;;  %v6040_v35 = vld [vmem:[#allocation10 + $0x140] ss:$16 sps:$4 sm:$0xff]   ;;  %v6041_v36 = vld [vmem:[#allocation10 + $0x148] ss:$16 sps:$4 sm:$0xff]   ;;  %v6042_v37 = vld [vmem:[#allocation10 + $0x164] ss:$16 sps:$4 sm:$0xff]  }
 0x11d   :  { %2221 = vmatprep.subr.bf16.mxu0 %v6000_v9  ;;  %2385 = vmatprep.subr.bf16.mxu1 %v6002_v10  ;;  %v6044_v38 = vld [vmem:[#allocation10 + $0x16c] ss:$16 sps:$4 sm:$0xff]   ;;  %s7679_s27 = sld [smem:[#allocation54_spill]]  ;;  %v6046_v40 = vld [vmem:[#allocation10 + $0x160] ss:$16 sps:$4 sm:$0xff]   ;;  %s7680_s7 = sld [smem:[#allocation56_spill]] }
 0x11e   :  { %v6047_v42 = vld [vmem:[#allocation10 + $0x168] ss:$16 sps:$4 sm:$0xff]   ;;  %v6048_v43 = vld [vmem:[#allocation10 + $0x184] ss:$16 sps:$4 sm:$0xff]   ;;  %v6050_v44 = vld [vmem:[#allocation10 + $0x18c] ss:$16 sps:$4 sm:$0xff]  }
 0x11f   :  { %v6052_v45 = vld [vmem:[#allocation10 + $0x180] ss:$16 sps:$4 sm:$0xff]   ;;  %v6053_v46 = vld [vmem:[#allocation10 + $0x188] ss:$16 sps:$4 sm:$0xff]   ;;  %v6054_v47 = vld [vmem:[#allocation10 + $0x1a4] ss:$16 sps:$4 sm:$0xff]  }
 0x120   :  { %2222 = vmatpush1.bf16.msra.mxu0 %v6004_v11  ;;  %2386 = vmatpush1.bf16.msra.mxu1 %v6005_v12  ;;  %v6056_v48 = vld [vmem:[#allocation10 + $0x1ac] ss:$16 sps:$4 sm:$0xff]   ;;  %v6058_v49 = vld [vmem:[#allocation10 + $0x1a0] ss:$16 sps:$4 sm:$0xff]   ;;  %v6059_v50 = vld [vmem:[#allocation10 + $0x1a8] ss:$16 sps:$4 sm:$0xff]  }
 0x121   :  { %2223 = vmatprep.subr.bf16.mxu0 %v6006_v13  ;;  %2387 = vmatprep.subr.bf16.mxu1 %v6008_v14  ;;  %v6060_v51 = vld [vmem:[#allocation10 + $0x1c4] ss:$16 sps:$4 sm:$0xff]   ;;  %v6062_v52 = vld [vmem:[#allocation10 + $0x1cc] ss:$16 sps:$4 sm:$0xff]   ;;  %v6064_v53 = vld [vmem:[#allocation10 + $0x1c0] ss:$16 sps:$4 sm:$0xff]  }
 0x122   :  { %v6065_v54 = vld [vmem:[#allocation10 + $0x1c8] ss:$16 sps:$4 sm:$0xff]   ;;  %v6066_v55 = vld [vmem:[#allocation10 + $0x1e4] ss:$16 sps:$4 sm:$0xff]   ;;  %v6068_v56 = vld [vmem:[#allocation10 + $0x1ec] ss:$16 sps:$4 sm:$0xff]  }
 0x123   :  { %v623_v39 = vld [vmem:[%s7679_s27] sm:$0xff]  ;;  %v6071_v58 = vld [vmem:[#allocation10 + $0x1e8] ss:$16 sps:$4 sm:$0xff]   ;;  %v6079_v60 = vld [vmem:[#allocation10 + $0x20c] ss:$16 sps:$4 sm:$0xff]   ;;  %s7681_s30 = sld [smem:[#allocation55_spill]] }
 0x124   :  { %2224 = vmatpush1.bf16.msra.mxu0 %v6010_v15  ;;  %2388 = vmatpush1.bf16.msra.mxu1 %v6011_v16  ;;  %v5281_v41 = vcombine.high %v623_v39, %v623_v39  ;;  %v6070_v57 = vld [vmem:[#allocation10 + $0x1e0] ss:$16 sps:$4 sm:$0xff]   ;;  %v6076_v59 = vld [vmem:[#allocation10 + $0x204] ss:$16 sps:$4 sm:$0xff]   ;;  %v5280_v61 = vcombine.low %v623_v39, %v623_v39  ;;  %v6077_v63 = vld [vmem:[#allocation10 + $0x208] ss:$16 sps:$4 sm:$0xff]  }
 0x125   :  { %2225 = vmatprep.subr.bf16.mxu0 %v6012_v17  ;;  %2389 = vmatprep.subr.bf16.mxu1 %v6014_v18  ;;  %v6074_v62 = vld [vmem:[#allocation10 + $0x200] ss:$16 sps:$4 sm:$0xff]   ;;  %v6082_v0 = vld [vmem:[#allocation10 + $0x224] ss:$16 sps:$4 sm:$0xff]   ;;  %v6085_v1 = vld [vmem:[#allocation10 + $0x22c] ss:$16 sps:$4 sm:$0xff]  }
 0x126   :  { %2245 = vmatprep.mubr.bf16.mxu0 %v5281_v41  ;;  %2409 = vmatprep.mubr.bf16.mxu1 %v5281_v41  ;;  %v6080_v2 = vld [vmem:[#allocation10 + $0x220] ss:$16 sps:$4 sm:$0xff]   ;;  %v6083_v3 = vld [vmem:[#allocation10 + $0x228] ss:$16 sps:$4 sm:$0xff]   ;;  %v6088_v4 = vld [vmem:[#allocation10 + $0x244] ss:$16 sps:$4 sm:$0xff]  }
 0x127   :  { %v6091_v5 = vld [vmem:[#allocation10 + $0x24c] ss:$16 sps:$4 sm:$0xff]   ;;  %v6086_v6 = vld [vmem:[#allocation10 + $0x240] ss:$16 sps:$4 sm:$0xff]   ;;  %v6089_v7 = vld [vmem:[#allocation10 + $0x248] ss:$16 sps:$4 sm:$0xff]  }
 0x128   :  { %2226 = vmatpush1.bf16.msra.mxu0 %v6016_v19  ;;  %2390 = vmatpush1.bf16.msra.mxu1 %v6017_v20  ;;  %v6094_v8 = vld [vmem:[#allocation10 + $0x264] ss:$16 sps:$4 sm:$0xff]   ;;  %v6097_v9 = vld [vmem:[#allocation10 + $0x26c] ss:$16 sps:$4 sm:$0xff]   ;;  %v6092_v10 = vld [vmem:[#allocation10 + $0x260] ss:$16 sps:$4 sm:$0xff]  }
 0x129   :  { %2227 = vmatprep.subr.bf16.mxu0 %v6018_v21  ;;  %2391 = vmatprep.subr.bf16.mxu1 %v6020_v22  ;;  %v6095_v11 = vld [vmem:[#allocation10 + $0x268] ss:$16 sps:$4 sm:$0xff]   ;;  %v6100_v12 = vld [vmem:[#allocation10 + $0x284] ss:$16 sps:$4 sm:$0xff]   ;;  %v6103_v13 = vld [vmem:[#allocation10 + $0x28c] ss:$16 sps:$4 sm:$0xff]  }
 0x12a   :  { %v6098_v14 = vld [vmem:[#allocation10 + $0x280] ss:$16 sps:$4 sm:$0xff]   ;;  %v6101_v15 = vld [vmem:[#allocation10 + $0x288] ss:$16 sps:$4 sm:$0xff]   ;;  %v6106_v16 = vld [vmem:[#allocation10 + $0x2a4] ss:$16 sps:$4 sm:$0xff]  }
 0x12b   :  { %v6109_v17 = vld [vmem:[#allocation10 + $0x2ac] ss:$16 sps:$4 sm:$0xff]   ;;  %v6104_v18 = vld [vmem:[#allocation10 + $0x2a0] ss:$16 sps:$4 sm:$0xff]   ;;  %v6107_v19 = vld [vmem:[#allocation10 + $0x2a8] ss:$16 sps:$4 sm:$0xff]  }
 0x12c   :  { %2228 = vmatpush1.bf16.msra.mxu0 %v6022_v23  ;;  %2392 = vmatpush1.bf16.msra.mxu1 %v6023_v24  ;;  %v6112_v20 = vld [vmem:[#allocation10 + $0x2c4] ss:$16 sps:$4 sm:$0xff]   ;;  %v6115_v21 = vld [vmem:[#allocation10 + $0x2cc] ss:$16 sps:$4 sm:$0xff]   ;;  %v6110_v24 = vld [vmem:[#allocation10 + $0x2c0] ss:$16 sps:$4 sm:$0xff]  }
 0x12d   :  { %2229 = vmatprep.subr.bf16.mxu0 %v6024_v25  ;;  %2393 = vmatprep.subr.bf16.mxu1 %v6026_v26  ;;  %v7373_v22 = vld [vmem:[%s7679_s27 + $0x8] sm:$0xff]  ;;  %v6118_v26 = vld [vmem:[#allocation10 + $0x2e4] ss:$16 sps:$4 sm:$0xff]   ;;  %s6917_s11 = smov [#allocation7]  }
 0x12e   :  { %v5283_v23 = vcombine.high %v7373_v22, %v7373_v22  ;;  %v6113_v25 = vld [vmem:[#allocation10 + $0x2c8] ss:$16 sps:$4 sm:$0xff]   ;;  %v6139_v39 = vld [vmem:[#allocation10 + $0x34c] ss:$16 sps:$4 sm:$0xff]   ;;  %s607_s16 = sshll.u32 %s6917_s11, 4  ;;  %s608_s16 = int_to_ptr.vmem [resolvable:$true] %s607_s16 }
 0x12f   :  { %v6137_v41 = vld [vmem:[#allocation10 + $0x348] ss:$16 sps:$4 sm:$0xff]  }
 0x130   :  { %2230 = vmatpush1.bf16.msra.mxu0 %v6028_v27  ;;  %2394 = vmatpush1.bf16.msra.mxu1 %v6029_v28  ;;  %v6121_v27 = vld [vmem:[#allocation10 + $0x2ec] ss:$16 sps:$4 sm:$0xff]   ;;  %v6116_v28 = vld [vmem:[#allocation10 + $0x2e0] ss:$16 sps:$4 sm:$0xff]  }
 0x131   :  { %2231 = vmatprep.subr.bf16.mxu0 %v6030_v29  ;;  %2395 = vmatprep.subr.bf16.mxu1 %v6032_v30  ;;  %v6119_v29 = vld [vmem:[#allocation10 + $0x2e8] ss:$16 sps:$4 sm:$0xff]   ;;  %v6124_v30 = vld [vmem:[#allocation10 + $0x304] ss:$16 sps:$4 sm:$0xff]  }
 0x134   :  { %2232 = vmatpush1.bf16.msra.mxu0 %v6034_v31  ;;  %2396 = vmatpush1.bf16.msra.mxu1 %v6035_v32  ;;  %v6127_v31 = vld [vmem:[#allocation10 + $0x30c] ss:$16 sps:$4 sm:$0xff]   ;;  %v6122_v32 = vld [vmem:[#allocation10 + $0x300] ss:$16 sps:$4 sm:$0xff]  }
 0x135   :  { %2233 = vmatprep.subr.bf16.mxu0 %v6036_v33  ;;  %2397 = vmatprep.subr.bf16.mxu1 %v6038_v34  ;;  %v6125_v33 = vld [vmem:[#allocation10 + $0x308] ss:$16 sps:$4 sm:$0xff]   ;;  %v6130_v34 = vld [vmem:[#allocation10 + $0x324] ss:$16 sps:$4 sm:$0xff]  }
 0x138   :  { %2234 = vmatpush1.bf16.msra.mxu0 %v6040_v35  ;;  %2398 = vmatpush1.bf16.msra.mxu1 %v6041_v36  ;;  %v6133_v35 = vld [vmem:[#allocation10 + $0x32c] ss:$16 sps:$4 sm:$0xff]   ;;  %v6128_v36 = vld [vmem:[#allocation10 + $0x320] ss:$16 sps:$4 sm:$0xff]  }
 0x139   :  { %2235 = vmatprep.subr.bf16.mxu0 %v6042_v37  ;;  %2399 = vmatprep.subr.bf16.mxu1 %v6044_v38  ;;  %v6131_v37 = vld [vmem:[#allocation10 + $0x328] ss:$16 sps:$4 sm:$0xff]   ;;  %v6136_v38 = vld [vmem:[#allocation10 + $0x344] ss:$16 sps:$4 sm:$0xff]  }
 0x13c   :  { %2236 = vmatpush1.bf16.msra.mxu0 %v6046_v40  ;;  %2400 = vmatpush1.bf16.msra.mxu1 %v6047_v42  ;;  %v6134_v40 = vld [vmem:[#allocation10 + $0x340] ss:$16 sps:$4 sm:$0xff]   ;;  %v6142_v42 = vld [vmem:[#allocation10 + $0x364] ss:$16 sps:$4 sm:$0xff]  }
 0x13d   :  { %2237 = vmatprep.subr.bf16.mxu0 %v6048_v43  ;;  %2401 = vmatprep.subr.bf16.mxu1 %v6050_v44  ;;  %v6145_v43 = vld [vmem:[#allocation10 + $0x36c] ss:$16 sps:$4 sm:$0xff]   ;;  %v6140_v44 = vld [vmem:[#allocation10 + $0x360] ss:$16 sps:$4 sm:$0xff]  }
 0x140   :  { %2238 = vmatpush1.bf16.msra.mxu0 %v6052_v45  ;;  %2402 = vmatpush1.bf16.msra.mxu1 %v6053_v46  ;;  %v6143_v45 = vld [vmem:[#allocation10 + $0x368] ss:$16 sps:$4 sm:$0xff]   ;;  %v6148_v46 = vld [vmem:[#allocation10 + $0x384] ss:$16 sps:$4 sm:$0xff]  }
 0x141   :  { %2239 = vmatprep.subr.bf16.mxu0 %v6054_v47  ;;  %2403 = vmatprep.subr.bf16.mxu1 %v6056_v48  ;;  %v6151_v47 = vld [vmem:[#allocation10 + $0x38c] ss:$16 sps:$4 sm:$0xff]   ;;  %v6146_v48 = vld [vmem:[#allocation10 + $0x380] ss:$16 sps:$4 sm:$0xff]  }
 0x144   :  { %2240 = vmatpush1.bf16.msra.mxu0 %v6058_v49  ;;  %2404 = vmatpush1.bf16.msra.mxu1 %v6059_v50  ;;  %v6149_v49 = vld [vmem:[#allocation10 + $0x388] ss:$16 sps:$4 sm:$0xff]   ;;  %v6154_v50 = vld [vmem:[#allocation10 + $0x3a4] ss:$16 sps:$4 sm:$0xff]  }
 0x145   :  { %2241 = vmatprep.subr.bf16.mxu0 %v6060_v51  ;;  %2405 = vmatprep.subr.bf16.mxu1 %v6062_v52  ;;  %v6157_v51 = vld [vmem:[#allocation10 + $0x3ac] ss:$16 sps:$4 sm:$0xff]   ;;  %v6152_v52 = vld [vmem:[#allocation10 + $0x3a0] ss:$16 sps:$4 sm:$0xff]  }
 0x148   :  { %2242 = vmatpush1.bf16.msra.mxu0 %v6064_v53  ;;  %2406 = vmatpush1.bf16.msra.mxu1 %v6065_v54  ;;  %v6155_v53 = vld [vmem:[#allocation10 + $0x3a8] ss:$16 sps:$4 sm:$0xff]   ;;  %v6160_v54 = vld [vmem:[#allocation10 + $0x3c4] ss:$16 sps:$4 sm:$0xff]  }
 0x149   :  { %2243 = vmatprep.subr.bf16.mxu0 %v6066_v55  ;;  %2407 = vmatprep.subr.bf16.mxu1 %v6068_v56  ;;  %v6163_v55 = vld [vmem:[#allocation10 + $0x3cc] ss:$16 sps:$4 sm:$0xff]   ;;  %v6158_v56 = vld [vmem:[#allocation10 + $0x3c0] ss:$16 sps:$4 sm:$0xff]  }
 0x14c   :  { %2244 = vmatpush1.bf16.msra.mxu0 %v6070_v57  ;;  %2408 = vmatpush1.bf16.msra.mxu1 %v6071_v58  ;;  %v6161_v57 = vld [vmem:[#allocation10 + $0x3c8] ss:$16 sps:$4 sm:$0xff]   ;;  %v6166_v58 = vld [vmem:[#allocation10 + $0x3e4] ss:$16 sps:$4 sm:$0xff]  }
 0x14d   :  { %2254 = vmatprep.subr.bf16.mxu0 %v6076_v59  ;;  %2418 = vmatprep.subr.bf16.mxu1 %v6079_v60  ;;  %v6169_v59 = vld [vmem:[#allocation10 + $0x3ec] ss:$16 sps:$4 sm:$0xff]   ;;  %v6164_v60 = vld [vmem:[#allocation10 + $0x3e0] ss:$16 sps:$4 sm:$0xff]  }
 0x14f   :  { %2246 = vmatmul.mubr.bf16.vlgmr.msra.gmra.mrb[0].mxu0 %v5280_v61  ;;  %2410 = vmatmul.mubr.bf16.vlgmr.msra.gmra.mrb[0].mxu1 %v5280_v61  ;;  %v6167_v61 = vld [vmem:[#allocation10 + $0x3e8] ss:$16 sps:$4 sm:$0xff]  }
 0x150   :  { %2255 = vmatpush1.bf16.msra.mxu0 %v6074_v62  ;;  %2419 = vmatpush1.bf16.msra.mxu1 %v6077_v63  ;;  %v6174_v62 = vld [vmem:[#allocation10 + $0x404] ss:$16 sps:$4 sm:$0xff]   ;;  %v6177_v63 = vld [vmem:[#allocation10 + $0x40c] ss:$16 sps:$4 sm:$0xff]  }
 0x151   :  { %2256 = vmatprep.subr.bf16.mxu0 %v6082_v0  ;;  %2420 = vmatprep.subr.bf16.mxu1 %v6085_v1  ;;  %v5282_v0 = vcombine.low %v7373_v22, %v7373_v22  ;;  %v6172_v1 = vld [vmem:[#allocation10 + $0x400] ss:$16 sps:$4 sm:$0xff]   ;;  %v6207_v22 = vld [vmem:[#allocation10 + $0x4ac] ss:$16 sps:$4 sm:$0xff]  }
 0x152   :  { %2286 = vmatprep.mubr.bf16.mxu0 %v5283_v23  ;;  %2450 = vmatprep.mubr.bf16.mxu1 %v5283_v23  ;;  %v6202_v23 = vld [vmem:[#allocation10 + $0x4a0] ss:$16 sps:$4 sm:$0xff]  }
 0x154   :  { %2257 = vmatpush1.bf16.msra.mxu0 %v6080_v2  ;;  %2421 = vmatpush1.bf16.msra.mxu1 %v6083_v3  ;;  %v6175_v2 = vld [vmem:[#allocation10 + $0x408] ss:$16 sps:$4 sm:$0xff]   ;;  %v6180_v3 = vld [vmem:[#allocation10 + $0x424] ss:$16 sps:$4 sm:$0xff]  }
 0x155   :  { %2258 = vmatprep.subr.bf16.mxu0 %v6088_v4  ;;  %2422 = vmatprep.subr.bf16.mxu1 %v6091_v5  ;;  %v7382_v4 = vld [vmem:[%s7679_s27 + $0x10] sm:$0xff]  ;;  %v6183_v5 = vld [vmem:[#allocation10 + $0x42c] ss:$16 sps:$4 sm:$0xff]  }
 0x158   :  { %2259 = vmatpush1.bf16.msra.mxu0 %v6086_v6  ;;  %2423 = vmatpush1.bf16.msra.mxu1 %v6089_v7  ;;  %v5285_v6 = vcombine.high %v7382_v4, %v7382_v4  ;;  %v6178_v7 = vld [vmem:[#allocation10 + $0x420] ss:$16 sps:$4 sm:$0xff]  }
 0x159   :  { %2260 = vmatprep.subr.bf16.mxu0 %v6094_v8  ;;  %2424 = vmatprep.subr.bf16.mxu1 %v6097_v9  ;;  %v6181_v8 = vld [vmem:[#allocation10 + $0x428] ss:$16 sps:$4 sm:$0xff]   ;;  %v6186_v9 = vld [vmem:[#allocation10 + $0x444] ss:$16 sps:$4 sm:$0xff]  }
 0x15c   :  { %2261 = vmatpush1.bf16.msra.mxu0 %v6092_v10  ;;  %2425 = vmatpush1.bf16.msra.mxu1 %v6095_v11  ;;  %v6189_v10 = vld [vmem:[#allocation10 + $0x44c] ss:$16 sps:$4 sm:$0xff]   ;;  %v6184_v11 = vld [vmem:[#allocation10 + $0x440] ss:$16 sps:$4 sm:$0xff]  }
 0x15d   :  { %2262 = vmatprep.subr.bf16.mxu0 %v6100_v12  ;;  %2426 = vmatprep.subr.bf16.mxu1 %v6103_v13  ;;  %v6187_v12 = vld [vmem:[#allocation10 + $0x448] ss:$16 sps:$4 sm:$0xff]   ;;  %v6192_v13 = vld [vmem:[#allocation10 + $0x464] ss:$16 sps:$4 sm:$0xff]  }
 0x160   :  { %2263 = vmatpush1.bf16.msra.mxu0 %v6098_v14  ;;  %2427 = vmatpush1.bf16.msra.mxu1 %v6101_v15  ;;  %v6195_v14 = vld [vmem:[#allocation10 + $0x46c] ss:$16 sps:$4 sm:$0xff]   ;;  %v6190_v15 = vld [vmem:[#allocation10 + $0x460] ss:$16 sps:$4 sm:$0xff]  }
 0x161   :  { %2264 = vmatprep.subr.bf16.mxu0 %v6106_v16  ;;  %2428 = vmatprep.subr.bf16.mxu1 %v6109_v17  ;;  %v6193_v16 = vld [vmem:[#allocation10 + $0x468] ss:$16 sps:$4 sm:$0xff]   ;;  %v6198_v17 = vld [vmem:[#allocation10 + $0x484] ss:$16 sps:$4 sm:$0xff]  }
 0x164   :  { %2265 = vmatpush1.bf16.msra.mxu0 %v6104_v18  ;;  %2429 = vmatpush1.bf16.msra.mxu1 %v6107_v19  ;;  %v6201_v18 = vld [vmem:[#allocation10 + $0x48c] ss:$16 sps:$4 sm:$0xff]   ;;  %v6196_v19 = vld [vmem:[#allocation10 + $0x480] ss:$16 sps:$4 sm:$0xff]  }
 0x165   :  { %2266 = vmatprep.subr.bf16.mxu0 %v6112_v20  ;;  %2430 = vmatprep.subr.bf16.mxu1 %v6115_v21  ;;  %v6199_v20 = vld [vmem:[#allocation10 + $0x488] ss:$16 sps:$4 sm:$0xff]   ;;  %v6204_v21 = vld [vmem:[#allocation10 + $0x4a4] ss:$16 sps:$4 sm:$0xff]  }
 0x168   :  { %2267 = vmatpush1.bf16.msra.mxu0 %v6110_v24  ;;  %2431 = vmatpush1.bf16.msra.mxu1 %v6113_v25  ;;  %v6205_v24 = vld [vmem:[#allocation10 + $0x4a8] ss:$16 sps:$4 sm:$0xff]   ;;  %v6210_v25 = vld [vmem:[#allocation10 + $0x4c4] ss:$16 sps:$4 sm:$0xff]  }
 0x169   :  { %2268 = vmatprep.subr.bf16.mxu0 %v6118_v26  ;;  %2432 = vmatprep.subr.bf16.mxu1 %v6121_v27  ;;  %v6213_v26 = vld [vmem:[#allocation10 + $0x4cc] ss:$16 sps:$4 sm:$0xff]   ;;  %v6208_v27 = vld [vmem:[#allocation10 + $0x4c0] ss:$16 sps:$4 sm:$0xff]  }
 0x16c   :  { %2269 = vmatpush1.bf16.msra.mxu0 %v6116_v28  ;;  %2433 = vmatpush1.bf16.msra.mxu1 %v6119_v29  ;;  %v6211_v28 = vld [vmem:[#allocation10 + $0x4c8] ss:$16 sps:$4 sm:$0xff]   ;;  %v6216_v29 = vld [vmem:[#allocation10 + $0x4e4] ss:$16 sps:$4 sm:$0xff]  }
 0x16d   :  { %2270 = vmatprep.subr.bf16.mxu0 %v6124_v30  ;;  %2434 = vmatprep.subr.bf16.mxu1 %v6127_v31  ;;  %v6219_v30 = vld [vmem:[#allocation10 + $0x4ec] ss:$16 sps:$4 sm:$0xff]   ;;  %v6214_v31 = vld [vmem:[#allocation10 + $0x4e0] ss:$16 sps:$4 sm:$0xff]  }
 0x170   :  { %2271 = vmatpush1.bf16.msra.mxu0 %v6122_v32  ;;  %2435 = vmatpush1.bf16.msra.mxu1 %v6125_v33  ;;  %v6217_v32 = vld [vmem:[#allocation10 + $0x4e8] ss:$16 sps:$4 sm:$0xff]   ;;  %v6222_v33 = vld [vmem:[#allocation10 + $0x504] ss:$16 sps:$4 sm:$0xff]  }
 0x171   :  { %2272 = vmatprep.subr.bf16.mxu0 %v6130_v34  ;;  %2436 = vmatprep.subr.bf16.mxu1 %v6133_v35  ;;  %v6225_v34 = vld [vmem:[#allocation10 + $0x50c] ss:$16 sps:$4 sm:$0xff]   ;;  %v6220_v35 = vld [vmem:[#allocation10 + $0x500] ss:$16 sps:$4 sm:$0xff]  }
 0x174   :  { %2273 = vmatpush1.bf16.msra.mxu0 %v6128_v36  ;;  %2437 = vmatpush1.bf16.msra.mxu1 %v6131_v37  ;;  %v6223_v36 = vld [vmem:[#allocation10 + $0x508] ss:$16 sps:$4 sm:$0xff]   ;;  %v6228_v37 = vld [vmem:[#allocation10 + $0x524] ss:$16 sps:$4 sm:$0xff]  }
 0x175   :  { %2274 = vmatprep.subr.bf16.mxu0 %v6136_v38  ;;  %2438 = vmatprep.subr.bf16.mxu1 %v6139_v39  ;;  %v6231_v38 = vld [vmem:[#allocation10 + $0x52c] ss:$16 sps:$4 sm:$0xff]   ;;  %v6226_v39 = vld [vmem:[#allocation10 + $0x520] ss:$16 sps:$4 sm:$0xff]  }
 0x178   :  { %2275 = vmatpush1.bf16.msra.mxu0 %v6134_v40  ;;  %2439 = vmatpush1.bf16.msra.mxu1 %v6137_v41  ;;  %v6229_v40 = vld [vmem:[#allocation10 + $0x528] ss:$16 sps:$4 sm:$0xff]   ;;  %v6234_v41 = vld [vmem:[#allocation10 + $0x544] ss:$16 sps:$4 sm:$0xff]  }
 0x179   :  { %2276 = vmatprep.subr.bf16.mxu0 %v6142_v42  ;;  %2440 = vmatprep.subr.bf16.mxu1 %v6145_v43  ;;  %v6237_v42 = vld [vmem:[#allocation10 + $0x54c] ss:$16 sps:$4 sm:$0xff]   ;;  %v6232_v43 = vld [vmem:[#allocation10 + $0x540] ss:$16 sps:$4 sm:$0xff]  }
 0x17c   :  { %2277 = vmatpush1.bf16.msra.mxu0 %v6140_v44  ;;  %2441 = vmatpush1.bf16.msra.mxu1 %v6143_v45  ;;  %v6235_v44 = vld [vmem:[#allocation10 + $0x548] ss:$16 sps:$4 sm:$0xff]   ;;  %v6240_v45 = vld [vmem:[#allocation10 + $0x564] ss:$16 sps:$4 sm:$0xff]  }
 0x17d   :  { %2278 = vmatprep.subr.bf16.mxu0 %v6148_v46  ;;  %2442 = vmatprep.subr.bf16.mxu1 %v6151_v47  ;;  %v6243_v46 = vld [vmem:[#allocation10 + $0x56c] ss:$16 sps:$4 sm:$0xff]   ;;  %v6238_v47 = vld [vmem:[#allocation10 + $0x560] ss:$16 sps:$4 sm:$0xff]  }
 0x180   :  { %2279 = vmatpush1.bf16.msra.mxu0 %v6146_v48  ;;  %2443 = vmatpush1.bf16.msra.mxu1 %v6149_v49  ;;  %v6241_v48 = vld [vmem:[#allocation10 + $0x568] ss:$16 sps:$4 sm:$0xff]   ;;  %v6246_v49 = vld [vmem:[#allocation10 + $0x584] ss:$16 sps:$4 sm:$0xff]  }
 0x181   :  { %2280 = vmatprep.subr.bf16.mxu0 %v6154_v50  ;;  %2444 = vmatprep.subr.bf16.mxu1 %v6157_v51  ;;  %v6249_v50 = vld [vmem:[#allocation10 + $0x58c] ss:$16 sps:$4 sm:$0xff]   ;;  %v6244_v51 = vld [vmem:[#allocation10 + $0x580] ss:$16 sps:$4 sm:$0xff]  }
 0x184   :  { %2281 = vmatpush1.bf16.msra.mxu0 %v6152_v52  ;;  %2445 = vmatpush1.bf16.msra.mxu1 %v6155_v53  ;;  %v6247_v52 = vld [vmem:[#allocation10 + $0x588] ss:$16 sps:$4 sm:$0xff]   ;;  %v6252_v53 = vld [vmem:[#allocation10 + $0x5a4] ss:$16 sps:$4 sm:$0xff]  }
 0x185   :  { %2282 = vmatprep.subr.bf16.mxu0 %v6160_v54  ;;  %2446 = vmatprep.subr.bf16.mxu1 %v6163_v55  ;;  %v6255_v54 = vld [vmem:[#allocation10 + $0x5ac] ss:$16 sps:$4 sm:$0xff]   ;;  %v6250_v55 = vld [vmem:[#allocation10 + $0x5a0] ss:$16 sps:$4 sm:$0xff]  }
 0x188   :  { %2283 = vmatpush1.bf16.msra.mxu0 %v6158_v56  ;;  %2447 = vmatpush1.bf16.msra.mxu1 %v6161_v57  ;;  %v6253_v56 = vld [vmem:[#allocation10 + $0x5a8] ss:$16 sps:$4 sm:$0xff]   ;;  %v6258_v57 = vld [vmem:[#allocation10 + $0x5c4] ss:$16 sps:$4 sm:$0xff]  }
 0x189   :  { %2284 = vmatprep.subr.bf16.mxu0 %v6166_v58  ;;  %2448 = vmatprep.subr.bf16.mxu1 %v6169_v59  ;;  %v6261_v58 = vld [vmem:[#allocation10 + $0x5cc] ss:$16 sps:$4 sm:$0xff]   ;;  %v6256_v59 = vld [vmem:[#allocation10 + $0x5c0] ss:$16 sps:$4 sm:$0xff]  }
 0x18c   :  { %2285 = vmatpush1.bf16.msra.mxu0 %v6164_v60  ;;  %2449 = vmatpush1.bf16.msra.mxu1 %v6167_v61  ;;  %v6259_v60 = vld [vmem:[#allocation10 + $0x5c8] ss:$16 sps:$4 sm:$0xff]   ;;  %v6264_v61 = vld [vmem:[#allocation10 + $0x5e4] ss:$16 sps:$4 sm:$0xff]  }
 0x18d   :  { %2295 = vmatprep.subr.bf16.mxu0 %v6174_v62  ;;  %2459 = vmatprep.subr.bf16.mxu1 %v6177_v63  ;;  %v6267_v62 = vld [vmem:[#allocation10 + $0x5ec] ss:$16 sps:$4 sm:$0xff]   ;;  %v6262_v63 = vld [vmem:[#allocation10 + $0x5e0] ss:$16 sps:$4 sm:$0xff]  }
 0x18f   :  { %2287 = vmatmul.mubr.bf16.vlgmr.msra.gmra.mrb[0].mxu0 %v5282_v0  ;;  %2451 = vmatmul.mubr.bf16.vlgmr.msra.gmra.mrb[0].mxu1 %v5282_v0  ;;  %v6265_v0 = vld [vmem:[#allocation10 + $0x5e8] ss:$16 sps:$4 sm:$0xff]  }
 0x190   :  { %2296 = vmatpush1.bf16.msra.mxu0 %v6172_v1  ;;  %2460 = vmatpush1.bf16.msra.mxu1 %v6175_v2  ;;  %v6272_v1 = vld [vmem:[#allocation10 + $0x604] ss:$16 sps:$4 sm:$0xff]   ;;  %v6275_v2 = vld [vmem:[#allocation10 + $0x60c] ss:$16 sps:$4 sm:$0xff]  }
 0x191   :  { %2297 = vmatprep.subr.bf16.mxu0 %v6180_v3  ;;  %2461 = vmatprep.subr.bf16.mxu1 %v6183_v5  ;;  %v6270_v3 = vld [vmem:[#allocation10 + $0x600] ss:$16 sps:$4 sm:$0xff]   ;;  %v5284_v5 = vcombine.low %v7382_v4, %v7382_v4  ;;  %v6284_v4 = vld [vmem:[#allocation10 + $0x644] ss:$16 sps:$4 sm:$0xff]  }
 0x192   :  { %2327 = vmatprep.mubr.bf16.mxu0 %v5285_v6  ;;  %2491 = vmatprep.mubr.bf16.mxu1 %v5285_v6  ;;  %v6273_v6 = vld [vmem:[#allocation10 + $0x608] ss:$16 sps:$4 sm:$0xff]  }
 0x194   :  { %2298 = vmatpush1.bf16.msra.mxu0 %v6178_v7  ;;  %2462 = vmatpush1.bf16.msra.mxu1 %v6181_v8  ;;  %v7391_v7 = vld [vmem:[%s7679_s27 + $0x18] sm:$0xff]  ;;  %v6278_v8 = vld [vmem:[#allocation10 + $0x624] ss:$16 sps:$4 sm:$0xff]  }
 0x195   :  { %2299 = vmatprep.subr.bf16.mxu0 %v6186_v9  ;;  %2463 = vmatprep.subr.bf16.mxu1 %v6189_v10  ;;  %v6281_v9 = vld [vmem:[#allocation10 + $0x62c] ss:$16 sps:$4 sm:$0xff]   ;;  %v5287_v10 = vcombine.high %v7391_v7, %v7391_v7 }
 0x198   :  { %2300 = vmatpush1.bf16.msra.mxu0 %v6184_v11  ;;  %2464 = vmatpush1.bf16.msra.mxu1 %v6187_v12  ;;  %v6276_v11 = vld [vmem:[#allocation10 + $0x620] ss:$16 sps:$4 sm:$0xff]   ;;  %v6279_v12 = vld [vmem:[#allocation10 + $0x628] ss:$16 sps:$4 sm:$0xff]  }
 0x199   :  { %2301 = vmatprep.subr.bf16.mxu0 %v6192_v13  ;;  %2465 = vmatprep.subr.bf16.mxu1 %v6195_v14  ;;  %v6287_v13 = vld [vmem:[#allocation10 + $0x64c] ss:$16 sps:$4 sm:$0xff]   ;;  %v6282_v14 = vld [vmem:[#allocation10 + $0x640] ss:$16 sps:$4 sm:$0xff]  }
 0x19c   :  { %2302 = vmatpush1.bf16.msra.mxu0 %v6190_v15  ;;  %2466 = vmatpush1.bf16.msra.mxu1 %v6193_v16  ;;  %v6285_v15 = vld [vmem:[#allocation10 + $0x648] ss:$16 sps:$4 sm:$0xff]   ;;  %v6290_v16 = vld [vmem:[#allocation10 + $0x664] ss:$16 sps:$4 sm:$0xff]  }
 0x19d   :  { %2303 = vmatprep.subr.bf16.mxu0 %v6198_v17  ;;  %2467 = vmatprep.subr.bf16.mxu1 %v6201_v18  ;;  %v6293_v17 = vld [vmem:[#allocation10 + $0x66c] ss:$16 sps:$4 sm:$0xff]   ;;  %v6288_v18 = vld [vmem:[#allocation10 + $0x660] ss:$16 sps:$4 sm:$0xff]  }
 0x1a0   :  { %2304 = vmatpush1.bf16.msra.mxu0 %v6196_v19  ;;  %2468 = vmatpush1.bf16.msra.mxu1 %v6199_v20  ;;  %v6291_v19 = vld [vmem:[#allocation10 + $0x668] ss:$16 sps:$4 sm:$0xff]   ;;  %v6296_v20 = vld [vmem:[#allocation10 + $0x684] ss:$16 sps:$4 sm:$0xff]  }
 0x1a1   :  { %2305 = vmatprep.subr.bf16.mxu0 %v6204_v21  ;;  %2469 = vmatprep.subr.bf16.mxu1 %v6207_v22  ;;  %v6299_v21 = vld [vmem:[#allocation10 + $0x68c] ss:$16 sps:$4 sm:$0xff]   ;;  %v6294_v22 = vld [vmem:[#allocation10 + $0x680] ss:$16 sps:$4 sm:$0xff]  }
 0x1a4   :  { %2306 = vmatpush1.bf16.msra.mxu0 %v6202_v23  ;;  %2470 = vmatpush1.bf16.msra.mxu1 %v6205_v24  ;;  %v6297_v23 = vld [vmem:[#allocation10 + $0x688] ss:$16 sps:$4 sm:$0xff]   ;;  %v6302_v24 = vld [vmem:[#allocation10 + $0x6a4] ss:$16 sps:$4 sm:$0xff]  }
 0x1a5   :  { %2307 = vmatprep.subr.bf16.mxu0 %v6210_v25  ;;  %2471 = vmatprep.subr.bf16.mxu1 %v6213_v26  ;;  %v6305_v25 = vld [vmem:[#allocation10 + $0x6ac] ss:$16 sps:$4 sm:$0xff]   ;;  %v6300_v26 = vld [vmem:[#allocation10 + $0x6a0] ss:$16 sps:$4 sm:$0xff]  }
 0x1a8   :  { %2308 = vmatpush1.bf16.msra.mxu0 %v6208_v27  ;;  %2472 = vmatpush1.bf16.msra.mxu1 %v6211_v28  ;;  %v6303_v27 = vld [vmem:[#allocation10 + $0x6a8] ss:$16 sps:$4 sm:$0xff]   ;;  %v6308_v28 = vld [vmem:[#allocation10 + $0x6c4] ss:$16 sps:$4 sm:$0xff]  }
 0x1a9   :  { %2309 = vmatprep.subr.bf16.mxu0 %v6216_v29  ;;  %2473 = vmatprep.subr.bf16.mxu1 %v6219_v30  ;;  %v6311_v29 = vld [vmem:[#allocation10 + $0x6cc] ss:$16 sps:$4 sm:$0xff]   ;;  %v6306_v30 = vld [vmem:[#allocation10 + $0x6c0] ss:$16 sps:$4 sm:$0xff]  }
 0x1ac   :  { %2310 = vmatpush1.bf16.msra.mxu0 %v6214_v31  ;;  %2474 = vmatpush1.bf16.msra.mxu1 %v6217_v32  ;;  %v6309_v31 = vld [vmem:[#allocation10 + $0x6c8] ss:$16 sps:$4 sm:$0xff]   ;;  %v6314_v32 = vld [vmem:[#allocation10 + $0x6e4] ss:$16 sps:$4 sm:$0xff]  }
 0x1ad   :  { %2311 = vmatprep.subr.bf16.mxu0 %v6222_v33  ;;  %2475 = vmatprep.subr.bf16.mxu1 %v6225_v34  ;;  %v6317_v33 = vld [vmem:[#allocation10 + $0x6ec] ss:$16 sps:$4 sm:$0xff]   ;;  %v6312_v34 = vld [vmem:[#allocation10 + $0x6e0] ss:$16 sps:$4 sm:$0xff]  }
 0x1b0   :  { %2312 = vmatpush1.bf16.msra.mxu0 %v6220_v35  ;;  %2476 = vmatpush1.bf16.msra.mxu1 %v6223_v36  ;;  %v6315_v35 = vld [vmem:[#allocation10 + $0x6e8] ss:$16 sps:$4 sm:$0xff]   ;;  %v6320_v36 = vld [vmem:[#allocation10 + $0x704] ss:$16 sps:$4 sm:$0xff]  }
 0x1b1   :  { %2313 = vmatprep.subr.bf16.mxu0 %v6228_v37  ;;  %2477 = vmatprep.subr.bf16.mxu1 %v6231_v38  ;;  %v6323_v37 = vld [vmem:[#allocation10 + $0x70c] ss:$16 sps:$4 sm:$0xff]   ;;  %v6318_v38 = vld [vmem:[#allocation10 + $0x700] ss:$16 sps:$4 sm:$0xff]  }
 0x1b4   :  { %2314 = vmatpush1.bf16.msra.mxu0 %v6226_v39  ;;  %2478 = vmatpush1.bf16.msra.mxu1 %v6229_v40  ;;  %v6321_v39 = vld [vmem:[#allocation10 + $0x708] ss:$16 sps:$4 sm:$0xff]   ;;  %v6326_v40 = vld [vmem:[#allocation10 + $0x724] ss:$16 sps:$4 sm:$0xff]  }
 0x1b5   :  { %2315 = vmatprep.subr.bf16.mxu0 %v6234_v41  ;;  %2479 = vmatprep.subr.bf16.mxu1 %v6237_v42  ;;  %v6329_v41 = vld [vmem:[#allocation10 + $0x72c] ss:$16 sps:$4 sm:$0xff]   ;;  %v6324_v42 = vld [vmem:[#allocation10 + $0x720] ss:$16 sps:$4 sm:$0xff]  }
 0x1b8   :  { %2316 = vmatpush1.bf16.msra.mxu0 %v6232_v43  ;;  %2480 = vmatpush1.bf16.msra.mxu1 %v6235_v44  ;;  %v6327_v43 = vld [vmem:[#allocation10 + $0x728] ss:$16 sps:$4 sm:$0xff]   ;;  %v6332_v44 = vld [vmem:[#allocation10 + $0x744] ss:$16 sps:$4 sm:$0xff]  }
 0x1b9   :  { %2317 = vmatprep.subr.bf16.mxu0 %v6240_v45  ;;  %2481 = vmatprep.subr.bf16.mxu1 %v6243_v46  ;;  %v6335_v45 = vld [vmem:[#allocation10 + $0x74c] ss:$16 sps:$4 sm:$0xff]   ;;  %v6330_v46 = vld [vmem:[#allocation10 + $0x740] ss:$16 sps:$4 sm:$0xff]  }
 0x1bc   :  { %2318 = vmatpush1.bf16.msra.mxu0 %v6238_v47  ;;  %2482 = vmatpush1.bf16.msra.mxu1 %v6241_v48  ;;  %v6333_v47 = vld [vmem:[#allocation10 + $0x748] ss:$16 sps:$4 sm:$0xff]   ;;  %v6338_v48 = vld [vmem:[#allocation10 + $0x764] ss:$16 sps:$4 sm:$0xff]  }
 0x1bd   :  { %2319 = vmatprep.subr.bf16.mxu0 %v6246_v49  ;;  %2483 = vmatprep.subr.bf16.mxu1 %v6249_v50  ;;  %v6341_v49 = vld [vmem:[#allocation10 + $0x76c] ss:$16 sps:$4 sm:$0xff]   ;;  %v6336_v50 = vld [vmem:[#allocation10 + $0x760] ss:$16 sps:$4 sm:$0xff]  }
 0x1c0   :  { %2320 = vmatpush1.bf16.msra.mxu0 %v6244_v51  ;;  %2484 = vmatpush1.bf16.msra.mxu1 %v6247_v52  ;;  %v6339_v51 = vld [vmem:[#allocation10 + $0x768] ss:$16 sps:$4 sm:$0xff]   ;;  %v6344_v52 = vld [vmem:[#allocation10 + $0x784] ss:$16 sps:$4 sm:$0xff]  }
 0x1c1   :  { %2321 = vmatprep.subr.bf16.mxu0 %v6252_v53  ;;  %2485 = vmatprep.subr.bf16.mxu1 %v6255_v54  ;;  %v6347_v53 = vld [vmem:[#allocation10 + $0x78c] ss:$16 sps:$4 sm:$0xff]   ;;  %v6342_v54 = vld [vmem:[#allocation10 + $0x780] ss:$16 sps:$4 sm:$0xff]  }
 0x1c4   :  { %2322 = vmatpush1.bf16.msra.mxu0 %v6250_v55  ;;  %2486 = vmatpush1.bf16.msra.mxu1 %v6253_v56  ;;  %v6345_v55 = vld [vmem:[#allocation10 + $0x788] ss:$16 sps:$4 sm:$0xff]   ;;  %v6350_v56 = vld [vmem:[#allocation10 + $0x7a4] ss:$16 sps:$4 sm:$0xff]  }
 0x1c5   :  { %2323 = vmatprep.subr.bf16.mxu0 %v6258_v57  ;;  %2487 = vmatprep.subr.bf16.mxu1 %v6261_v58  ;;  %v6353_v57 = vld [vmem:[#allocation10 + $0x7ac] ss:$16 sps:$4 sm:$0xff]   ;;  %v6348_v58 = vld [vmem:[#allocation10 + $0x7a0] ss:$16 sps:$4 sm:$0xff]  }
 0x1c8   :  { %2324 = vmatpush1.bf16.msra.mxu0 %v6256_v59  ;;  %2488 = vmatpush1.bf16.msra.mxu1 %v6259_v60  ;;  %v6351_v59 = vld [vmem:[#allocation10 + $0x7a8] ss:$16 sps:$4 sm:$0xff]   ;;  %v6356_v60 = vld [vmem:[#allocation10 + $0x7c4] ss:$16 sps:$4 sm:$0xff]  }
 0x1c9   :  { %2325 = vmatprep.subr.bf16.mxu0 %v6264_v61  ;;  %2489 = vmatprep.subr.bf16.mxu1 %v6267_v62  ;;  %v6359_v61 = vld [vmem:[#allocation10 + $0x7cc] ss:$16 sps:$4 sm:$0xff]   ;;  %v6354_v62 = vld [vmem:[#allocation10 + $0x7c0] ss:$16 sps:$4 sm:$0xff]  }
 0x1cc   :  { %2326 = vmatpush1.bf16.msra.mxu0 %v6262_v63  ;;  %2490 = vmatpush1.bf16.msra.mxu1 %v6265_v0  ;;  %v6357_v63 = vld [vmem:[#allocation10 + $0x7c8] ss:$16 sps:$4 sm:$0xff]   ;;  %v6362_v0 = vld [vmem:[#allocation10 + $0x7e4] ss:$16 sps:$4 sm:$0xff]  }
 0x1cd   :  { %2336 = vmatprep.subr.bf16.mxu0 %v6272_v1  ;;  %2500 = vmatprep.subr.bf16.mxu1 %v6275_v2  ;;  %v6365_v1 = vld [vmem:[#allocation10 + $0x7ec] ss:$16 sps:$4 sm:$0xff]   ;;  %v6360_v2 = vld [vmem:[#allocation10 + $0x7e0] ss:$16 sps:$4 sm:$0xff]  }
 0x1cf   :  { %2328 = vmatmul.mubr.bf16.vlgmr.msra.gmra.mrb[0].mxu0 %v5284_v5  ;;  %2492 = vmatmul.mubr.bf16.vlgmr.msra.gmra.mrb[0].mxu1 %v5284_v5  ;;  %v6370_v5 = vld [vmem:[#allocation17 + $0x4] ss:$12 sps:$4 sm:$0xff]  }
 0x1d0   :  { %2337 = vmatpush1.bf16.msra.mxu0 %v6270_v3  ;;  %2501 = vmatpush1.bf16.msra.mxu1 %v6273_v6  ;;  %v6363_v3 = vld [vmem:[#allocation10 + $0x7e8] ss:$16 sps:$4 sm:$0xff]  }
 0x1d1   :  { %2338 = vmatprep.subr.bf16.mxu0 %v6278_v8  ;;  %2502 = vmatprep.subr.bf16.mxu1 %v6281_v9  ;;  %v6368_v6 = vld [vmem:[#allocation17] ss:$12 sps:$4 sm:$0xff]   ;;  %v5286_v8 = vcombine.low %v7391_v7, %v7391_v7  ;;  %v7400_v9 = vld [vmem:[%s7680_s7] sm:$0xff] }
 0x1d2   :  { %2368 = vmatprep.mubr.bf16.mxu0 %v5287_v10  ;;  %2532 = vmatprep.mubr.bf16.mxu1 %v5287_v10  ;;  %v6371_v10 = vld [vmem:[#allocation14] sm:$0xff]  }
 0x1d3   :  { %v6372_v7 = vld [vmem:[#allocation17 + $0x18] ss:$12 sps:$4 sm:$0xff]  }
 0x1d4   :  { %2339 = vmatpush1.bf16.msra.mxu0 %v6276_v11  ;;  %2503 = vmatpush1.bf16.msra.mxu1 %v6279_v12  ;;  %v6914_v11 = vmov 0.0   ;;  %v6374_v12 = vld [vmem:[#allocation17 + $0x1c] ss:$12 sps:$4 sm:$0xff]  }
 0x1d5   :  { %2340 = vmatprep.subr.bf16.mxu0 %v6284_v4  ;;  %2504 = vmatprep.subr.bf16.mxu1 %v6287_v13  ;;  %v7405_v4 = vcombine.high %v7400_v9, %v7400_v9  ;;  %v6375_v13 = vld [vmem:[#allocation14 + $0x8] sm:$0xff]  }
 0x1d8   :  { %2341 = vmatpush1.bf16.msra.mxu0 %v6282_v14  ;;  %2505 = vmatpush1.bf16.msra.mxu1 %v6285_v15  ;;  %v6378_v14 = vld [vmem:[#allocation17 + $0x34] ss:$12 sps:$4 sm:$0xff]   ;;  %v6376_v15 = vld [vmem:[#allocation17 + $0x30] ss:$12 sps:$4 sm:$0xff]  }
 0x1d9   :  { %2342 = vmatprep.subr.bf16.mxu0 %v6290_v16  ;;  %2506 = vmatprep.subr.bf16.mxu1 %v6293_v17  ;;  %v6379_v16 = vld [vmem:[#allocation14 + $0x10] sm:$0xff]  }
 0x1da   :  { %v6382_v17 = vld [vmem:[#allocation17 + $0x4c] ss:$12 sps:$4 sm:$0xff]  }
 0x1dc   :  { %2343 = vmatpush1.bf16.msra.mxu0 %v6288_v18  ;;  %2507 = vmatpush1.bf16.msra.mxu1 %v6291_v19  ;;  %v6380_v18 = vld [vmem:[#allocation17 + $0x48] ss:$12 sps:$4 sm:$0xff]  }
 0x1dd   :  { %2344 = vmatprep.subr.bf16.mxu0 %v6296_v20  ;;  %2508 = vmatprep.subr.bf16.mxu1 %v6299_v21  ;;  %v6383_v19 = vld [vmem:[#allocation14 + $0x18] sm:$0xff]   ;;  %v6384_v21 = vld [vmem:[#allocation17 + $0x60] ss:$12 sps:$4 sm:$0xff]  }
 0x1de   :  { %v6386_v20 = vld [vmem:[#allocation17 + $0x64] ss:$12 sps:$4 sm:$0xff]  }
 0x1e0   :  { %2345 = vmatpush1.bf16.msra.mxu0 %v6294_v22  ;;  %2509 = vmatpush1.bf16.msra.mxu1 %v6297_v23  ;;  %v6387_v22 = vld [vmem:[#allocation14 + $0x20] sm:$0xff]  }
 0x1e1   :  { %2346 = vmatprep.subr.bf16.mxu0 %v6302_v24  ;;  %2510 = vmatprep.subr.bf16.mxu1 %v6305_v25  ;;  %v6390_v23 = vld [vmem:[#allocation17 + $0x7c] ss:$12 sps:$4 sm:$0xff]   ;;  %v6388_v24 = vld [vmem:[#allocation17 + $0x78] ss:$12 sps:$4 sm:$0xff]  }
 0x1e2   :  { %v6391_v25 = vld [vmem:[#allocation14 + $0x28] sm:$0xff]  }
 0x1e4   :  { %2347 = vmatpush1.bf16.msra.mxu0 %v6300_v26  ;;  %2511 = vmatpush1.bf16.msra.mxu1 %v6303_v27  ;;  %v6394_v26 = vld [vmem:[#allocation17 + $0x94] ss:$12 sps:$4 sm:$0xff]   ;;  %v6392_v27 = vld [vmem:[#allocation17 + $0x90] ss:$12 sps:$4 sm:$0xff]  }
 0x1e5   :  { %2348 = vmatprep.subr.bf16.mxu0 %v6308_v28  ;;  %2512 = vmatprep.subr.bf16.mxu1 %v6311_v29  ;;  %v6395_v28 = vld [vmem:[#allocation14 + $0x30] sm:$0xff]  }
 0x1e6   :  { %v6398_v29 = vld [vmem:[#allocation17 + $0xac] ss:$12 sps:$4 sm:$0xff]  }
 0x1e8   :  { %2349 = vmatpush1.bf16.msra.mxu0 %v6306_v30  ;;  %2513 = vmatpush1.bf16.msra.mxu1 %v6309_v31  ;;  %v6396_v30 = vld [vmem:[#allocation17 + $0xa8] ss:$12 sps:$4 sm:$0xff]  }
 0x1e9   :  { %2350 = vmatprep.subr.bf16.mxu0 %v6314_v32  ;;  %2514 = vmatprep.subr.bf16.mxu1 %v6317_v33  ;;  %v6399_v31 = vld [vmem:[#allocation14 + $0x38] sm:$0xff]  }
 0x1ea   :  { %v6402_v32 = vld [vmem:[#allocation17 + $0xc4] ss:$12 sps:$4 sm:$0xff]   ;;  %v6403_v33 = vld [vmem:[#allocation17 + $0xc8] ss:$12 sps:$4 sm:$0xff]  }
 0x1ec   :  { %2351 = vmatpush1.bf16.msra.mxu0 %v6312_v34  ;;  %2515 = vmatpush1.bf16.msra.mxu1 %v6315_v35  ;;  %v6400_v34 = vld [vmem:[#allocation17 + $0xc0] ss:$12 sps:$4 sm:$0xff]   ;;  %v2599_v35 = vld [vmem:[%s7681_s30] sm:$0xf] }
 0x1ed   :  { %2352 = vmatprep.subr.bf16.mxu0 %v6320_v36  ;;  %2516 = vmatprep.subr.bf16.mxu1 %v6323_v37  ;;  %v6404_v36 = vld [vmem:[#allocation17 + $0x8] ss:$12 sps:$4 sm:$0xff]  }
 0x1ee   :  { %v6407_v37 = vld [vmem:[#allocation17 + $0xdc] ss:$12 sps:$4 sm:$0xff]  }
 0x1f0   :  { %2353 = vmatpush1.bf16.msra.mxu0 %v6318_v38  ;;  %2517 = vmatpush1.bf16.msra.mxu1 %v6321_v39  ;;  %v6408_v38 = vld [vmem:[#allocation17 + $0xe0] ss:$12 sps:$4 sm:$0xff]   ;;  %v6405_v39 = vld [vmem:[#allocation17 + $0xd8] ss:$12 sps:$4 sm:$0xff]  }
 0x1f1   :  { %2354 = vmatprep.subr.bf16.mxu0 %v6326_v40  ;;  %2518 = vmatprep.subr.bf16.mxu1 %v6329_v41  ;;  %v6409_v40 = vld [vmem:[#allocation17 + $0x20] ss:$12 sps:$4 sm:$0xff]  }
 0x1f2   :  { %v6412_v41 = vld [vmem:[#allocation17 + $0xf4] ss:$12 sps:$4 sm:$0xff]  }
 0x1f4   :  { %2355 = vmatpush1.bf16.msra.mxu0 %v6324_v42  ;;  %2519 = vmatpush1.bf16.msra.mxu1 %v6327_v43  ;;  %v6413_v42 = vld [vmem:[#allocation17 + $0xf8] ss:$12 sps:$4 sm:$0xff]   ;;  %v6410_v43 = vld [vmem:[#allocation17 + $0xf0] ss:$12 sps:$4 sm:$0xff]  }
 0x1f5   :  { %2356 = vmatprep.subr.bf16.mxu0 %v6332_v44  ;;  %2520 = vmatprep.subr.bf16.mxu1 %v6335_v45  ;;  %v6414_v44 = vld [vmem:[#allocation17 + $0x38] ss:$12 sps:$4 sm:$0xff]  }
 0x1f6   :  { %v6417_v45 = vld [vmem:[#allocation17 + $0x10c] ss:$12 sps:$4 sm:$0xff]  }
 0x1f8   :  { %2357 = vmatpush1.bf16.msra.mxu0 %v6330_v46  ;;  %2521 = vmatpush1.bf16.msra.mxu1 %v6333_v47  ;;  %v6418_v46 = vld [vmem:[#allocation17 + $0x110] ss:$12 sps:$4 sm:$0xff]   ;;  %v6415_v47 = vld [vmem:[#allocation17 + $0x108] ss:$12 sps:$4 sm:$0xff]  }
 0x1f9   :  { %2358 = vmatprep.subr.bf16.mxu0 %v6338_v48  ;;  %2522 = vmatprep.subr.bf16.mxu1 %v6341_v49  ;;  %v6419_v48 = vld [vmem:[#allocation17 + $0x50] ss:$12 sps:$4 sm:$0xff]  }
 0x1fa   :  { %v6422_v49 = vld [vmem:[#allocation17 + $0x124] ss:$12 sps:$4 sm:$0xff]  }
 0x1fc   :  { %2359 = vmatpush1.bf16.msra.mxu0 %v6336_v50  ;;  %2523 = vmatpush1.bf16.msra.mxu1 %v6339_v51  ;;  %v6423_v50 = vld [vmem:[#allocation17 + $0x128] ss:$12 sps:$4 sm:$0xff]   ;;  %v6420_v51 = vld [vmem:[#allocation17 + $0x120] ss:$12 sps:$4 sm:$0xff]  }
 0x1fd   :  { %2360 = vmatprep.subr.bf16.mxu0 %v6344_v52  ;;  %2524 = vmatprep.subr.bf16.mxu1 %v6347_v53  ;;  %v6424_v52 = vld [vmem:[#allocation17 + $0x68] ss:$12 sps:$4 sm:$0xff]  }
 0x1fe   :  { %v6427_v53 = vld [vmem:[#allocation17 + $0x13c] ss:$12 sps:$4 sm:$0xff]  }
 0x200   :  { %2361 = vmatpush1.bf16.msra.mxu0 %v6342_v54  ;;  %2525 = vmatpush1.bf16.msra.mxu1 %v6345_v55  ;;  %v6428_v54 = vld [vmem:[#allocation17 + $0x140] ss:$12 sps:$4 sm:$0xff]   ;;  %v6425_v55 = vld [vmem:[#allocation17 + $0x138] ss:$12 sps:$4 sm:$0xff]  }
 0x201   :  { %2362 = vmatprep.subr.bf16.mxu0 %v6350_v56  ;;  %2526 = vmatprep.subr.bf16.mxu1 %v6353_v57  ;;  %v6429_v56 = vld [vmem:[#allocation17 + $0x80] ss:$12 sps:$4 sm:$0xff]  }
 0x202   :  { %v6432_v57 = vld [vmem:[#allocation17 + $0x154] ss:$12 sps:$4 sm:$0xff]  }
 0x204   :  { %2363 = vmatpush1.bf16.msra.mxu0 %v6348_v58  ;;  %2527 = vmatpush1.bf16.msra.mxu1 %v6351_v59  ;;  %v6433_v58 = vld [vmem:[#allocation17 + $0x158] ss:$12 sps:$4 sm:$0xff]   ;;  %v6430_v59 = vld [vmem:[#allocation17 + $0x150] ss:$12 sps:$4 sm:$0xff]  }
 0x205   :  { %2364 = vmatprep.subr.bf16.mxu0 %v6356_v60  ;;  %2528 = vmatprep.subr.bf16.mxu1 %v6359_v61  ;;  %v6434_v60 = vld [vmem:[#allocation17 + $0x98] ss:$12 sps:$4 sm:$0xff]  }
 0x206   :  { %v6437_v61 = vld [vmem:[#allocation17 + $0x16c] ss:$12 sps:$4 sm:$0xff]  }
 0x208   :  { %2365 = vmatpush1.bf16.msra.mxu0 %v6354_v62  ;;  %2529 = vmatpush1.bf16.msra.mxu1 %v6357_v63  ;;  %v6438_v62 = vld [vmem:[#allocation17 + $0x170] ss:$12 sps:$4 sm:$0xff]   ;;  %v6435_v63 = vld [vmem:[#allocation17 + $0x168] ss:$12 sps:$4 sm:$0xff]  }
 0x209   :  { %2366 = vmatprep.subr.bf16.mxu0 %v6362_v0  ;;  %2530 = vmatprep.subr.bf16.mxu1 %v6365_v1  ;;  %v6439_v0 = vld [vmem:[#allocation17 + $0xb0] ss:$12 sps:$4 sm:$0xff]  }
 0x20a   :  { %v6444_v1 = vld [vmem:[#allocation17 + $0x184] ss:$12 sps:$4 sm:$0xff]  }
 0x20c   :  { %2367 = vmatpush1.bf16.msra.mxu0 %v6360_v2  ;;  %2531 = vmatpush1.bf16.msra.mxu1 %v6363_v3  ;;  %v6445_v2 = vld [vmem:[#allocation17 + $0x248] ss:$12 sps:$4 sm:$0xff]   ;;  %v5555_v3 = vcombine.low %v7400_v9, %v7400_v9  ;;  %v6447_v9 = vld [vmem:[#allocation17 + $0x198] ss:$12 sps:$4 sm:$0xff]  }
 0x20d   :  { %3723 = vmatprep.subr.bf16.mxu1 %v6370_v5  ;;  %5838 = vmatprep.subr.bf16.mxu0 %v6914_v11  ;;  %v7426_v5 = vld [vmem:[%s7680_s7 + $0x8] sm:$0xff] }
 0x20f   :  { %2369 = vmatmul.mubr.bf16.vlgmr.msra.gmra.mrb[0].mxu0 %v5286_v8  ;;  %2533 = vmatmul.mubr.bf16.vlgmr.msra.gmra.mrb[0].mxu1 %v5286_v8  ;;  %v6446_v8 = vld [vmem:[#allocation17 + $0x188] ss:$12 sps:$4 sm:$0xff]  }
 0x210   :  { %3724 = vmatpush1.bf16.msra.mxu1 %v6368_v6  ;;  %5839 = vmatpush3.bf16.msra.mxu0 %v6371_v10  ;;  %v6442_v6 = vld [vmem:[#allocation17 + $0x180] ss:$12 sps:$4 sm:$0xff]   ;;  %v6449_v10 = vld [vmem:[#allocation17 + $0x19c] ss:$12 sps:$4 sm:$0xff]  }
 0x211   :  { %3725 = vmatprep.subr.bf16.mxu1 %v6374_v12  ;;  %5840 = vmatprep.subr.bf16.mxu0 %v6914_v11  ;;  %v6450_v12 = vld [vmem:[#allocation17 + $0x260] ss:$12 sps:$4 sm:$0xff]  }
 0x212   :  { %5854 = vmatprep.mubr.msk.bf16.mxu0 %vm6915_vm0, %v6914_v11  ;;  %3755 = vmatprep.mubr.bf16.mxu1 %v7405_v4 }
 0x214   :  { %3726 = vmatpush1.bf16.msra.mxu1 %v6372_v7  ;;  %5841 = vmatpush3.bf16.msra.mxu0 %v6375_v13  ;;  %v6451_v7 = vld [vmem:[#allocation17 + $0x1a0] ss:$12 sps:$4 sm:$0xff]  }
 0x215   :  { %3727 = vmatprep.subr.bf16.mxu1 %v6378_v14  ;;  %5842 = vmatprep.subr.bf16.mxu0 %v6914_v11  ;;  %v6454_v13 = vld [vmem:[#allocation17 + $0x1b4] ss:$12 sps:$4 sm:$0xff]   ;;  %v6455_v14 = vld [vmem:[#allocation17 + $0x278] ss:$12 sps:$4 sm:$0xff]  }
 0x218   :  { %3728 = vmatpush1.bf16.msra.mxu1 %v6376_v15  ;;  %5843 = vmatpush3.bf16.msra.mxu0 %v6379_v16  ;;  %v6452_v15 = vld [vmem:[#allocation17 + $0x1b0] ss:$12 sps:$4 sm:$0xff]   ;;  %v6456_v16 = vld [vmem:[#allocation17 + $0x1b8] ss:$12 sps:$4 sm:$0xff]  }
 0x219   :  { %3729 = vmatprep.subr.bf16.mxu1 %v6382_v17  ;;  %5844 = vmatprep.subr.bf16.mxu0 %v6914_v11  ;;  %v6459_v17 = vld [vmem:[#allocation17 + $0x1cc] ss:$12 sps:$4 sm:$0xff]  }
 0x21c   :  { %3730 = vmatpush1.bf16.msra.mxu1 %v6380_v18  ;;  %5845 = vmatpush3.bf16.msra.mxu0 %v6383_v19  ;;  %v6460_v18 = vld [vmem:[#allocation17 + $0x290] ss:$12 sps:$4 sm:$0xff]   ;;  %v6457_v19 = vld [vmem:[#allocation17 + $0x1c8] ss:$12 sps:$4 sm:$0xff]  }
 0x21d   :  { %3731 = vmatprep.subr.bf16.mxu1 %v6386_v20  ;;  %5846 = vmatprep.subr.bf16.mxu0 %v6914_v11  ;;  %v6461_v20 = vld [vmem:[#allocation17 + $0x1d0] ss:$12 sps:$4 sm:$0xff]  }
 0x220   :  { %3732 = vmatpush1.bf16.msra.mxu1 %v6384_v21  ;;  %5847 = vmatpush3.bf16.msra.mxu0 %v6387_v22  ;;  %v6464_v21 = vld [vmem:[#allocation17 + $0x1e4] ss:$12 sps:$4 sm:$0xff]   ;;  %v6465_v22 = vld [vmem:[#allocation17 + $0x2a8] ss:$12 sps:$4 sm:$0xff]  }
 0x221   :  { %3733 = vmatprep.subr.bf16.mxu1 %v6390_v23  ;;  %5848 = vmatprep.subr.bf16.mxu0 %v6914_v11  ;;  %v6462_v23 = vld [vmem:[#allocation17 + $0x1e0] ss:$12 sps:$4 sm:$0xff]  }
 0x224   :  { %3734 = vmatpush1.bf16.msra.mxu1 %v6388_v24  ;;  %5849 = vmatpush3.bf16.msra.mxu0 %v6391_v25  ;;  %v6466_v24 = vld [vmem:[#allocation17 + $0x1e8] ss:$12 sps:$4 sm:$0xff]  }
 0x225   :  { %3735 = vmatprep.subr.bf16.mxu1 %v6394_v26  ;;  %5850 = vmatprep.subr.bf16.mxu0 %v6914_v11  ;;  %v6469_v25 = vld [vmem:[#allocation17 + $0x1fc] ss:$12 sps:$4 sm:$0xff]   ;;  %v6470_v26 = vld [vmem:[#allocation17 + $0x2c0] ss:$12 sps:$4 sm:$0xff]  }
 0x228   :  { %3736 = vmatpush1.bf16.msra.mxu1 %v6392_v27  ;;  %5851 = vmatpush3.bf16.msra.mxu0 %v6395_v28  ;;  %v6467_v27 = vld [vmem:[#allocation17 + $0x1f8] ss:$12 sps:$4 sm:$0xff]   ;;  %v6471_v28 = vld [vmem:[#allocation17 + $0x200] ss:$12 sps:$4 sm:$0xff]  }
 0x229   :  { %3737 = vmatprep.subr.bf16.mxu1 %v6398_v29  ;;  %5852 = vmatprep.subr.bf16.mxu0 %v6914_v11  ;;  %v6474_v29 = vld [vmem:[#allocation17 + $0x214] ss:$12 sps:$4 sm:$0xff]  }
 0x22c   :  { %3738 = vmatpush1.bf16.msra.mxu1 %v6396_v30  ;;  %5853 = vmatpush3.bf16.msra.mxu0 %v6399_v31  ;;  %v6475_v30 = vld [vmem:[#allocation17 + $0x2d8] ss:$12 sps:$4 sm:$0xff]   ;;  %v6472_v31 = vld [vmem:[#allocation17 + $0x210] ss:$12 sps:$4 sm:$0xff]  }
 0x22d   :  { %3739 = vmatprep.subr.bf16.mxu1 %v6402_v32  ;;  %5732 = vmatprep.subr.bf16.mxu0 %v6403_v33  ;;  %v6476_v32 = vld [vmem:[#allocation17 + $0x218] ss:$12 sps:$4 sm:$0xff]  }
 0x22e   :  { %v6479_v33 = vld [vmem:[#allocation17 + $0x22c] ss:$12 sps:$4 sm:$0xff]  }
 0x22f   :  { %5855 = vmatmul.mubr.bf16.vlgmr.msra.gmra.mrb[4].mxu0 %v2599_v35  ;;  %v6477_v35 = vld [vmem:[#allocation17 + $0x228] ss:$12 sps:$4 sm:$0xff]  }
 0x230   :  { %3740 = vmatpush1.bf16.msra.mxu1 %v6400_v34  ;;  %5733 = vmatpush3.bf16.msra.mxu0 %v6404_v36  ;;  %v6480_v34 = vld [vmem:[#allocation17 + $0x2f0] ss:$12 sps:$4 sm:$0xff]  }
 0x231   :  { %3741 = vmatprep.subr.bf16.mxu1 %v6407_v37  ;;  %5734 = vmatprep.subr.bf16.mxu0 %v6408_v38  ;;  %v6481_v36 = vld [vmem:[#allocation17 + $0x230] ss:$12 sps:$4 sm:$0xff]   ;;  %v6487_v38 = vld [vmem:[#allocation17 + $0x3c8] ss:$12 sps:$4 sm:$0xff]  }
 0x232   :  { %3878 = vmatprep.mubr.bf16.mxu0 %v7405_v4  ;;  %v5558_v4 = vcombine.high %v7426_v5, %v7426_v5  ;;  %v6484_v37 = vld [vmem:[#allocation17 + $0x244] ss:$12 sps:$4 sm:$0xff]  }
 0x234   :  { %3742 = vmatpush1.bf16.msra.mxu1 %v6405_v39  ;;  %5735 = vmatpush3.bf16.msra.mxu0 %v6409_v40  ;;  %v7432_v39 = vcombine.low %v7426_v5, %v7426_v5  ;;  %v7437_v40 = vld [vmem:[%s7680_s7 + $0x10] sm:$0xff] }
 0x235   :  { %3743 = vmatprep.subr.bf16.mxu1 %v6412_v41  ;;  %5736 = vmatprep.subr.bf16.mxu0 %v6413_v42  ;;  %v6482_v41 = vld [vmem:[#allocation17 + $0x240] ss:$12 sps:$4 sm:$0xff]   ;;  %v6488_v42 = vld [vmem:[#allocation17 + $0x308] ss:$12 sps:$4 sm:$0xff]  }
 0x236   :  { %v6521_v5 = vld [vmem:[#allocation17 + $0x2ec] ss:$12 sps:$4 sm:$0xff]  }
 0x238   :  { %3744 = vmatpush1.bf16.msra.mxu1 %v6410_v43  ;;  %5737 = vmatpush3.bf16.msra.mxu0 %v6414_v44  ;;  %v6491_v43 = vld [vmem:[#allocation17 + $0x25c] ss:$12 sps:$4 sm:$0xff]   ;;  %v6492_v44 = vld [vmem:[#allocation17 + $0x3e0] ss:$12 sps:$4 sm:$0xff]  }
 0x239   :  { %3745 = vmatprep.subr.bf16.mxu1 %v6417_v45  ;;  %5738 = vmatprep.subr.bf16.mxu0 %v6418_v46  ;;  %v7441_v45 = vcombine.high %v7437_v40, %v7437_v40  ;;  %v6489_v46 = vld [vmem:[#allocation17 + $0x258] ss:$12 sps:$4 sm:$0xff]  }
 0x23c   :  { %3746 = vmatpush1.bf16.msra.mxu1 %v6415_v47  ;;  %5739 = vmatpush3.bf16.msra.mxu0 %v6419_v48  ;;  %v6493_v47 = vld [vmem:[#allocation17 + $0x320] ss:$12 sps:$4 sm:$0xff]  }
 0x23d   :  { %3747 = vmatprep.subr.bf16.mxu1 %v6422_v49  ;;  %5740 = vmatprep.subr.bf16.mxu0 %v6423_v50  ;;  %v6496_v48 = vld [vmem:[#allocation17 + $0x274] ss:$12 sps:$4 sm:$0xff]   ;;  %v6497_v49 = vld [vmem:[#allocation17 + $0x3f8] ss:$12 sps:$4 sm:$0xff]   ;;  %v6494_v50 = vld [vmem:[#allocation17 + $0x270] ss:$12 sps:$4 sm:$0xff]  }
 0x240   :  { %3748 = vmatpush1.bf16.msra.mxu1 %v6420_v51  ;;  %5741 = vmatpush3.bf16.msra.mxu0 %v6424_v52  ;;  %v6498_v51 = vld [vmem:[#allocation17 + $0x338] ss:$12 sps:$4 sm:$0xff]  }
 0x241   :  { %3749 = vmatprep.subr.bf16.mxu1 %v6427_v53  ;;  %5742 = vmatprep.subr.bf16.mxu0 %v6428_v54  ;;  %v6501_v52 = vld [vmem:[#allocation17 + $0x28c] ss:$12 sps:$4 sm:$0xff]   ;;  %v6502_v53 = vld [vmem:[#allocation17 + $0x410] ss:$12 sps:$4 sm:$0xff]   ;;  %v6499_v54 = vld [vmem:[#allocation17 + $0x288] ss:$12 sps:$4 sm:$0xff]  }
 0x244   :  { %3750 = vmatpush1.bf16.msra.mxu1 %v6425_v55  ;;  %5743 = vmatpush3.bf16.msra.mxu0 %v6429_v56  ;;  %v6503_v55 = vld [vmem:[#allocation17 + $0x350] ss:$12 sps:$4 sm:$0xff]  }
 0x245   :  { %3751 = vmatprep.subr.bf16.mxu1 %v6432_v57  ;;  %5744 = vmatprep.subr.bf16.mxu0 %v6433_v58  ;;  %v6506_v56 = vld [vmem:[#allocation17 + $0x2a4] ss:$12 sps:$4 sm:$0xff]   ;;  %v6507_v57 = vld [vmem:[#allocation17 + $0x428] ss:$12 sps:$4 sm:$0xff]   ;;  %v6504_v58 = vld [vmem:[#allocation17 + $0x2a0] ss:$12 sps:$4 sm:$0xff]  }
 0x248   :  { %3752 = vmatpush1.bf16.msra.mxu1 %v6430_v59  ;;  %5745 = vmatpush3.bf16.msra.mxu0 %v6434_v60  ;;  %v6508_v59 = vld [vmem:[#allocation17 + $0x368] ss:$12 sps:$4 sm:$0xff]  }
 0x249   :  { %3753 = vmatprep.subr.bf16.mxu1 %v6437_v61  ;;  %5746 = vmatprep.subr.bf16.mxu0 %v6438_v62  ;;  %v6511_v60 = vld [vmem:[#allocation17 + $0x2bc] ss:$12 sps:$4 sm:$0xff]   ;;  %v6512_v61 = vld [vmem:[#allocation17 + $0x440] ss:$12 sps:$4 sm:$0xff]   ;;  %v6509_v62 = vld [vmem:[#allocation17 + $0x2b8] ss:$12 sps:$4 sm:$0xff]  }
 0x24c   :  { %3754 = vmatpush1.bf16.msra.mxu1 %v6435_v63  ;;  %5747 = vmatpush3.bf16.msra.mxu0 %v6439_v0  ;;  %v6513_v63 = vld [vmem:[#allocation17 + $0x380] ss:$12 sps:$4 sm:$0xff]  }
 0x24d   :  { %3764 = vmatprep.subr.bf16.mxu1 %v6444_v1  ;;  %5754 = vmatprep.subr.bf16.mxu0 %v6445_v2  ;;  %v6516_v0 = vld [vmem:[#allocation17 + $0x2d4] ss:$12 sps:$4 sm:$0xff]   ;;  %v6517_v1 = vld [vmem:[#allocation17 + $0x458] ss:$12 sps:$4 sm:$0xff]   ;;  %v6514_v2 = vld [vmem:[#allocation17 + $0x2d0] ss:$12 sps:$4 sm:$0xff]  }
 0x24f   :  { %3756 = vmatmul.mubr.bf16.vlgmr.msra.gmra.mrb[4].mxu1 %v5555_v3  ;;  %3879 = vmatmul.mubr.bf16.vlgmr.msra.gmra.mrb[8].mxu0 %v5555_v3  ;;  %v6518_v3 = vld [vmem:[#allocation17 + $0x398] ss:$12 sps:$4 sm:$0xff]  }
 0x250   :  { %3765 = vmatpush1.bf16.msra.mxu1 %v6442_v6  ;;  %5755 = vmatpush3.bf16.msra.mxu0 %v6446_v8  ;;  %v6522_v6 = vld [vmem:[#allocation17 + $0x470] ss:$12 sps:$4 sm:$0xff]   ;;  %v6519_v8 = vld [vmem:[#allocation17 + $0x2e8] ss:$12 sps:$4 sm:$0xff]  }
 0x251   :  { %3766 = vmatprep.subr.bf16.mxu1 %v6449_v10  ;;  %5756 = vmatprep.subr.bf16.mxu0 %v6450_v12  ;;  %v6523_v10 = vld [vmem:[#allocation17 + $0x3b0] ss:$12 sps:$4 sm:$0xff]  }
 0x252   :  { %3918 = vmatprep.mubr.bf16.mxu0 %v5558_v4  ;;  %3796 = vmatprep.mubr.bf16.mxu1 %v5558_v4  ;;  %v6526_v12 = vld [vmem:[#allocation17 + $0x304] ss:$12 sps:$4 sm:$0xff]   ;;  %v7447_v4 = vcombine.low %v7437_v40, %v7437_v40  ;;  %v6573_v40 = vld [vmem:[#allocation17 + $0x46c] ss:$12 sps:$4 sm:$0xff]  }
 0x254   :  { %3767 = vmatpush1.bf16.msra.mxu1 %v6447_v9  ;;  %5757 = vmatpush3.bf16.msra.mxu0 %v6451_v7  ;;  %v6524_v9 = vld [vmem:[#allocation17 + $0x300] ss:$12 sps:$4 sm:$0xff]   ;;  %v6531_v7 = vld [vmem:[#allocation17 + $0x31c] ss:$12 sps:$4 sm:$0xff]  }
 0x255   :  { %3768 = vmatprep.subr.bf16.mxu1 %v6454_v13  ;;  %5758 = vmatprep.subr.bf16.mxu0 %v6455_v14  ;;  %v6529_v13 = vld [vmem:[#allocation17 + $0x318] ss:$12 sps:$4 sm:$0xff]   ;;  %v6534_v14 = vld [vmem:[#allocation17 + $0x334] ss:$12 sps:$4 sm:$0xff]  }
 0x258   :  { %3769 = vmatpush1.bf16.msra.mxu1 %v6452_v15  ;;  %5759 = vmatpush3.bf16.msra.mxu0 %v6456_v16  ;;  %v6532_v15 = vld [vmem:[#allocation17 + $0x330] ss:$12 sps:$4 sm:$0xff]   ;;  %v6537_v16 = vld [vmem:[#allocation17 + $0x34c] ss:$12 sps:$4 sm:$0xff]  }
 0x259   :  { %3770 = vmatprep.subr.bf16.mxu1 %v6459_v17  ;;  %5760 = vmatprep.subr.bf16.mxu0 %v6460_v18  ;;  %v6535_v17 = vld [vmem:[#allocation17 + $0x348] ss:$12 sps:$4 sm:$0xff]   ;;  %v6540_v18 = vld [vmem:[#allocation17 + $0x364] ss:$12 sps:$4 sm:$0xff]  }
 0x25c   :  { %3771 = vmatpush1.bf16.msra.mxu1 %v6457_v19  ;;  %5761 = vmatpush3.bf16.msra.mxu0 %v6461_v20  ;;  %v6538_v19 = vld [vmem:[#allocation17 + $0x360] ss:$12 sps:$4 sm:$0xff]   ;;  %v6543_v20 = vld [vmem:[#allocation17 + $0x37c] ss:$12 sps:$4 sm:$0xff]  }
 0x25d   :  { %3772 = vmatprep.subr.bf16.mxu1 %v6464_v21  ;;  %5762 = vmatprep.subr.bf16.mxu0 %v6465_v22  ;;  %v6541_v21 = vld [vmem:[#allocation17 + $0x378] ss:$12 sps:$4 sm:$0xff]   ;;  %v6546_v22 = vld [vmem:[#allocation17 + $0x394] ss:$12 sps:$4 sm:$0xff]  }
 0x260   :  { %3773 = vmatpush1.bf16.msra.mxu1 %v6462_v23  ;;  %5763 = vmatpush3.bf16.msra.mxu0 %v6466_v24  ;;  %v6544_v23 = vld [vmem:[#allocation17 + $0x390] ss:$12 sps:$4 sm:$0xff]   ;;  %v6549_v24 = vld [vmem:[#allocation17 + $0x3ac] ss:$12 sps:$4 sm:$0xff]  }
 0x261   :  { %3774 = vmatprep.subr.bf16.mxu1 %v6469_v25  ;;  %5764 = vmatprep.subr.bf16.mxu0 %v6470_v26  ;;  %v6547_v25 = vld [vmem:[#allocation17 + $0x3a8] ss:$12 sps:$4 sm:$0xff]   ;;  %v6552_v26 = vld [vmem:[#allocation17 + $0x3c4] ss:$12 sps:$4 sm:$0xff]  }
 0x264   :  { %3775 = vmatpush1.bf16.msra.mxu1 %v6467_v27  ;;  %5765 = vmatpush3.bf16.msra.mxu0 %v6471_v28  ;;  %v6550_v27 = vld [vmem:[#allocation17 + $0x3c0] ss:$12 sps:$4 sm:$0xff]   ;;  %v6555_v28 = vld [vmem:[#allocation17 + $0x3dc] ss:$12 sps:$4 sm:$0xff]  }
 0x265   :  { %3776 = vmatprep.subr.bf16.mxu1 %v6474_v29  ;;  %5766 = vmatprep.subr.bf16.mxu0 %v6475_v30  ;;  %v6553_v29 = vld [vmem:[#allocation17 + $0x3d8] ss:$12 sps:$4 sm:$0xff]   ;;  %v6558_v30 = vld [vmem:[#allocation17 + $0x3f4] ss:$12 sps:$4 sm:$0xff]  }
 0x268   :  { %3777 = vmatpush1.bf16.msra.mxu1 %v6472_v31  ;;  %5767 = vmatpush3.bf16.msra.mxu0 %v6476_v32  ;;  %v6556_v31 = vld [vmem:[#allocation17 + $0x3f0] ss:$12 sps:$4 sm:$0xff]   ;;  %v6561_v32 = vld [vmem:[#allocation17 + $0x40c] ss:$12 sps:$4 sm:$0xff]  }
 0x269   :  { %3778 = vmatprep.subr.bf16.mxu1 %v6479_v33  ;;  %5768 = vmatprep.subr.bf16.mxu0 %v6480_v34  ;;  %v6559_v33 = vld [vmem:[#allocation17 + $0x408] ss:$12 sps:$4 sm:$0xff]   ;;  %v6564_v34 = vld [vmem:[#allocation17 + $0x424] ss:$12 sps:$4 sm:$0xff]  }
 0x26c   :  { %3779 = vmatpush1.bf16.msra.mxu1 %v6477_v35  ;;  %5769 = vmatpush3.bf16.msra.mxu0 %v6481_v36  ;;  %v6562_v35 = vld [vmem:[#allocation17 + $0x420] ss:$12 sps:$4 sm:$0xff]   ;;  %v6567_v36 = vld [vmem:[#allocation17 + $0x43c] ss:$12 sps:$4 sm:$0xff]  }
 0x26d   :  { %3780 = vmatprep.subr.bf16.mxu1 %v6484_v37  ;;  %5776 = vmatprep.subr.bf16.mxu0 %v6487_v38  ;;  %v6565_v37 = vld [vmem:[#allocation17 + $0x438] ss:$12 sps:$4 sm:$0xff]   ;;  %v6570_v38 = vld [vmem:[#allocation17 + $0x454] ss:$12 sps:$4 sm:$0xff]  }
 0x26f   :  { %3919 = vmatmul.mubr.bf16.vlgmr.msra.gmra.mrb[12].mxu0 %v7432_v39 }
 0x270   :  { %3781 = vmatpush1.bf16.msra.mxu1 %v6482_v41  ;;  %5777 = vmatpush3.bf16.msra.mxu0 %v6488_v42  ;;  %v6571_v41 = vld [vmem:[#allocation17 + $0x468] ss:$12 sps:$4 sm:$0xff]   ;;  %v885_v42 = vlaneseq }
 0x271   :  { %3782 = vmatprep.subr.bf16.mxu1 %v6491_v43  ;;  %5778 = vmatprep.subr.bf16.mxu0 %v6492_v44 }
 0x272   :  { %3958 = vmatprep.mubr.bf16.mxu0 %v7441_v45  ;;  %v886_v43 = vshrl.u32 %v885_v42, 7 }
 0x274   :  { %3783 = vmatpush1.bf16.msra.mxu1 %v6489_v46  ;;  %5779 = vmatpush3.bf16.msra.mxu0 %v6493_v47  ;;  %v7453_v44 = vsub.s32 0, %v886_v43  ;;  %v883_v46 = vld [vmem:[#allocation12] ss:$8 sm:$0xf]  ;;  %v7457_v47 = vsub.s32 1, %v886_v43 }
 0x275   :  { %3784 = vmatprep.subr.bf16.mxu1 %v6496_v48  ;;  %5780 = vmatprep.subr.bf16.mxu0 %v6497_v49  ;;  %v7459_v48 = vsub.s32 3, %v886_v43 }
 0x276   :  { %v888_v49 = vrot.slane %v883_v46, %v7453_v44 }
 0x278   :  { %3785 = vmatpush1.bf16.msra.mxu1 %v6494_v50  ;;  %5781 = vmatpush3.bf16.msra.mxu0 %v6498_v51  ;;  %v2546_v51 = vld [vmem:[#allocation12 + $0x1] ss:$8 sm:$0xf] }
 0x279   :  { %3786 = vmatprep.subr.bf16.mxu1 %v6501_v52  ;;  %5782 = vmatprep.subr.bf16.mxu0 %v6502_v53  ;;  %v892_v52 = vrot.slane %v883_v46, %v7457_v47  ;;  %v900_v53 = vrot.slane %v883_v46, %v7459_v48 }
 0x27c   :  { %3787 = vmatpush1.bf16.msra.mxu1 %v6499_v54  ;;  %5783 = vmatpush3.bf16.msra.mxu0 %v6503_v55  ;;  %v2573_v55 = vld [vmem:[#allocation12 + $0x2] ss:$8 sm:$0xf] }
 0x27d   :  { %3788 = vmatprep.subr.bf16.mxu1 %v6506_v56  ;;  %5784 = vmatprep.subr.bf16.mxu0 %v6507_v57 }
 0x280   :  { %3789 = vmatpush1.bf16.msra.mxu1 %v6504_v58  ;;  %5785 = vmatpush3.bf16.msra.mxu0 %v6508_v59  ;;  %v2551_v58 = vrot.slane %v2546_v51, %v7453_v44 }
 0x281   :  { %3790 = vmatprep.subr.bf16.mxu1 %v6511_v60  ;;  %5786 = vmatprep.subr.bf16.mxu0 %v6512_v61 }
 0x284   :  { %3791 = vmatpush1.bf16.msra.mxu1 %v6509_v62  ;;  %5787 = vmatpush3.bf16.msra.mxu0 %v6513_v63 }
 0x285   :  { %3792 = vmatprep.subr.bf16.mxu1 %v6516_v0  ;;  %5788 = vmatprep.subr.bf16.mxu0 %v6517_v1  ;;  %v2555_v0 = vrot.slane %v2546_v51, %v7457_v47 }
 0x288   :  { %3793 = vmatpush1.bf16.msra.mxu1 %v6514_v2  ;;  %5789 = vmatpush3.bf16.msra.mxu0 %v6518_v3  ;;  %v2563_v2 = vrot.slane %v2546_v51, %v7459_v48 }
 0x289   :  { %3794 = vmatprep.subr.bf16.mxu1 %v6521_v5  ;;  %5790 = vmatprep.subr.bf16.mxu0 %v6522_v6 }
 0x28c   :  { %3795 = vmatpush1.bf16.msra.mxu1 %v6519_v8  ;;  %5791 = vmatpush3.bf16.msra.mxu0 %v6523_v10  ;;  %v2578_v8 = vrot.slane %v2573_v55, %v7453_v44 }
 0x28d   :  { %3805 = vmatprep.subr.bf16.mxu1 %v6526_v12 }
 0x28f   :  { %3797 = vmatmul.mubr.bf16.vlgmr.msra.gmra.mrb[4].mxu1 %v7432_v39  ;;  %3959 = vmatmul.mubr.bf16.vlgmr.msra.gmra.mrb[16].mxu0 %v7447_v4  ;;  %v6568_v39 = vld [vmem:[#allocation17 + $0x450] ss:$12 sps:$4 sm:$0xff]  }
 0x290   :  { %3806 = vmatpush1.bf16.msra.mxu1 %v6524_v9  ;;  %3837 = vmatprep.mubr.bf16.mxu1 %v7441_v45  ;;  %v7455_v45 = vsub.s32 2, %v886_v43 }
 0x291   :  { %3807 = vmatprep.subr.bf16.mxu1 %v6531_v7 }
 0x292   :  { %v896_v50 = vrot.slane %v883_v46, %v7455_v45  ;;  %v2559_v60 = vrot.slane %v2546_v51, %v7455_v45  ;;  %v2586_v12 = vrot.slane %v2573_v55, %v7455_v45 }
 0x294   :  { %3808 = vmatpush1.bf16.msra.mxu1 %v6529_v13  ;;  %v2582_v13 = vrot.slane %v2573_v55, %v7457_v47 }
 0x295   :  { %3809 = vmatprep.subr.bf16.mxu1 %v6534_v14 }
 0x298   :  { %3810 = vmatpush1.bf16.msra.mxu1 %v6532_v15  ;;  %v2590_v15 = vrot.slane %v2573_v55, %v7459_v48 }
 0x299   :  { %3811 = vmatprep.subr.bf16.mxu1 %v6537_v16 }
 0x29c   :  { %3812 = vmatpush1.bf16.msra.mxu1 %v6535_v17 }
 0x29d   :  { %3813 = vmatprep.subr.bf16.mxu1 %v6540_v18 }
 0x2a0   :  { %3814 = vmatpush1.bf16.msra.mxu1 %v6538_v19 }
 0x2a1   :  { %3815 = vmatprep.subr.bf16.mxu1 %v6543_v20 }
 0x2a4   :  { %3816 = vmatpush1.bf16.msra.mxu1 %v6541_v21 }
 0x2a5   :  { %3817 = vmatprep.subr.bf16.mxu1 %v6546_v22 }
 0x2a8   :  { %3818 = vmatpush1.bf16.msra.mxu1 %v6544_v23 }
 0x2a9   :  { %3819 = vmatprep.subr.bf16.mxu1 %v6549_v24  ;;  %v5544_v24 = vld [vmem:[#allocation15] ss:$0 sm:$0xff] }
 0x2ac   :  { %3820 = vmatpush1.bf16.msra.mxu1 %v6547_v25 }
 0x2ad   :  { %3821 = vmatprep.subr.bf16.mxu1 %v6552_v26 }
 0x2b0   :  { %3822 = vmatpush1.bf16.msra.mxu1 %v6550_v27 }
 0x2b1   :  { %3823 = vmatprep.subr.bf16.mxu1 %v6555_v28  ;;  %v5553_v28 = vld [vmem:[#allocation15 + $0x1] ss:$0 sm:$0xff] }
 0x2b4   :  { %3824 = vmatpush1.bf16.msra.mxu1 %v6553_v29 }
 0x2b5   :  { %3825 = vmatprep.subr.bf16.mxu1 %v6558_v30 }
 0x2b8   :  { %3826 = vmatpush1.bf16.msra.mxu1 %v6556_v31 }
 0x2b9   :  { %3827 = vmatprep.subr.bf16.mxu1 %v6561_v32  ;;  %v5554_v32 = vld [vmem:[#allocation15 + $0x2] ss:$0 sm:$0xff] }
 0x2bc   :  { %3828 = vmatpush1.bf16.msra.mxu1 %v6559_v33 }
 0x2bd   :  { %3829 = vmatprep.subr.bf16.mxu1 %v6564_v34 }
 0x2c0   :  { %3830 = vmatpush1.bf16.msra.mxu1 %v6562_v35 }
 0x2c1   :  { %3831 = vmatprep.subr.bf16.mxu1 %v6567_v36 }
 0x2c4   :  { %3832 = vmatpush1.bf16.msra.mxu1 %v6565_v37 }
 0x2c5   :  { %3833 = vmatprep.subr.bf16.mxu1 %v6570_v38 }
 0x2c8   :  { %3834 = vmatpush1.bf16.msra.mxu1 %v6568_v39 }
 0x2c9   :  { %3835 = vmatprep.subr.bf16.mxu1 %v6573_v40 }
 0x2cc   :  { %3836 = vmatpush1.bf16.msra.mxu1 %v6571_v41 }
 0x2cf   :  { %3838 = vmatmul.mubr.bf16.vlgmr.msra.gmra.mrb[4].mxu1 %v7447_v4 }
 0x2e2   :  { %v2370_v54 = vpop.f32.mrb[0].mxu0  ;;  %v2534_v56 = vpop.f32.mrb[0].mxu1 }
 0x2e3   :  { %v5898_v57 = vadd.f32 %v2370_v54, %v888_v49  ;;  %v5900_v59 = vadd.f32 %v2534_v56, %v896_v50  ;;  %v2372_v61 = vpop.f32.mrb[1].mxu0  ;;  %v2536_v62 = vpop.f32.mrb[1].mxu1 }
 0x2e4   :  { %v5899_v63 = vadd.f32 %v2372_v61, %v892_v52  ;;  %v5901_v1 = vadd.f32 %v2536_v62, %v900_v53  ;;  %v2374_v3 = vpop.f32.mrb[2].mxu0  ;;  %v2538_v5 = vpop.f32.mrb[2].mxu1 }
 0x2e5   :  { %v2541_v6 = vmax.f32 %v5898_v57, 0.0  ;;  %v2543_v10 = vmax.f32 %v5900_v59, 0.0  ;;  %v2375_v4 = vpop.f32.mrb[3].mxu0  ;;  %v2539_v9 = vpop.f32.mrb[3].mxu1 }
 0x2e6   :  { %v2542_v7 = vmax.f32 %v5899_v63, 0.0  ;;  %v2544_v14 = vmax.f32 %v5901_v1, 0.0 }
 0x2e7   :  { %v2568_v16 = vmul.f32 %v2551_v58, %v2541_v6  ;;  %v2570_v17 = vmul.f32 %v2559_v60, %v2543_v10 }
 0x2e8   :  { %v2569_v18 = vmul.f32 %v2555_v0, %v2542_v7  ;;  %v2571_v19 = vmul.f32 %v2563_v2, %v2544_v14 }
 0x2e9   :  { %v7473_v20 = vadd.f32 %v2578_v8, %v2568_v16  ;;  %v7475_v21 = vadd.f32 %v2586_v12, %v2570_v17 }
 0x2ea   :  { %v7477_v22 = vadd.f32 %v2582_v13, %v2569_v18  ;;  %v7479_v23 = vadd.f32 %v2590_v15, %v2571_v19 }
 0x302   :  { %v2703_v25 = vpop.f32.mrb[4].mxu0 }
 0x303   :  { %v2704_v26 = vadd.f32 %v5544_v24, %v2703_v25  ;;  %v5856_v27 = vpop.f32.mrb[5].mxu0 }
 0x304   :  { %v2706_v29 = vpop.f32.mrb[6].mxu0 }
 0x305   :  { %v2709_v30 = vmax.f32 %v2704_v26, 0.0  ;;  %v5857_v31 = vpop.f32.mrb[7].mxu0 }
 0x307   :  { %v2715_v33 = vmul.f32 %v5553_v28, %v2709_v30 }
 0x309   :  { %v7481_v34 = vadd.f32 %v5554_v32, %v2715_v33 }
 0x322   :  { %v5748_v35 = vpop.f32.mrb[8].mxu0 }
 0x323   :  { %v5749_v36 = vpop.f32.mrb[9].mxu0 }
 0x324   :  { %v5750_v37 = vadd.f32 %v5749_v36, %v5748_v35  ;;  %v5751_v38 = vpop.f32.mrb[10].mxu0 }
 0x325   :  { %v5752_v39 = vpop.f32.mrb[11].mxu0 }
 0x326   :  { %6803 = shalt.err (!%p6800_p12)  }
 0x327   :  { %s6804_s6 = scalar_lea.vmem %s596_s24, 2048  ;;  %p6809_p0 = scmp.lt.s32.totalorder %s596_s24, %s596_s24 }
 0x328   :  { %p6805_p13 = scmp.ne.s32.totalorder %s596_s24, %s6804_s6  ;;  %p6810_p1 = scmp.lt.s32.totalorder %s6804_s6, %s6804_s6 }
 0x32a   :  { %p6811_p2 = por %p6810_p1, %p6809_p0 }
 0x32c   :  { %p6812_p3 = pnand %p6811_p2, %p6805_p13 }
 0x32e   :  { %6815 = shalt.err (!%p6812_p3)  }
 0x32f   :  { %598 = dma.hbm_to_vmem [thread:$0]  %s7658_s18, 2048, %s596_s24, [#allocation9 + $0x4] }
 0x330   :  { %s6816_s29 = scalar_lea.hbm %s7659_s19, 1024 }
 0x331   :  { %p6817_p4 = scmp.ne.s32.totalorder %s7659_s19, %s6816_s29  ;;  %p6820_p5 = scmp.lt.u32.totalorder %s6816_s29, %s7659_s19 }
 0x333   :  { %p6822_p6 = pnand %p6820_p5, %p6817_p4 }
 0x335   :  { %6825 = shalt.err (!%p6822_p6)  }
 0x336   :  { %s6826_s30 = scalar_lea.vmem %s608_s16, 1024  ;;  %p6831_p8 = scmp.lt.s32.totalorder %s608_s16, %s608_s16 }
 0x337   :  { %p6827_p7 = scmp.ne.s32.totalorder %s608_s16, %s6826_s30  ;;  %p6832_p9 = scmp.lt.s32.totalorder %s6826_s30, %s6826_s30 }
 0x339   :  { %p6833_p10 = por %p6832_p9, %p6831_p8 }
 0x33b   :  { %p6834_p11 = pnand %p6833_p10, %p6827_p7 }
 0x33d   :  { %6837 = shalt.err (!%p6834_p11)  }
 0x33e   :  { %610 = dma.hbm_to_vmem [thread:$0]  %s7659_s19, 1024, %s608_s16, [#allocation9 + $0x5] }
 0x33f   :  { %s6918_s15 = smov [#allocation8]   ;;  %s6838_s24 = scalar_lea.hbm %s7660_s20, 1024 }
 0x340   :  { %s619_s2 = sshll.u32 %s6918_s15, 4  ;;  %p6839_p12 = scmp.ne.s32.totalorder %s7660_s20, %s6838_s24  ;;  %s620_s2 = int_to_ptr.vmem [resolvable:$true] %s619_s2 }
 0x341   :  { %p6842_p13 = scmp.lt.u32.totalorder %s6838_s24, %s7660_s20 }
 0x343   :  { %p6844_p0 = pnand %p6842_p13, %p6839_p12 }
 0x345   :  { %6847 = shalt.err (!%p6844_p0)  }
 0x346   :  { %s6848_s17 = scalar_lea.vmem %s620_s2, 1024  ;;  %p6853_p2 = scmp.lt.s32.totalorder %s620_s2, %s620_s2 }
 0x347   :  { %p6849_p1 = scmp.ne.s32.totalorder %s620_s2, %s6848_s17  ;;  %p6854_p3 = scmp.lt.s32.totalorder %s6848_s17, %s6848_s17 }
 0x349   :  { %p6855_p4 = por %p6854_p3, %p6853_p2 }
 0x34b   :  { %p6856_p5 = pnand %p6855_p4, %p6849_p1 }
 0x34d   :  { %6859 = shalt.err (!%p6856_p5)  }
 0x34e   :  { %622 = dma.hbm_to_vmem [thread:$0]  %s7660_s20, 1024, %s620_s2, [#allocation9 + $0x6]  ;;  %v2917_v40 = vld [vmem:[#allocation18] ss:$8 sm:$0x7]  ;;  %v5770_v43 = vpop.f32.mrb[12].mxu0 }
 0x34f   :  { %v2930_v41 = vrot.slane %v2917_v40, %v7455_v45  ;;  %v5771_v46 = vpop.f32.mrb[13].mxu0  ;;  %v3970_v55 = vld [vmem:[#allocation18 + $0x1] ss:$8 sm:$0x7]  ;;  %v2922_v2 = vrot.slane %v2917_v40, %v7453_v44  ;;  %v2926_v3 = vrot.slane %v2917_v40, %v7457_v47 }
 0x350   :  { %v5772_v49 = vadd.f32 %v5771_v46, %v5770_v43  ;;  %v5773_v50 = vpop.f32.mrb[14].mxu0  ;;  %v3991_v58 = vld [vmem:[#allocation18 + $0x2] ss:$8 sm:$0x7]  ;;  %v3983_v61 = vrot.slane %v3970_v55, %v7455_v45  ;;  %v3975_v8 = vrot.slane %v3970_v55, %v7453_v44  ;;  %v3979_v4 = vrot.slane %v3970_v55, %v7457_v47 }
 0x351   :  { %v3881_v42 = vadd.f32 %v5750_v37, %v2930_v41  ;;  %v5774_v51 = vpop.f32.mrb[15].mxu0  ;;  %v4004_v63 = vrot.slane %v3991_v58, %v7455_v45  ;;  %v3996_v13 = vrot.slane %v3991_v58, %v7453_v44  ;;  %v4000_v16 = vrot.slane %v3991_v58, %v7457_v47 }
 0x353   :  { %v3921_v52 = vadd.f32 %v5772_v49, %v3881_v42 }
 0x362   :  { %v5792_v53 = vpop.f32.mrb[16].mxu0 }
 0x363   :  { %v5793_v54 = vpop.f32.mrb[17].mxu0 }
 0x364   :  { %v5794_v56 = vadd.f32 %v5793_v54, %v5792_v53  ;;  %v5795_v57 = vpop.f32.mrb[18].mxu0 }
 0x365   :  { %v5796_v59 = vpop.f32.mrb[19].mxu0 }
 0x366   :  { %v3961_v60 = vadd.f32 %v5794_v56, %v3921_v52 }
 0x368   :  { %v3968_v62 = vmax.f32 %v3961_v60, 0.0 }
 0x36a   :  { %v3989_v0 = vmul.f32 %v3983_v61, %v3968_v62 }
 0x36c   :  { %v7522_v1 = vadd.f32 %v4004_v63, %v3989_v0 }
 0x3a2   :  { %v3839_v5 = vpop.f32.mrb[4].mxu1 }
 0x3a3   :  { %v5902_v6 = vadd.f32 %v3839_v5, %v2922_v2  ;;  %v3841_v10 = vpop.f32.mrb[5].mxu1 }
 0x3a4   :  { %v5903_v12 = vadd.f32 %v3841_v10, %v2926_v3  ;;  %v3843_v9 = vpop.f32.mrb[6].mxu1 }
 0x3a5   :  { %v3966_v7 = vmax.f32 %v5902_v6, 0.0  ;;  %v3844_v14 = vpop.f32.mrb[7].mxu1 }
 0x3a6   :  { %v3967_v15 = vmax.f32 %v5903_v12, 0.0 }
 0x3a7   :  { %v3987_v17 = vmul.f32 %v3975_v8, %v3966_v7 }
 0x3a8   :  { %v3988_v18 = vmul.f32 %v3979_v4, %v3967_v15 }
 0x3a9   :  { %v7530_v19 = vadd.f32 %v3996_v13, %v3987_v17 }
 0x3aa   :  { %v7532_v24 = vadd.f32 %v4000_v16, %v3988_v18 }
 0x3ab   :  { %6872 = dma.done.wait [#allocation9], 16384 }
 0x3ac   :  { %6873 = vsyncadd [#allocation9], 4294950912 }
 0x3ad   :  { %6874 = dma.done.wait [#allocation9 + $0x1], 4096 }
 0x3ae   :  { %6875 = vsyncadd [#allocation9 + $0x1], 4294963200 }
 0x3af   :  { %6876 = dma.done.wait [#allocation9 + $0x2], 12288 }
 0x3b0   :  { %6877 = vsyncadd [#allocation9 + $0x2], 4294955008  ;;  %v6919_v25 = vmov 0   ;;  %v7537_v26 = vpack.c.bf16 %v7479_v23, %v7479_v23  ;;  %v4157_v27 = vld [vmem:[#allocation3 + $0x8] sm:$0xff]  ;;  %v4156_v28 = vld [vmem:[#allocation3] sm:$0xff]  ;;  %v7542_v59 = vpack.c.bf16 %v7481_v34, %v7481_v34 }
 0x3b1   :  { %4220 = vmatprep.mubr.bf16.mxu0 %v6919_v25  ;;  %v4161_v29 = vld [vmem:[#allocation3 + $0x28] sm:$0xff]  ;;  %4188 = vmatprep.subr.bf16.mxu0 %v4157_v27  ;;  %v4160_v30 = vld [vmem:[#allocation3 + $0x20] sm:$0xff]  ;;  %v4159_v58 = vld [vmem:[#allocation3 + $0x18] sm:$0xff] }
 0x3b2   :  { %4343 = vmatprep.mubr.bf16.mxu1 %v7537_v26  ;;  %4189 = vmatpush1.bf16.msra.mxu0 %v4156_v28  ;;  %v4165_v31 = vld [vmem:[#allocation3 + $0x48] sm:$0xff]  ;;  %v4164_v32 = vld [vmem:[#allocation3 + $0x40] sm:$0xff]  ;;  %v4158_v62 = vld [vmem:[#allocation3 + $0x10] sm:$0xff] }
 0x3b3   :  { %4190 = vmatprep.subr.bf16.mxu0 %v4161_v29  ;;  %v4169_v33 = vld [vmem:[#allocation3 + $0x68] sm:$0xff]  ;;  %v4168_v36 = vld [vmem:[#allocation3 + $0x60] sm:$0xff]  ;;  %v4163_v63 = vld [vmem:[#allocation3 + $0x38] sm:$0xff] }
 0x3b4   :  { %v4092_v35 = vld [vmem:[#allocation2 + $0x208] sm:$0xff]  ;;  %v4091_v23 = vld [vmem:[#allocation2 + $0x200] sm:$0xff]  ;;  %v4162_v3 = vld [vmem:[#allocation3 + $0x30] sm:$0xff] }
 0x3b5   :  { %4311 = vmatprep.subr.bf16.mxu1 %v4092_v35  ;;  %v4173_v37 = vld [vmem:[#allocation3 + $0x88] sm:$0xff]  ;;  %v4095_v39 = vld [vmem:[#allocation2 + $0x220] sm:$0xff]  ;;  %v4167_v34 = vld [vmem:[#allocation3 + $0x58] sm:$0xff] }
 0x3b6   :  { %4191 = vmatpush1.bf16.msra.mxu0 %v4160_v30  ;;  %4312 = vmatpush1.bf16.msra.mxu1 %v4091_v23  ;;  %v4096_v38 = vld [vmem:[#allocation2 + $0x228] sm:$0xff]  ;;  %v4172_v41 = vld [vmem:[#allocation3 + $0x80] sm:$0xff]  ;;  %v4166_v8 = vld [vmem:[#allocation3 + $0x50] sm:$0xff] }
 0x3b7   :  { %4192 = vmatprep.subr.bf16.mxu0 %v4165_v31  ;;  %4313 = vmatprep.subr.bf16.mxu1 %v4096_v38  ;;  %v4100_v40 = vld [vmem:[#allocation2 + $0x248] sm:$0xff]  ;;  %v4099_v43 = vld [vmem:[#allocation2 + $0x240] sm:$0xff]  ;;  %v4171_v10 = vld [vmem:[#allocation3 + $0x78] sm:$0xff] }
 0x3b8   :  { %v4177_v42 = vld [vmem:[#allocation3 + $0xa8] sm:$0xff]  ;;  %v4176_v49 = vld [vmem:[#allocation3 + $0xa0] sm:$0xff]  ;;  %v4170_v9 = vld [vmem:[#allocation3 + $0x70] sm:$0xff] }
 0x3b9   :  { %v4104_v46 = vld [vmem:[#allocation2 + $0x268] sm:$0xff]  ;;  %v4103_v51 = vld [vmem:[#allocation2 + $0x260] sm:$0xff]  ;;  %v4175_v7 = vld [vmem:[#allocation3 + $0x98] sm:$0xff] }
 0x3ba   :  { %4193 = vmatpush1.bf16.msra.mxu0 %v4164_v32  ;;  %4314 = vmatpush1.bf16.msra.mxu1 %v4095_v39  ;;  %v4181_v50 = vld [vmem:[#allocation3 + $0xc8] sm:$0xff]  ;;  %v4180_v53 = vld [vmem:[#allocation3 + $0xc0] sm:$0xff]  ;;  %v4174_v15 = vld [vmem:[#allocation3 + $0x90] sm:$0xff]  ;;  %v7548_v39 = vpack.c.bf16 %v7477_v22, %v7477_v22 }
 0x3bb   :  { %4194 = vmatprep.subr.bf16.mxu0 %v4169_v33  ;;  %4315 = vmatprep.subr.bf16.mxu1 %v4100_v40  ;;  %v4108_v52 = vld [vmem:[#allocation2 + $0x288] sm:$0xff]  ;;  %v4107_v55 = vld [vmem:[#allocation2 + $0x280] sm:$0xff]  ;;  %v4179_v16 = vld [vmem:[#allocation3 + $0xb8] sm:$0xff] }
 0x3bc   :  { %v4185_v54 = vld [vmem:[#allocation3 + $0xe8] sm:$0xff]  ;;  %v4184_v57 = vld [vmem:[#allocation3 + $0xe0] sm:$0xff]  ;;  %v4178_v27 = vld [vmem:[#allocation3 + $0xb0] sm:$0xff] }
 0x3bd   :  { %v4112_v56 = vld [vmem:[#allocation2 + $0x2a8] sm:$0xff]  ;;  %v4111_v60 = vld [vmem:[#allocation2 + $0x2a0] sm:$0xff]  ;;  %v4183_v28 = vld [vmem:[#allocation3 + $0xd8] sm:$0xff] }
 0x3be   :  { %4195 = vmatpush1.bf16.msra.mxu0 %v4168_v36  ;;  %4316 = vmatpush1.bf16.msra.mxu1 %v4099_v43  ;;  %v4116_v61 = vld [vmem:[#allocation2 + $0x2c8] sm:$0xff]  ;;  %v4115_v0 = vld [vmem:[#allocation2 + $0x2c0] sm:$0xff]  ;;  %v4182_v31 = vld [vmem:[#allocation3 + $0xd0] sm:$0xff] }
 0x3bf   :  { %4196 = vmatprep.subr.bf16.mxu0 %v4173_v37  ;;  %4317 = vmatprep.subr.bf16.mxu1 %v4104_v46  ;;  %v4120_v2 = vld [vmem:[#allocation2 + $0x2e8] sm:$0xff]  ;;  %v4119_v5 = vld [vmem:[#allocation2 + $0x2e0] sm:$0xff]  ;;  %v4187_v32 = vld [vmem:[#allocation3 + $0xf8] sm:$0xff] }
 0x3c0   :  { %v4124_v6 = vld [vmem:[#allocation2 + $0x308] sm:$0xff]  ;;  %v4123_v12 = vld [vmem:[#allocation2 + $0x300] sm:$0xff]  ;;  %v4186_v36 = vld [vmem:[#allocation3 + $0xf0] sm:$0xff] }
 0x3c1   :  { %v4128_v4 = vld [vmem:[#allocation2 + $0x328] sm:$0xff]  ;;  %v4127_v13 = vld [vmem:[#allocation2 + $0x320] sm:$0xff]  ;;  %v4094_v22 = vld [vmem:[#allocation2 + $0x218] sm:$0xff] }
 0x3c2   :  { %4197 = vmatpush1.bf16.msra.mxu0 %v4172_v41  ;;  %4318 = vmatpush1.bf16.msra.mxu1 %v4103_v51  ;;  %v4132_v14 = vld [vmem:[#allocation2 + $0x348] sm:$0xff]  ;;  %v4131_v17 = vld [vmem:[#allocation2 + $0x340] sm:$0xff] }
 0x3c3   :  { %4198 = vmatprep.subr.bf16.mxu0 %v4177_v42  ;;  %4319 = vmatprep.subr.bf16.mxu1 %v4108_v52  ;;  %v4136_v18 = vld [vmem:[#allocation2 + $0x368] sm:$0xff]  ;;  %v4135_v29 = vld [vmem:[#allocation2 + $0x360] sm:$0xff]  ;;  %v7554_v52 = vpack.c.bf16 %v7475_v21, %v7475_v21 }
 0x3c4   :  { %v4140_v30 = vld [vmem:[#allocation2 + $0x388] sm:$0xff]  ;;  %v4139_v33 = vld [vmem:[#allocation2 + $0x380] sm:$0xff] }
 0x3c5   :  { %v4144_v35 = vld [vmem:[#allocation2 + $0x3a8] sm:$0xff]  ;;  %v4143_v37 = vld [vmem:[#allocation2 + $0x3a0] sm:$0xff] }
 0x3c6   :  { %4199 = vmatpush1.bf16.msra.mxu0 %v4176_v49  ;;  %4320 = vmatpush1.bf16.msra.mxu1 %v4107_v55  ;;  %v4028_v23 = vld [vmem:[#allocation2 + $0x8] sm:$0xff]  ;;  %v4027_v40 = vld [vmem:[#allocation2] sm:$0xff]  ;;  %v4098_v55 = vld [vmem:[#allocation2 + $0x238] sm:$0xff] }
 0x3c7   :  { %4200 = vmatprep.subr.bf16.mxu0 %v4181_v50  ;;  %4321 = vmatprep.subr.bf16.mxu1 %v4112_v56  ;;  %v4148_v38 = vld [vmem:[#allocation2 + $0x3c8] sm:$0xff]  ;;  %v4147_v42 = vld [vmem:[#allocation2 + $0x3c0] sm:$0xff] }
 0x3c8   :  { %v4032_v41 = vld [vmem:[#allocation2 + $0x28] sm:$0xff]  ;;  %v4031_v46 = vld [vmem:[#allocation2 + $0x20] sm:$0xff] }
 0x3c9   :  { %v4152_v43 = vld [vmem:[#allocation2 + $0x3e8] sm:$0xff]  ;;  %v4151_v50 = vld [vmem:[#allocation2 + $0x3e0] sm:$0xff] }
 0x3ca   :  { %4201 = vmatpush1.bf16.msra.mxu0 %v4180_v53  ;;  %4322 = vmatpush1.bf16.msra.mxu1 %v4111_v60  ;;  %v4036_v49 = vld [vmem:[#allocation2 + $0x48] sm:$0xff]  ;;  %v4035_v51 = vld [vmem:[#allocation2 + $0x40] sm:$0xff] }
 0x3cb   :  { %4202 = vmatprep.subr.bf16.mxu0 %v4185_v54  ;;  %4323 = vmatprep.subr.bf16.mxu1 %v4116_v61  ;;  %v4040_v53 = vld [vmem:[#allocation2 + $0x68] sm:$0xff]  ;;  %v4093_v54 = vld [vmem:[#allocation2 + $0x210] sm:$0xff]  ;;  %v4039_v56 = vld [vmem:[#allocation2 + $0x60] sm:$0xff] }
 0x3cc   :  { %v4043_v21 = vld [vmem:[#allocation2 + $0x80] sm:$0xff]  ;;  %v4048_v60 = vld [vmem:[#allocation2 + $0xa8] sm:$0xff]  ;;  %v4101_v61 = vld [vmem:[#allocation2 + $0x250] sm:$0xff] }
 0x3ce   :  { %4203 = vmatpush1.bf16.msra.mxu0 %v4184_v57  ;;  %4324 = vmatpush1.bf16.msra.mxu1 %v4115_v0  ;;  %v4044_v57 = vld [vmem:[#allocation2 + $0x88] sm:$0xff] }
 0x3cf   :  { %4229 = vmatprep.subr.bf16.mxu0 %v4159_v58  ;;  %4325 = vmatprep.subr.bf16.mxu1 %v4120_v2  ;;  %v4097_v58 = vld [vmem:[#allocation2 + $0x230] sm:$0xff]  ;;  %v4052_v0 = vld [vmem:[#allocation2 + $0xc8] sm:$0xff] }
 0x3d0   :  { %v4105_v2 = vld [vmem:[#allocation2 + $0x270] sm:$0xff] }
 0x3d1   :  { %4221 = vmatmul.mubr.bf16.vlgmr.msra.gmra.mrb[20].mxu0 %v7542_v59 }
 0x3d2   :  { %4230 = vmatpush1.bf16.msra.mxu0 %v4158_v62  ;;  %4261 = vmatprep.mubr.bf16.mxu0 %v6919_v25  ;;  %v4106_v62 = vld [vmem:[#allocation2 + $0x278] sm:$0xff] }
 0x3d3   :  { %4231 = vmatprep.subr.bf16.mxu0 %v4163_v63  ;;  %4326 = vmatpush1.bf16.msra.mxu1 %v4119_v5  ;;  %v4047_v63 = vld [vmem:[#allocation2 + $0xa0] sm:$0xff]  ;;  %v4109_v5 = vld [vmem:[#allocation2 + $0x290] sm:$0xff] }
 0x3d4   :  { %4327 = vmatprep.subr.bf16.mxu1 %v4124_v6  ;;  %v4114_v6 = vld [vmem:[#allocation2 + $0x2b8] sm:$0xff] }
 0x3d6   :  { %4232 = vmatpush1.bf16.msra.mxu0 %v4162_v3  ;;  %v4051_v3 = vld [vmem:[#allocation2 + $0xc0] sm:$0xff] }
 0x3d7   :  { %4233 = vmatprep.subr.bf16.mxu0 %v4167_v34  ;;  %4328 = vmatpush1.bf16.msra.mxu1 %v4123_v12  ;;  %v4056_v34 = vld [vmem:[#allocation2 + $0xe8] sm:$0xff]  ;;  %v4113_v12 = vld [vmem:[#allocation2 + $0x2b0] sm:$0xff] }
 0x3d8   :  { %4329 = vmatprep.subr.bf16.mxu1 %v4128_v4  ;;  %v4118_v4 = vld [vmem:[#allocation2 + $0x2d8] sm:$0xff] }
 0x3da   :  { %4234 = vmatpush1.bf16.msra.mxu0 %v4166_v8  ;;  %v4055_v8 = vld [vmem:[#allocation2 + $0xe0] sm:$0xff] }
 0x3db   :  { %4235 = vmatprep.subr.bf16.mxu0 %v4171_v10  ;;  %4330 = vmatpush1.bf16.msra.mxu1 %v4127_v13  ;;  %v4060_v10 = vld [vmem:[#allocation2 + $0x108] sm:$0xff]  ;;  %v4117_v13 = vld [vmem:[#allocation2 + $0x2d0] sm:$0xff] }
 0x3dc   :  { %4331 = vmatprep.subr.bf16.mxu1 %v4132_v14  ;;  %v4122_v14 = vld [vmem:[#allocation2 + $0x2f8] sm:$0xff] }
 0x3de   :  { %4236 = vmatpush1.bf16.msra.mxu0 %v4170_v9  ;;  %v4059_v9 = vld [vmem:[#allocation2 + $0x100] sm:$0xff] }
 0x3df   :  { %4237 = vmatprep.subr.bf16.mxu0 %v4175_v7  ;;  %4332 = vmatpush1.bf16.msra.mxu1 %v4131_v17  ;;  %v4064_v7 = vld [vmem:[#allocation2 + $0x128] sm:$0xff]  ;;  %v4121_v17 = vld [vmem:[#allocation2 + $0x2f0] sm:$0xff] }
 0x3e0   :  { %4333 = vmatprep.subr.bf16.mxu1 %v4136_v18  ;;  %v4126_v18 = vld [vmem:[#allocation2 + $0x318] sm:$0xff] }
 0x3e2   :  { %4238 = vmatpush1.bf16.msra.mxu0 %v4174_v15  ;;  %v4063_v15 = vld [vmem:[#allocation2 + $0x120] sm:$0xff] }
 0x3e3   :  { %4239 = vmatprep.subr.bf16.mxu0 %v4179_v16  ;;  %4334 = vmatpush1.bf16.msra.mxu1 %v4135_v29  ;;  %v4068_v16 = vld [vmem:[#allocation2 + $0x148] sm:$0xff]  ;;  %v4125_v29 = vld [vmem:[#allocation2 + $0x310] sm:$0xff] }
 0x3e4   :  { %4335 = vmatprep.subr.bf16.mxu1 %v4140_v30  ;;  %v4130_v30 = vld [vmem:[#allocation2 + $0x338] sm:$0xff] }
 0x3e6   :  { %4240 = vmatpush1.bf16.msra.mxu0 %v4178_v27  ;;  %v4067_v27 = vld [vmem:[#allocation2 + $0x140] sm:$0xff] }
 0x3e7   :  { %4241 = vmatprep.subr.bf16.mxu0 %v4183_v28  ;;  %4336 = vmatpush1.bf16.msra.mxu1 %v4139_v33  ;;  %v4072_v28 = vld [vmem:[#allocation2 + $0x168] sm:$0xff]  ;;  %v4129_v33 = vld [vmem:[#allocation2 + $0x330] sm:$0xff] }
 0x3e8   :  { %4337 = vmatprep.subr.bf16.mxu1 %v4144_v35  ;;  %v4134_v35 = vld [vmem:[#allocation2 + $0x358] sm:$0xff] }
 0x3ea   :  { %4242 = vmatpush1.bf16.msra.mxu0 %v4182_v31  ;;  %v4071_v31 = vld [vmem:[#allocation2 + $0x160] sm:$0xff] }
 0x3eb   :  { %4243 = vmatprep.subr.bf16.mxu0 %v4187_v32  ;;  %4338 = vmatpush1.bf16.msra.mxu1 %v4143_v37  ;;  %v4076_v32 = vld [vmem:[#allocation2 + $0x188] sm:$0xff]  ;;  %v4133_v37 = vld [vmem:[#allocation2 + $0x350] sm:$0xff] }
 0x3ec   :  { %4339 = vmatprep.subr.bf16.mxu1 %v4148_v38  ;;  %v4138_v38 = vld [vmem:[#allocation2 + $0x378] sm:$0xff] }
 0x3ee   :  { %4244 = vmatpush1.bf16.msra.mxu0 %v4186_v36  ;;  %v4075_v36 = vld [vmem:[#allocation2 + $0x180] sm:$0xff] }
 0x3ef   :  { %4270 = vmatprep.subr.bf16.mxu0 %v4028_v23  ;;  %4340 = vmatpush1.bf16.msra.mxu1 %v4147_v42  ;;  %v4080_v23 = vld [vmem:[#allocation2 + $0x1a8] sm:$0xff]  ;;  %v4137_v42 = vld [vmem:[#allocation2 + $0x370] sm:$0xff] }
 0x3f0   :  { %4341 = vmatprep.subr.bf16.mxu1 %v4152_v43  ;;  %v4142_v43 = vld [vmem:[#allocation2 + $0x398] sm:$0xff] }
 0x3f1   :  { %4262 = vmatmul.mubr.bf16.vlgmr.msra.gmra.mrb[24].mxu0 %v7542_v59  ;;  %v4102_v59 = vld [vmem:[#allocation2 + $0x258] sm:$0xff] }
 0x3f2   :  { %4271 = vmatpush1.bf16.msra.mxu0 %v4027_v40  ;;  %4302 = vmatprep.mubr.bf16.mxu0 %v7548_v39  ;;  %v4079_v40 = vld [vmem:[#allocation2 + $0x1a0] sm:$0xff] }
 0x3f3   :  { %4272 = vmatprep.subr.bf16.mxu0 %v4032_v41  ;;  %4342 = vmatpush1.bf16.msra.mxu1 %v4151_v50  ;;  %v4084_v41 = vld [vmem:[#allocation2 + $0x1c8] sm:$0xff]  ;;  %v4141_v50 = vld [vmem:[#allocation2 + $0x390] sm:$0xff] }
 0x3f4   :  { %4393 = vmatprep.subr.bf16.mxu1 %v4094_v22  ;;  %v4146_v22 = vld [vmem:[#allocation2 + $0x3b8] sm:$0xff] }
 0x3f6   :  { %4273 = vmatpush1.bf16.msra.mxu0 %v4031_v46  ;;  %4344 = vmatmul.mubr.bf16.vlgmr.msra.gmra.mrb[8].mxu1 %v7554_v52  ;;  %v4083_v46 = vld [vmem:[#allocation2 + $0x1c0] sm:$0xff] }
 0x3f7   :  { %4274 = vmatprep.subr.bf16.mxu0 %v4036_v49  ;;  %4394 = vmatpush1.bf16.msra.mxu1 %v4093_v54  ;;  %v4088_v49 = vld [vmem:[#allocation2 + $0x1e8] sm:$0xff]  ;;  %v7560_v54 = vpack.c.bf16 %v7473_v20, %v7473_v20  ;;  %v4038_v20 = vld [vmem:[#allocation2 + $0x58] sm:$0xff] }
 0x3f8   :  { %4425 = vmatprep.mubr.bf16.mxu1 %v7537_v26  ;;  %4395 = vmatprep.subr.bf16.mxu1 %v4098_v55  ;;  %v4110_v26 = vld [vmem:[#allocation2 + $0x298] sm:$0xff]  ;;  %v4145_v55 = vld [vmem:[#allocation2 + $0x3b0] sm:$0xff] }
 0x3fa   :  { %4275 = vmatpush1.bf16.msra.mxu0 %v4035_v51  ;;  %v4087_v51 = vld [vmem:[#allocation2 + $0x1e0] sm:$0xff] }
 0x3fb   :  { %4276 = vmatprep.subr.bf16.mxu0 %v4040_v53  ;;  %4396 = vmatpush1.bf16.msra.mxu1 %v4097_v58  ;;  %v4030_v53 = vld [vmem:[#allocation2 + $0x18] sm:$0xff] }
 0x3fc   :  { %4397 = vmatprep.subr.bf16.mxu1 %v4102_v59  ;;  %v4034_v58 = vld [vmem:[#allocation2 + $0x38] sm:$0xff]  ;;  %v4149_v59 = vld [vmem:[#allocation2 + $0x3d0] sm:$0xff] }
 0x3fe   :  { %4277 = vmatpush1.bf16.msra.mxu0 %v4039_v56  ;;  %v4150_v56 = vld [vmem:[#allocation2 + $0x3d8] sm:$0xff] }
 0x3ff   :  { %4278 = vmatprep.subr.bf16.mxu0 %v4044_v57  ;;  %4398 = vmatpush1.bf16.msra.mxu1 %v4101_v61  ;;  %v4029_v57 = vld [vmem:[#allocation2 + $0x10] sm:$0xff] }
 0x400   :  { %4399 = vmatprep.subr.bf16.mxu1 %v4106_v62  ;;  %v4153_v61 = vld [vmem:[#allocation2 + $0x3f0] sm:$0xff]  ;;  %v4502_v62 = vld [vmem:[#allocation4 + $0x208] sm:$0xff] }
 0x402   :  { %4279 = vmatpush1.bf16.msra.mxu0 %v4043_v21  ;;  %v4154_v21 = vld [vmem:[#allocation2 + $0x3f8] sm:$0xff] }
 0x403   :  { %4280 = vmatprep.subr.bf16.mxu0 %v4048_v60  ;;  %4400 = vmatpush1.bf16.msra.mxu1 %v4105_v2  ;;  %v4033_v60 = vld [vmem:[#allocation2 + $0x30] sm:$0xff]  ;;  %v4501_v2 = vld [vmem:[#allocation4 + $0x200] sm:$0xff] }
 0x404   :  { %4401 = vmatprep.subr.bf16.mxu1 %v4110_v26  ;;  %v4506_v26 = vld [vmem:[#allocation4 + $0x228] sm:$0xff] }
 0x406   :  { %4281 = vmatpush1.bf16.msra.mxu0 %v4047_v63  ;;  %v4037_v63 = vld [vmem:[#allocation2 + $0x50] sm:$0xff] }
 0x407   :  { %4282 = vmatprep.subr.bf16.mxu0 %v4052_v0  ;;  %4402 = vmatpush1.bf16.msra.mxu1 %v4109_v5  ;;  %v4042_v0 = vld [vmem:[#allocation2 + $0x78] sm:$0xff]  ;;  %v4510_v5 = vld [vmem:[#allocation4 + $0x248] sm:$0xff] }
 0x408   :  { %4403 = vmatprep.subr.bf16.mxu1 %v4114_v6  ;;  %v4045_v6 = vld [vmem:[#allocation2 + $0x90] sm:$0xff] }
 0x40a   :  { %4283 = vmatpush1.bf16.msra.mxu0 %v4051_v3  ;;  %v4041_v3 = vld [vmem:[#allocation2 + $0x70] sm:$0xff] }
 0x40b   :  { %4284 = vmatprep.subr.bf16.mxu0 %v4056_v34  ;;  %4404 = vmatpush1.bf16.msra.mxu1 %v4113_v12  ;;  %v4505_v34 = vld [vmem:[#allocation4 + $0x220] sm:$0xff]  ;;  %v4514_v12 = vld [vmem:[#allocation4 + $0x268] sm:$0xff] }
 0x40c   :  { %4405 = vmatprep.subr.bf16.mxu1 %v4118_v4  ;;  %v4049_v4 = vld [vmem:[#allocation2 + $0xb0] sm:$0xff] }
 0x40e   :  { %4285 = vmatpush1.bf16.msra.mxu0 %v4055_v8  ;;  %v4050_v8 = vld [vmem:[#allocation2 + $0xb8] sm:$0xff] }
 0x40f   :  { %4286 = vmatprep.subr.bf16.mxu0 %v4060_v10  ;;  %4406 = vmatpush1.bf16.msra.mxu1 %v4117_v13  ;;  %v4509_v10 = vld [vmem:[#allocation4 + $0x240] sm:$0xff]  ;;  %v4053_v13 = vld [vmem:[#allocation2 + $0xd0] sm:$0xff] }
 0x410   :  { %4407 = vmatprep.subr.bf16.mxu1 %v4122_v14  ;;  %v4058_v14 = vld [vmem:[#allocation2 + $0xf8] sm:$0xff] }
 0x412   :  { %4287 = vmatpush1.bf16.msra.mxu0 %v4059_v9  ;;  %v4054_v9 = vld [vmem:[#allocation2 + $0xd8] sm:$0xff] }
 0x413   :  { %4288 = vmatprep.subr.bf16.mxu0 %v4064_v7  ;;  %4408 = vmatpush1.bf16.msra.mxu1 %v4121_v17  ;;  %v4518_v7 = vld [vmem:[#allocation4 + $0x288] sm:$0xff]  ;;  %v4057_v17 = vld [vmem:[#allocation2 + $0xf0] sm:$0xff] }
 0x414   :  { %4409 = vmatprep.subr.bf16.mxu1 %v4126_v18  ;;  %v4062_v18 = vld [vmem:[#allocation2 + $0x118] sm:$0xff] }
 0x416   :  { %4289 = vmatpush1.bf16.msra.mxu0 %v4063_v15  ;;  %v4517_v15 = vld [vmem:[#allocation4 + $0x280] sm:$0xff] }
 0x417   :  { %4290 = vmatprep.subr.bf16.mxu0 %v4068_v16  ;;  %4410 = vmatpush1.bf16.msra.mxu1 %v4125_v29  ;;  %v4522_v16 = vld [vmem:[#allocation4 + $0x2a8] sm:$0xff]  ;;  %v4061_v29 = vld [vmem:[#allocation2 + $0x110] sm:$0xff] }
 0x418   :  { %4411 = vmatprep.subr.bf16.mxu1 %v4130_v30  ;;  %v4066_v30 = vld [vmem:[#allocation2 + $0x138] sm:$0xff] }
 0x41a   :  { %4291 = vmatpush1.bf16.msra.mxu0 %v4067_v27  ;;  %v4521_v27 = vld [vmem:[#allocation4 + $0x2a0] sm:$0xff] }
 0x41b   :  { %4292 = vmatprep.subr.bf16.mxu0 %v4072_v28  ;;  %4412 = vmatpush1.bf16.msra.mxu1 %v4129_v33  ;;  %v4526_v28 = vld [vmem:[#allocation4 + $0x2c8] sm:$0xff]  ;;  %v4065_v33 = vld [vmem:[#allocation2 + $0x130] sm:$0xff] }
 0x41c   :  { %4413 = vmatprep.subr.bf16.mxu1 %v4134_v35  ;;  %v4070_v35 = vld [vmem:[#allocation2 + $0x158] sm:$0xff] }
 0x41e   :  { %4293 = vmatpush1.bf16.msra.mxu0 %v4071_v31  ;;  %v4525_v31 = vld [vmem:[#allocation4 + $0x2c0] sm:$0xff] }
 0x41f   :  { %4294 = vmatprep.subr.bf16.mxu0 %v4076_v32  ;;  %4414 = vmatpush1.bf16.msra.mxu1 %v4133_v37  ;;  %v4530_v32 = vld [vmem:[#allocation4 + $0x2e8] sm:$0xff]  ;;  %v4069_v37 = vld [vmem:[#allocation2 + $0x150] sm:$0xff] }
 0x420   :  { %4415 = vmatprep.subr.bf16.mxu1 %v4138_v38  ;;  %v7568_v38 = vpack.c.bf16 %v7522_v1, %v7522_v1  ;;  %v4448_v1 = vld [vmem:[#allocation4 + $0x58] sm:$0xff] }
 0x422   :  { %4295 = vmatpush1.bf16.msra.mxu0 %v4075_v36  ;;  %v4529_v36 = vld [vmem:[#allocation4 + $0x2e0] sm:$0xff] }
 0x423   :  { %4296 = vmatprep.subr.bf16.mxu0 %v4080_v23  ;;  %4416 = vmatpush1.bf16.msra.mxu1 %v4137_v42  ;;  %v4440_v23 = vld [vmem:[#allocation4 + $0x18] sm:$0xff] }
 0x424   :  { %4417 = vmatprep.subr.bf16.mxu1 %v4142_v43  ;;  %v4444_v42 = vld [vmem:[#allocation4 + $0x38] sm:$0xff]  ;;  %v4435_v43 = vpack.c.bf16 %v7532_v24, %v7532_v24  ;;  %v4081_v24 = vld [vmem:[#allocation2 + $0x1b0] sm:$0xff] }
 0x426   :  { %4297 = vmatpush1.bf16.msra.mxu0 %v4079_v40  ;;  %v4074_v40 = vld [vmem:[#allocation2 + $0x178] sm:$0xff] }
 0x427   :  { %4298 = vmatprep.subr.bf16.mxu0 %v4084_v41  ;;  %4418 = vmatpush1.bf16.msra.mxu1 %v4141_v50  ;;  %v4439_v41 = vld [vmem:[#allocation4 + $0x10] sm:$0xff] }
 0x428   :  { %4419 = vmatprep.subr.bf16.mxu1 %v4146_v22  ;;  %v4443_v50 = vld [vmem:[#allocation4 + $0x30] sm:$0xff] }
 0x429   :  { %v4077_v22 = vld [vmem:[#allocation2 + $0x190] sm:$0xff] }
 0x42a   :  { %4299 = vmatpush1.bf16.msra.mxu0 %v4083_v46  ;;  %v4073_v46 = vld [vmem:[#allocation2 + $0x170] sm:$0xff] }
 0x42b   :  { %4300 = vmatprep.subr.bf16.mxu0 %v4088_v49  ;;  %4420 = vmatpush1.bf16.msra.mxu1 %v4145_v55  ;;  %v4078_v49 = vld [vmem:[#allocation2 + $0x198] sm:$0xff] }
 0x42c   :  { %4421 = vmatprep.subr.bf16.mxu1 %v4150_v56  ;;  %v4452_v55 = vld [vmem:[#allocation4 + $0x78] sm:$0xff] }
 0x42d   :  { %v4086_v56 = vld [vmem:[#allocation2 + $0x1d8] sm:$0xff] }
 0x42e   :  { %4301 = vmatpush1.bf16.msra.mxu0 %v4087_v51  ;;  %v4082_v51 = vld [vmem:[#allocation2 + $0x1b8] sm:$0xff] }
 0x42f   :  { %4352 = vmatprep.subr.bf16.mxu0 %v4030_v53  ;;  %4422 = vmatpush1.bf16.msra.mxu1 %v4149_v59  ;;  %v4447_v53 = vld [vmem:[#allocation4 + $0x50] sm:$0xff] }
 0x430   :  { %4423 = vmatprep.subr.bf16.mxu1 %v4154_v21  ;;  %v4085_v59 = vld [vmem:[#allocation2 + $0x1d0] sm:$0xff]  ;;  %v4090_v21 = vld [vmem:[#allocation2 + $0x1f8] sm:$0xff] }
 0x431   :  { %4303 = vmatmul.mubr.bf16.vlgmr.msra.gmra.mrb[28].mxu0 %v7560_v54 }
 0x432   :  { %4353 = vmatpush1.bf16.msra.mxu0 %v4029_v57  ;;  %4384 = vmatprep.mubr.bf16.mxu0 %v7548_v39  ;;  %v4046_v39 = vld [vmem:[#allocation2 + $0x98] sm:$0xff]  ;;  %v4451_v57 = vld [vmem:[#allocation4 + $0x70] sm:$0xff] }
 0x433   :  { %4354 = vmatprep.subr.bf16.mxu0 %v4034_v58  ;;  %4424 = vmatpush1.bf16.msra.mxu1 %v4153_v61  ;;  %v4456_v58 = vld [vmem:[#allocation4 + $0x98] sm:$0xff]  ;;  %v4089_v61 = vld [vmem:[#allocation2 + $0x1f0] sm:$0xff] }
 0x434   :  { %4574 = vmatprep.subr.bf16.mxu1 %v4502_v62  ;;  %v4438_v62 = vld [vmem:[#allocation4 + $0x8] sm:$0xff] }
 0x436   :  { %4355 = vmatpush1.bf16.msra.mxu0 %v4033_v60  ;;  %4426 = vmatmul.mubr.bf16.vlgmr.msra.gmra.mrb[12].mxu1 %v7554_v52  ;;  %v4513_v52 = vld [vmem:[#allocation4 + $0x260] sm:$0xff]  ;;  %v4455_v60 = vld [vmem:[#allocation4 + $0x90] sm:$0xff] }
 0x437   :  { %4356 = vmatprep.subr.bf16.mxu0 %v4038_v20  ;;  %4575 = vmatpush1.bf16.msra.mxu1 %v4501_v2  ;;  %v4460_v20 = vld [vmem:[#allocation4 + $0xb8] sm:$0xff]  ;;  %v4437_v2 = vld [vmem:[#allocation4] sm:$0xff] }
 0x438   :  { %4606 = vmatprep.mubr.bf16.mxu1 %v6919_v25  ;;  %4576 = vmatprep.subr.bf16.mxu1 %v4506_v26  ;;  %v4442_v26 = vld [vmem:[#allocation4 + $0x28] sm:$0xff] }
 0x43a   :  { %4357 = vmatpush1.bf16.msra.mxu0 %v4037_v63  ;;  %v4459_v63 = vld [vmem:[#allocation4 + $0xb0] sm:$0xff] }
 0x43b   :  { %4358 = vmatprep.subr.bf16.mxu0 %v4042_v0  ;;  %4577 = vmatpush1.bf16.msra.mxu1 %v4505_v34  ;;  %v4464_v0 = vld [vmem:[#allocation4 + $0xd8] sm:$0xff]  ;;  %v4441_v34 = vld [vmem:[#allocation4 + $0x20] sm:$0xff] }
 0x43c   :  { %4578 = vmatprep.subr.bf16.mxu1 %v4510_v5  ;;  %v4446_v5 = vld [vmem:[#allocation4 + $0x48] sm:$0xff] }
 0x43e   :  { %4359 = vmatpush1.bf16.msra.mxu0 %v4041_v3  ;;  %v4463_v3 = vld [vmem:[#allocation4 + $0xd0] sm:$0xff] }
 0x43f   :  { %4360 = vmatprep.subr.bf16.mxu0 %v4046_v39  ;;  %4579 = vmatpush1.bf16.msra.mxu1 %v4509_v10  ;;  %v4468_v39 = vld [vmem:[#allocation4 + $0xf8] sm:$0xff]  ;;  %v4445_v10 = vld [vmem:[#allocation4 + $0x40] sm:$0xff] }
 0x440   :  { %4580 = vmatprep.subr.bf16.mxu1 %v4514_v12  ;;  %v4450_v12 = vld [vmem:[#allocation4 + $0x68] sm:$0xff] }
 0x442   :  { %4361 = vmatpush1.bf16.msra.mxu0 %v4045_v6  ;;  %v4467_v6 = vld [vmem:[#allocation4 + $0xf0] sm:$0xff] }
 0x443   :  { %4362 = vmatprep.subr.bf16.mxu0 %v4050_v8  ;;  %4581 = vmatpush1.bf16.msra.mxu1 %v4513_v52  ;;  %v4472_v8 = vld [vmem:[#allocation4 + $0x118] sm:$0xff]  ;;  %v4454_v52 = vld [vmem:[#allocation4 + $0x88] sm:$0xff] }
 0x444   :  { %4582 = vmatprep.subr.bf16.mxu1 %v4518_v7  ;;  %v4475_v7 = vld [vmem:[#allocation4 + $0x130] sm:$0xff] }
 0x446   :  { %4363 = vmatpush1.bf16.msra.mxu0 %v4049_v4  ;;  %v4471_v4 = vld [vmem:[#allocation4 + $0x110] sm:$0xff] }
 0x447   :  { %4364 = vmatprep.subr.bf16.mxu0 %v4054_v9  ;;  %4583 = vmatpush1.bf16.msra.mxu1 %v4517_v15  ;;  %v4449_v9 = vld [vmem:[#allocation4 + $0x60] sm:$0xff]  ;;  %v4458_v15 = vld [vmem:[#allocation4 + $0xa8] sm:$0xff] }
 0x448   :  { %4584 = vmatprep.subr.bf16.mxu1 %v4522_v16  ;;  %v4479_v16 = vld [vmem:[#allocation4 + $0x150] sm:$0xff] }
 0x44a   :  { %4365 = vmatpush1.bf16.msra.mxu0 %v4053_v13  ;;  %v4480_v13 = vld [vmem:[#allocation4 + $0x158] sm:$0xff] }
 0x44b   :  { %4366 = vmatprep.subr.bf16.mxu0 %v4058_v14  ;;  %4585 = vmatpush1.bf16.msra.mxu1 %v4521_v27  ;;  %v4453_v14 = vld [vmem:[#allocation4 + $0x80] sm:$0xff]  ;;  %v4462_v27 = vld [vmem:[#allocation4 + $0xc8] sm:$0xff] }
 0x44c   :  { %4586 = vmatprep.subr.bf16.mxu1 %v4526_v28  ;;  %v4483_v28 = vld [vmem:[#allocation4 + $0x170] sm:$0xff] }
 0x44e   :  { %4367 = vmatpush1.bf16.msra.mxu0 %v4057_v17  ;;  %v4484_v17 = vld [vmem:[#allocation4 + $0x178] sm:$0xff] }
 0x44f   :  { %4368 = vmatprep.subr.bf16.mxu0 %v4062_v18  ;;  %4587 = vmatpush1.bf16.msra.mxu1 %v4525_v31  ;;  %v4457_v18 = vld [vmem:[#allocation4 + $0xa0] sm:$0xff]  ;;  %v4466_v31 = vld [vmem:[#allocation4 + $0xe8] sm:$0xff] }
 0x450   :  { %4588 = vmatprep.subr.bf16.mxu1 %v4530_v32  ;;  %v4487_v32 = vld [vmem:[#allocation4 + $0x190] sm:$0xff] }
 0x452   :  { %4369 = vmatpush1.bf16.msra.mxu0 %v4061_v29  ;;  %v4488_v29 = vld [vmem:[#allocation4 + $0x198] sm:$0xff] }
 0x453   :  { %4370 = vmatprep.subr.bf16.mxu0 %v4066_v30  ;;  %4589 = vmatpush1.bf16.msra.mxu1 %v4529_v36  ;;  %v4461_v30 = vld [vmem:[#allocation4 + $0xc0] sm:$0xff]  ;;  %v4470_v36 = vld [vmem:[#allocation4 + $0x108] sm:$0xff] }
 0x454   :  { %4615 = vmatprep.subr.bf16.mxu1 %v4440_v23  ;;  %v4491_v23 = vld [vmem:[#allocation4 + $0x1b0] sm:$0xff] }
 0x456   :  { %4371 = vmatpush1.bf16.msra.mxu0 %v4065_v33  ;;  %4607 = vmatmul.mubr.bf16.vlgmr.msra.gmra.mrb[16].mxu1 %v7568_v38  ;;  %v4492_v33 = vld [vmem:[#allocation4 + $0x1b8] sm:$0xff] }
 0x457   :  { %4372 = vmatprep.subr.bf16.mxu0 %v4070_v35  ;;  %4616 = vmatpush1.bf16.msra.mxu1 %v4439_v41  ;;  %v4465_v35 = vld [vmem:[#allocation4 + $0xe0] sm:$0xff]  ;;  %v4474_v41 = vld [vmem:[#allocation4 + $0x128] sm:$0xff] }
 0x458   :  { %4647 = vmatprep.mubr.bf16.mxu1 %v4435_v43  ;;  %4617 = vmatprep.subr.bf16.mxu1 %v4444_v42  ;;  %v4495_v42 = vld [vmem:[#allocation4 + $0x1d0] sm:$0xff] }
 0x45a   :  { %4373 = vmatpush1.bf16.msra.mxu0 %v4069_v37  ;;  %v4496_v37 = vld [vmem:[#allocation4 + $0x1d8] sm:$0xff] }
 0x45b   :  { %4374 = vmatprep.subr.bf16.mxu0 %v4074_v40  ;;  %4618 = vmatpush1.bf16.msra.mxu1 %v4443_v50  ;;  %v4469_v40 = vld [vmem:[#allocation4 + $0x100] sm:$0xff]  ;;  %v4499_v50 = vld [vmem:[#allocation4 + $0x1f0] sm:$0xff] }
 0x45c   :  { %4619 = vmatprep.subr.bf16.mxu1 %v4448_v1  ;;  %v4477_v1 = vld [vmem:[#allocation4 + $0x140] sm:$0xff] }
 0x45e   :  { %4375 = vmatpush1.bf16.msra.mxu0 %v4073_v46  ;;  %v4473_v46 = vld [vmem:[#allocation4 + $0x120] sm:$0xff] }
 0x45f   :  { %4376 = vmatprep.subr.bf16.mxu0 %v4078_v49  ;;  %4620 = vmatpush1.bf16.msra.mxu1 %v4447_v53  ;;  %v4478_v49 = vld [vmem:[#allocation4 + $0x148] sm:$0xff]  ;;  %v4481_v53 = vld [vmem:[#allocation4 + $0x160] sm:$0xff] }
 0x460   :  { %4621 = vmatprep.subr.bf16.mxu1 %v4452_v55  ;;  %v4486_v55 = vld [vmem:[#allocation4 + $0x188] sm:$0xff] }
 0x462   :  { %4377 = vmatpush1.bf16.msra.mxu0 %v4077_v22  ;;  %v4482_v22 = vld [vmem:[#allocation4 + $0x168] sm:$0xff] }
 0x463   :  { %4378 = vmatprep.subr.bf16.mxu0 %v4082_v51  ;;  %4622 = vmatpush1.bf16.msra.mxu1 %v4451_v57  ;;  %v4434_v51 = vpack.c.bf16 %v7530_v19, %v7530_v19  ;;  %v4489_v57 = vld [vmem:[#allocation4 + $0x1a0] sm:$0xff] }
 0x464   :  { %4623 = vmatprep.subr.bf16.mxu1 %v4456_v58  ;;  %v4493_v19 = vld [vmem:[#allocation4 + $0x1c0] sm:$0xff] }
 0x466   :  { %4379 = vmatpush1.bf16.msra.mxu0 %v4081_v24  ;;  %v4485_v24 = vld [vmem:[#allocation4 + $0x180] sm:$0xff] }
 0x467   :  { %4380 = vmatprep.subr.bf16.mxu0 %v4086_v56  ;;  %4624 = vmatpush1.bf16.msra.mxu1 %v4455_v60  ;;  %v4490_v56 = vld [vmem:[#allocation4 + $0x1a8] sm:$0xff] }
 0x468   :  { %4625 = vmatprep.subr.bf16.mxu1 %v4460_v20 }
 0x46a   :  { %4381 = vmatpush1.bf16.msra.mxu0 %v4085_v59  ;;  %v4494_v59 = vld [vmem:[#allocation4 + $0x1c8] sm:$0xff] }
 0x46b   :  { %4382 = vmatprep.subr.bf16.mxu0 %v4090_v21  ;;  %4626 = vmatpush1.bf16.msra.mxu1 %v4459_v63  ;;  %v4504_v63 = vld [vmem:[#allocation4 + $0x218] sm:$0xff] }
 0x46c   :  { %4627 = vmatprep.subr.bf16.mxu1 %v4464_v0  ;;  %v4503_v0 = vld [vmem:[#allocation4 + $0x210] sm:$0xff] }
 0x46e   :  { %4383 = vmatpush1.bf16.msra.mxu0 %v4089_v61  ;;  %v4498_v61 = vld [vmem:[#allocation4 + $0x1e8] sm:$0xff] }
 0x46f   :  { %4533 = vmatprep.subr.bf16.mxu0 %v4438_v62  ;;  %4628 = vmatpush1.bf16.msra.mxu1 %v4463_v3  ;;  %v4497_v62 = vld [vmem:[#allocation4 + $0x1e0] sm:$0xff]  ;;  %v4512_v3 = vld [vmem:[#allocation4 + $0x258] sm:$0xff] }
 0x470   :  { %4629 = vmatprep.subr.bf16.mxu1 %v4468_v39  ;;  %v4511_v39 = vld [vmem:[#allocation4 + $0x250] sm:$0xff] }
 0x471   :  { %4385 = vmatmul.mubr.bf16.vlgmr.msra.gmra.mrb[32].mxu0 %v7560_v54  ;;  %v4476_v54 = vld [vmem:[#allocation4 + $0x138] sm:$0xff] }
 0x472   :  { %4534 = vmatpush1.bf16.msra.mxu0 %v4437_v2  ;;  %4565 = vmatprep.mubr.bf16.mxu0 %v4435_v43  ;;  %v4500_v43 = vld [vmem:[#allocation4 + $0x1f8] sm:$0xff] }
 0x473   :  { %4535 = vmatprep.subr.bf16.mxu0 %v4442_v26  ;;  %4630 = vmatpush1.bf16.msra.mxu1 %v4467_v6  ;;  %v4508_v2 = vld [vmem:[#allocation4 + $0x238] sm:$0xff]  ;;  %v4507_v26 = vld [vmem:[#allocation4 + $0x230] sm:$0xff] }
 0x474   :  { %4631 = vmatprep.subr.bf16.mxu1 %v4472_v8  ;;  %v4520_v6 = vld [vmem:[#allocation4 + $0x298] sm:$0xff]  ;;  %v4519_v8 = vld [vmem:[#allocation4 + $0x290] sm:$0xff] }
 0x476   :  { %4536 = vmatpush1.bf16.msra.mxu0 %v4441_v34  ;;  %v4516_v34 = vld [vmem:[#allocation4 + $0x278] sm:$0xff] }
 0x477   :  { %4537 = vmatprep.subr.bf16.mxu0 %v4446_v5  ;;  %4632 = vmatpush1.bf16.msra.mxu1 %v4471_v4  ;;  %v4515_v5 = vld [vmem:[#allocation4 + $0x270] sm:$0xff] }
 0x478   :  { %4633 = vmatprep.subr.bf16.mxu1 %v4476_v54 }
 0x47a   :  { %4538 = vmatpush1.bf16.msra.mxu0 %v4445_v10  ;;  %v4524_v10 = vld [vmem:[#allocation4 + $0x2b8] sm:$0xff] }
 0x47b   :  { %4539 = vmatprep.subr.bf16.mxu0 %v4450_v12  ;;  %4634 = vmatpush1.bf16.msra.mxu1 %v4475_v7  ;;  %v4523_v12 = vld [vmem:[#allocation4 + $0x2b0] sm:$0xff] }
 0x47c   :  { %4635 = vmatprep.subr.bf16.mxu1 %v4480_v13  ;;  %v4527_v7 = vld [vmem:[#allocation4 + $0x2d0] sm:$0xff]  ;;  %v4532_v13 = vld [vmem:[#allocation4 + $0x2f8] sm:$0xff] }
 0x47e   :  { %4540 = vmatpush1.bf16.msra.mxu0 %v4449_v9 }
 0x47f   :  { %4541 = vmatprep.subr.bf16.mxu0 %v4454_v52  ;;  %4636 = vmatpush1.bf16.msra.mxu1 %v4479_v16 }
 0x480   :  { %4637 = vmatprep.subr.bf16.mxu1 %v4484_v17 }
 0x482   :  { %4542 = vmatpush1.bf16.msra.mxu0 %v4453_v14  ;;  %v4531_v14 = vld [vmem:[#allocation4 + $0x2f0] sm:$0xff] }
 0x483   :  { %4543 = vmatprep.subr.bf16.mxu0 %v4458_v15  ;;  %4638 = vmatpush1.bf16.msra.mxu1 %v4483_v28 }
 0x484   :  { %4639 = vmatprep.subr.bf16.mxu1 %v4488_v29 }
 0x486   :  { %4544 = vmatpush1.bf16.msra.mxu0 %v4457_v18 }
 0x487   :  { %4545 = vmatprep.subr.bf16.mxu0 %v4462_v27  ;;  %4640 = vmatpush1.bf16.msra.mxu1 %v4487_v32 }
 0x488   :  { %4641 = vmatprep.subr.bf16.mxu1 %v4492_v33 }
 0x48a   :  { %4546 = vmatpush1.bf16.msra.mxu0 %v4461_v30 }
 0x48b   :  { %4547 = vmatprep.subr.bf16.mxu0 %v4466_v31  ;;  %4642 = vmatpush1.bf16.msra.mxu1 %v4491_v23 }
 0x48c   :  { %4643 = vmatprep.subr.bf16.mxu1 %v4496_v37 }
 0x48e   :  { %4548 = vmatpush1.bf16.msra.mxu0 %v4465_v35 }
 0x48f   :  { %4549 = vmatprep.subr.bf16.mxu0 %v4470_v36  ;;  %4644 = vmatpush1.bf16.msra.mxu1 %v4495_v42 }
 0x490   :  { %4645 = vmatprep.subr.bf16.mxu1 %v4500_v43 }
 0x492   :  { %4550 = vmatpush1.bf16.msra.mxu0 %v4469_v40 }
 0x493   :  { %4551 = vmatprep.subr.bf16.mxu0 %v4474_v41  ;;  %4646 = vmatpush1.bf16.msra.mxu1 %v4499_v50 }
 0x496   :  { %4552 = vmatpush1.bf16.msra.mxu0 %v4473_v46  ;;  %4648 = vmatmul.mubr.bf16.vlgmr.msra.gmra.mrb[20].mxu1 %v4434_v51 }
 0x497   :  { %4553 = vmatprep.subr.bf16.mxu0 %v4478_v49 }
 0x49a   :  { %4554 = vmatpush1.bf16.msra.mxu0 %v4477_v1 }
 0x49b   :  { %4555 = vmatprep.subr.bf16.mxu0 %v4482_v22 }
 0x49e   :  { %4556 = vmatpush1.bf16.msra.mxu0 %v4481_v53 }
 0x49f   :  { %4557 = vmatprep.subr.bf16.mxu0 %v4486_v55 }
 0x4a2   :  { %4558 = vmatpush1.bf16.msra.mxu0 %v4485_v24 }
 0x4a3   :  { %4559 = vmatprep.subr.bf16.mxu0 %v4490_v56 }
 0x4a4   :  { %v4222_v58 = vpop.f32.mrb[20].mxu0 }
 0x4a5   :  { %v4224_v21 = vpop.f32.mrb[21].mxu0 }
 0x4a6   :  { %v4226_v60 = vpop.f32.mrb[22].mxu0  ;;  %4560 = vmatpush1.bf16.msra.mxu0 %v4489_v57 }
 0x4a7   :  { %v4227_v20 = vpop.f32.mrb[23].mxu0  ;;  %4561 = vmatprep.subr.bf16.mxu0 %v4494_v59  ;;  %v4701_v59 = vld [vmem:[#allocation20] ss:$8 sm:$0xf] }
 0x4a8   :  { %v4706_v20 = vrot.slane %v4701_v59, %v7453_v44 }
 0x4aa   :  { %4562 = vmatpush1.bf16.msra.mxu0 %v4493_v19 }
 0x4ab   :  { %4563 = vmatprep.subr.bf16.mxu0 %v4498_v61  ;;  %v4732_v61 = vld [vmem:[#allocation20 + $0x1] ss:$8 sm:$0xf] }
 0x4ae   :  { %4564 = vmatpush1.bf16.msra.mxu0 %v4497_v62 }
 0x4af   :  { %4656 = vmatprep.subr.bf16.mxu0 %v4504_v63  ;;  %v4710_v63 = vrot.slane %v4701_v59, %v7457_v47 }
 0x4b1   :  { %4566 = vmatmul.mubr.bf16.vlgmr.msra.gmra.mrb[36].mxu0 %v4434_v51 }
 0x4b2   :  { %4657 = vmatpush1.bf16.msra.mxu0 %v4503_v0  ;;  %4688 = vmatprep.mubr.bf16.mxu0 %v6919_v25  ;;  %v4528_v25 = vld [vmem:[#allocation4 + $0x2d8] sm:$0xff] }
 0x4b3   :  { %4658 = vmatprep.subr.bf16.mxu0 %v4508_v2 }
 0x4b6   :  { %4659 = vmatpush1.bf16.msra.mxu0 %v4507_v26 }
 0x4b7   :  { %4660 = vmatprep.subr.bf16.mxu0 %v4512_v3  ;;  %v4759_v3 = vld [vmem:[#allocation20 + $0x2] ss:$8 sm:$0xf] }
 0x4ba   :  { %4661 = vmatpush1.bf16.msra.mxu0 %v4511_v39 }
 0x4bb   :  { %4662 = vmatprep.subr.bf16.mxu0 %v4516_v34 }
 0x4be   :  { %4663 = vmatpush1.bf16.msra.mxu0 %v4515_v5  ;;  %v4737_v5 = vrot.slane %v4732_v61, %v7453_v44 }
 0x4bf   :  { %4664 = vmatprep.subr.bf16.mxu0 %v4520_v6 }
 0x4c2   :  { %4665 = vmatpush1.bf16.msra.mxu0 %v4519_v8  ;;  %v4741_v8 = vrot.slane %v4732_v61, %v7457_v47 }
 0x4c3   :  { %4666 = vmatprep.subr.bf16.mxu0 %v4524_v10 }
 0x4c4   :  { %v4263_v4 = vpop.f32.mrb[24].mxu0 }
 0x4c5   :  { %v4265_v54 = vpop.f32.mrb[25].mxu0 }
 0x4c6   :  { %v4267_v9 = vpop.f32.mrb[26].mxu0  ;;  %4667 = vmatpush1.bf16.msra.mxu0 %v4523_v12  ;;  %v4764_v12 = vrot.slane %v4759_v3, %v7453_v44 }
 0x4c7   :  { %v4268_v52 = vpop.f32.mrb[27].mxu0  ;;  %4668 = vmatprep.subr.bf16.mxu0 %v4528_v25  ;;  %v4768_v25 = vrot.slane %v4759_v3, %v7457_v47 }
 0x4c9   :  { %v4345_v15 = vpop.f32.mrb[8].mxu1 }
 0x4ca   :  { %4669 = vmatpush1.bf16.msra.mxu0 %v4527_v7  ;;  %v4347_v16 = vpop.f32.mrb[9].mxu1 }
 0x4cb   :  { %4670 = vmatprep.subr.bf16.mxu0 %v4532_v13  ;;  %v4349_v17 = vpop.f32.mrb[10].mxu1 }
 0x4cc   :  { %v4350_v18 = vpop.f32.mrb[11].mxu1 }
 0x4cd   :  { %v4718_v18 = vrot.slane %v4701_v59, %v7459_v48 }
 0x4ce   :  { %4671 = vmatpush1.bf16.msra.mxu0 %v4531_v14 }
 0x4d1   :  { %4689 = vmatmul.mubr.bf16.vlgmr.msra.gmra.mrb[40].mxu0 %v7568_v38 }
 0x504   :  { %v4304_v27 = vpop.f32.mrb[28].mxu0 }
 0x505   :  { %v4305_v28 = vadd.f32 %v4304_v27, %v4222_v58  ;;  %v4306_v29 = vpop.f32.mrb[29].mxu0 }
 0x506   :  { %v4307_v30 = vadd.f32 %v4306_v29, %v4224_v21  ;;  %v4308_v31 = vpop.f32.mrb[30].mxu0 }
 0x507   :  { %v4346_v32 = vadd.f32 %v4345_v15, %v4305_v28  ;;  %v4309_v33 = vpop.f32.mrb[31].mxu0  ;;  %v4714_v15 = vrot.slane %v4701_v59, %v7455_v45 }
 0x508   :  { %v4348_v35 = vadd.f32 %v4347_v16, %v4307_v30 }
 0x509   :  { %v4427_v36 = vpop.f32.mrb[12].mxu1 }
 0x50a   :  { %v4429_v23 = vpop.f32.mrb[13].mxu1 }
 0x50b   :  { %v4431_v37 = vpop.f32.mrb[14].mxu1 }
 0x50c   :  { %v4432_v40 = vpop.f32.mrb[15].mxu1 }
 0x50d   :  { %v4776_v40 = vrot.slane %v4759_v3, %v7459_v48 }
 0x529   :  { %v4608_v41 = vpop.f32.mrb[16].mxu1 }
 0x52a   :  { %v4610_v42 = vpop.f32.mrb[17].mxu1 }
 0x52b   :  { %v4612_v43 = vpop.f32.mrb[18].mxu1 }
 0x52c   :  { %v4613_v46 = vpop.f32.mrb[19].mxu1 }
 0x544   :  { %v4386_v49 = vpop.f32.mrb[32].mxu0 }
 0x545   :  { %v4387_v50 = vadd.f32 %v4386_v49, %v4263_v4  ;;  %v4388_v38 = vpop.f32.mrb[33].mxu0 }
 0x546   :  { %v4389_v1 = vadd.f32 %v4388_v38, %v4265_v54  ;;  %v4390_v22 = vpop.f32.mrb[34].mxu0 }
 0x547   :  { %v4428_v51 = vadd.f32 %v4427_v36, %v4387_v50  ;;  %v4391_v53 = vpop.f32.mrb[35].mxu0 }
 0x548   :  { %v4430_v55 = vadd.f32 %v4429_v23, %v4389_v1  ;;  %v4772_v23 = vrot.slane %v4759_v3, %v7455_v45 }
 0x569   :  { %v4649_v24 = vpop.f32.mrb[20].mxu1 }
 0x56a   :  { %v4651_v56 = vpop.f32.mrb[21].mxu1 }
 0x56b   :  { %v4653_v57 = vpop.f32.mrb[22].mxu1 }
 0x56c   :  { %v4654_v58 = vpop.f32.mrb[23].mxu1 }
 0x584   :  { %v4567_v21 = vpop.f32.mrb[36].mxu0 }
 0x585   :  { %v4609_v60 = vadd.f32 %v4608_v41, %v4567_v21  ;;  %v4569_v19 = vpop.f32.mrb[37].mxu0 }
 0x586   :  { %v4611_v62 = vadd.f32 %v4610_v42, %v4569_v19  ;;  %v4571_v0 = vpop.f32.mrb[38].mxu0 }
 0x587   :  { %v4697_v2 = vadd.f32 %v4609_v60, %v4346_v32  ;;  %v4572_v26 = vpop.f32.mrb[39].mxu0  ;;  %v4745_v32 = vrot.slane %v4732_v61, %v7455_v45 }
 0x588   :  { %v4698_v39 = vadd.f32 %v4611_v62, %v4348_v35  ;;  %v4749_v35 = vrot.slane %v4732_v61, %v7459_v48 }
 0x589   :  { %v4723_v34 = vadd.f32 %v4706_v20, %v4697_v2 }
 0x58a   :  { %v4724_v6 = vadd.f32 %v4710_v63, %v4698_v39 }
 0x58b   :  { %v4727_v10 = vmax.f32 %v4723_v34, 0.0 }
 0x58c   :  { %v4728_v4 = vmax.f32 %v4724_v6, 0.0 }
 0x58d   :  { %v4754_v54 = vmul.f32 %v4737_v5, %v4727_v10 }
 0x58e   :  { %v4755_v9 = vmul.f32 %v4741_v8, %v4728_v4 }
 0x58f   :  { %v7584_v52 = vadd.f32 %v4764_v12, %v4754_v54 }
 0x590   :  { %v4782_v7 = vadd.f32 %v4768_v25, %v4755_v9 }
 0x5a4   :  { %v4690_v13 = vpop.f32.mrb[40].mxu0 }
 0x5a5   :  { %v4691_v14 = vadd.f32 %v4690_v13, %v4649_v24  ;;  %v4692_v16 = vpop.f32.mrb[41].mxu0 }
 0x5a6   :  { %v4693_v17 = vadd.f32 %v4692_v16, %v4651_v56  ;;  %v4694_v27 = vpop.f32.mrb[42].mxu0 }
 0x5a7   :  { %v4699_v28 = vadd.f32 %v4691_v14, %v4428_v51  ;;  %v4695_v29 = vpop.f32.mrb[43].mxu0 }
 0x5a8   :  { %v4700_v30 = vadd.f32 %v4693_v17, %v4430_v55 }
 0x5a9   :  { %v4725_v31 = vadd.f32 %v4714_v15, %v4699_v28 }
 0x5aa   :  { %v4726_v33 = vadd.f32 %v4718_v18, %v4700_v30 }
 0x5ab   :  { %v4729_v36 = vmax.f32 %v4725_v31, 0.0 }
 0x5ac   :  { %v4730_v37 = vmax.f32 %v4726_v33, 0.0 }
 0x5ad   :  { %v4756_v41 = vmul.f32 %v4745_v32, %v4729_v36 }
 0x5ae   :  { %v4757_v42 = vmul.f32 %v4749_v35, %v4730_v37 }
 0x5af   :  { %v7592_v43 = vadd.f32 %v4772_v23, %v4756_v41 }
 0x5b0   :  { %v7594_v46 = vadd.f32 %v4776_v40, %v4757_v42 }
 0x5b1   :  { %6878 = dma.done.wait [#allocation9 + $0x3], 8192 }
 0x5b2   :  { %6879 = vsyncadd [#allocation9 + $0x3], 4294959104  ;;  %v4789_v49 = vpack.c.bf16 %v4782_v7, %v4782_v7  ;;  %v4793_v50 = vld [vmem:[#allocation5 + $0x8] sm:$0xff]  ;;  %v4792_v38 = vld [vmem:[#allocation5] sm:$0xff]  ;;  %v4788_v25 = vpack.c.bf16 %v7584_v52, %v7584_v52  ;;  %v4791_v54 = vpack.c.bf16 %v7594_v46, %v7594_v46 }
 0x5b3   :  { %v4795_v1 = vld [vmem:[#allocation5 + $0x18] sm:$0xff]  ;;  %4868 = vmatprep.subr.bf16.mxu0 %v4793_v50  ;;  %v4794_v45 = vld [vmem:[#allocation5 + $0x10] sm:$0xff]  ;;  %v4797_v22 = vld [vmem:[#allocation5 + $0x28] sm:$0xff] }
 0x5b4   :  { %4900 = vmatprep.mubr.bf16.mxu0 %v4789_v49  ;;  %4869 = vmatpush1.bf16.msra.mxu0 %v4792_v38  ;;  %v4796_v48 = vld [vmem:[#allocation5 + $0x20] sm:$0xff]  ;;  %v4799_v51 = vld [vmem:[#allocation5 + $0x38] sm:$0xff]  ;;  %v4798_v53 = vld [vmem:[#allocation5 + $0x30] sm:$0xff] }
 0x5b5   :  { %4870 = vmatprep.subr.bf16.mxu0 %v4795_v1  ;;  %v4801_v55 = vld [vmem:[#allocation5 + $0x48] sm:$0xff]  ;;  %v4800_v24 = vld [vmem:[#allocation5 + $0x40] sm:$0xff]  ;;  %v4803_v56 = vld [vmem:[#allocation5 + $0x58] sm:$0xff] }
 0x5b6   :  { %v4802_v57 = vld [vmem:[#allocation5 + $0x50] sm:$0xff]  ;;  %v4805_v58 = vld [vmem:[#allocation5 + $0x68] sm:$0xff]  ;;  %v4804_v59 = vld [vmem:[#allocation5 + $0x60] sm:$0xff] }
 0x5b7   :  { %v4807_v21 = vld [vmem:[#allocation5 + $0x78] sm:$0xff]  ;;  %v4806_v60 = vld [vmem:[#allocation5 + $0x70] sm:$0xff]  ;;  %v4809_v20 = vld [vmem:[#allocation5 + $0x88] sm:$0xff] }
 0x5b8   :  { %4871 = vmatpush1.bf16.msra.mxu0 %v4794_v45  ;;  %v4808_v19 = vld [vmem:[#allocation5 + $0x80] sm:$0xff]  ;;  %v4811_v61 = vld [vmem:[#allocation5 + $0x98] sm:$0xff]  ;;  %v4810_v62 = vld [vmem:[#allocation5 + $0x90] sm:$0xff] }
 0x5b9   :  { %4872 = vmatprep.subr.bf16.mxu0 %v4797_v22  ;;  %v4813_v63 = vld [vmem:[#allocation5 + $0xa8] sm:$0xff]  ;;  %v4812_v0 = vld [vmem:[#allocation5 + $0xa0] sm:$0xff]  ;;  %v4815_v2 = vld [vmem:[#allocation5 + $0xb8] sm:$0xff] }
 0x5ba   :  { %v4814_v26 = vld [vmem:[#allocation5 + $0xb0] sm:$0xff]  ;;  %v4817_v3 = vld [vmem:[#allocation5 + $0xc8] sm:$0xff]  ;;  %v4816_v39 = vld [vmem:[#allocation5 + $0xc0] sm:$0xff] }
 0x5bb   :  { %v4819_v34 = vld [vmem:[#allocation5 + $0xd8] sm:$0xff]  ;;  %v4818_v5 = vld [vmem:[#allocation5 + $0xd0] sm:$0xff]  ;;  %v4821_v6 = vld [vmem:[#allocation5 + $0xe8] sm:$0xff] }
 0x5bc   :  { %4873 = vmatpush1.bf16.msra.mxu0 %v4796_v48  ;;  %v4820_v8 = vld [vmem:[#allocation5 + $0xe0] sm:$0xff]  ;;  %v4823_v10 = vld [vmem:[#allocation5 + $0xf8] sm:$0xff]  ;;  %v4822_v12 = vld [vmem:[#allocation5 + $0xf0] sm:$0xff] }
 0x5bd   :  { %4874 = vmatprep.subr.bf16.mxu0 %v4799_v51  ;;  %v4825_v4 = vld [vmem:[#allocation5 + $0x108] sm:$0xff]  ;;  %v4824_v9 = vld [vmem:[#allocation5 + $0x100] sm:$0xff]  ;;  %v4827_v7 = vld [vmem:[#allocation5 + $0x118] sm:$0xff]  ;;  %v4790_v51 = vpack.c.bf16 %v7592_v43, %v7592_v43 }
 0x5be   :  { %v4826_v13 = vld [vmem:[#allocation5 + $0x110] sm:$0xff]  ;;  %v4829_v14 = vld [vmem:[#allocation5 + $0x128] sm:$0xff]  ;;  %v4828_v15 = vld [vmem:[#allocation5 + $0x120] sm:$0xff] }
 0x5bf   :  { %v4831_v16 = vld [vmem:[#allocation5 + $0x138] sm:$0xff]  ;;  %v4830_v52 = vld [vmem:[#allocation5 + $0x130] sm:$0xff]  ;;  %v4833_v17 = vld [vmem:[#allocation5 + $0x148] sm:$0xff] }
 0x5c0   :  { %4875 = vmatpush1.bf16.msra.mxu0 %v4798_v53  ;;  %v4832_v18 = vld [vmem:[#allocation5 + $0x140] sm:$0xff]  ;;  %v4835_v27 = vld [vmem:[#allocation5 + $0x158] sm:$0xff]  ;;  %v4834_v28 = vld [vmem:[#allocation5 + $0x150] sm:$0xff] }
 0x5c1   :  { %4876 = vmatprep.subr.bf16.mxu0 %v4801_v55  ;;  %v4837_v29 = vld [vmem:[#allocation5 + $0x168] sm:$0xff]  ;;  %v4836_v30 = vld [vmem:[#allocation5 + $0x160] sm:$0xff]  ;;  %v4839_v31 = vld [vmem:[#allocation5 + $0x178] sm:$0xff] }
 0x5c2   :  { %v4838_v32 = vld [vmem:[#allocation5 + $0x170] sm:$0xff]  ;;  %v4841_v33 = vld [vmem:[#allocation5 + $0x188] sm:$0xff]  ;;  %v4840_v35 = vld [vmem:[#allocation5 + $0x180] sm:$0xff] }
 0x5c3   :  { %v4843_v36 = vld [vmem:[#allocation5 + $0x198] sm:$0xff]  ;;  %v4842_v23 = vld [vmem:[#allocation5 + $0x190] sm:$0xff]  ;;  %v4845_v37 = vld [vmem:[#allocation5 + $0x1a8] sm:$0xff] }
 0x5c4   :  { %4877 = vmatpush1.bf16.msra.mxu0 %v4800_v24  ;;  %v4844_v40 = vld [vmem:[#allocation5 + $0x1a0] sm:$0xff]  ;;  %v4847_v41 = vld [vmem:[#allocation5 + $0x1b8] sm:$0xff]  ;;  %v4846_v42 = vld [vmem:[#allocation5 + $0x1b0] sm:$0xff] }
 0x5c5   :  { %4878 = vmatprep.subr.bf16.mxu0 %v4803_v56  ;;  %v4849_v46 = vld [vmem:[#allocation5 + $0x1c8] sm:$0xff]  ;;  %v4848_v49 = vld [vmem:[#allocation5 + $0x1c0] sm:$0xff]  ;;  %v4851_v50 = vld [vmem:[#allocation5 + $0x1d8] sm:$0xff] }
 0x5c6   :  { %v4850_v38 = vld [vmem:[#allocation5 + $0x1d0] sm:$0xff]  ;;  %v4853_v1 = vld [vmem:[#allocation5 + $0x1e8] sm:$0xff]  ;;  %v4852_v45 = vld [vmem:[#allocation5 + $0x1e0] sm:$0xff] }
 0x5c7   :  { %v4855_v22 = vld [vmem:[#allocation5 + $0x1f8] sm:$0xff]  ;;  %v4854_v48 = vld [vmem:[#allocation5 + $0x1f0] sm:$0xff]  ;;  %v4856_v53 = vld [vmem:[%s7650_s10] ss:$8 sm:$0x3] }
 0x5c8   :  { %4879 = vmatpush1.bf16.msra.mxu0 %v4802_v57  ;;  %v4861_v55 = vrot.slane %v4856_v53, %v7453_v44  ;;  %v5705_v24 = vld [vmem:[%s7650_s10 + $0x1] ss:$8 sm:$0x3]  ;;  %v4865_v56 = vrot.slane %v4856_v53, %v7457_v47 }
 0x5c9   :  { %4880 = vmatprep.subr.bf16.mxu0 %v4805_v58  ;;  %v5706_v58 = vld [vmem:[%s7650_s10 + $0x2] ss:$8 sm:$0x3] }
 0x5cc   :  { %4881 = vmatpush1.bf16.msra.mxu0 %v4804_v59  ;;  %v4958_v59 = vrot.slane %v5705_v24, %v7453_v44 }
 0x5cd   :  { %4882 = vmatprep.subr.bf16.mxu0 %v4807_v21 }
 0x5d0   :  { %4883 = vmatpush1.bf16.msra.mxu0 %v4806_v60 }
 0x5d1   :  { %4884 = vmatprep.subr.bf16.mxu0 %v4809_v20  ;;  %v4962_v20 = vrot.slane %v5705_v24, %v7457_v47 }
 0x5d4   :  { %4885 = vmatpush1.bf16.msra.mxu0 %v4808_v19 }
 0x5d5   :  { %4886 = vmatprep.subr.bf16.mxu0 %v4811_v61 }
 0x5d8   :  { %4887 = vmatpush1.bf16.msra.mxu0 %v4810_v62  ;;  %v4973_v62 = vrot.slane %v5706_v58, %v7453_v44 }
 0x5d9   :  { %4888 = vmatprep.subr.bf16.mxu0 %v4813_v63 }
 0x5dc   :  { %4889 = vmatpush1.bf16.msra.mxu0 %v4812_v0 }
 0x5dd   :  { %4890 = vmatprep.subr.bf16.mxu0 %v4815_v2  ;;  %v4977_v2 = vrot.slane %v5706_v58, %v7457_v47 }
 0x5e0   :  { %4891 = vmatpush1.bf16.msra.mxu0 %v4814_v26 }
 0x5e1   :  { %4892 = vmatprep.subr.bf16.mxu0 %v4817_v3 }
 0x5e4   :  { %4893 = vmatpush1.bf16.msra.mxu0 %v4816_v39 }
 0x5e5   :  { %4894 = vmatprep.subr.bf16.mxu0 %v4819_v34 }
 0x5e8   :  { %4895 = vmatpush1.bf16.msra.mxu0 %v4818_v5 }
 0x5e9   :  { %4896 = vmatprep.subr.bf16.mxu0 %v4821_v6 }
 0x5ec   :  { %4897 = vmatpush1.bf16.msra.mxu0 %v4820_v8 }
 0x5ed   :  { %4898 = vmatprep.subr.bf16.mxu0 %v4823_v10 }
 0x5f0   :  { %4899 = vmatpush1.bf16.msra.mxu0 %v4822_v12 }
 0x5f1   :  { %4909 = vmatprep.subr.bf16.mxu0 %v4825_v4 }
 0x5f3   :  { %4901 = vmatmul.mubr.bf16.vlgmr.msra.gmra.mrb[44].mxu0 %v4788_v25 }
 0x5f4   :  { %4910 = vmatpush1.bf16.msra.mxu0 %v4824_v9  ;;  %4941 = vmatprep.mubr.bf16.mxu0 %v4791_v54 }
 0x5f5   :  { %4911 = vmatprep.subr.bf16.mxu0 %v4827_v7 }
 0x5f8   :  { %4912 = vmatpush1.bf16.msra.mxu0 %v4826_v13 }
 0x5f9   :  { %4913 = vmatprep.subr.bf16.mxu0 %v4829_v14 }
 0x5fc   :  { %4914 = vmatpush1.bf16.msra.mxu0 %v4828_v15 }
 0x5fd   :  { %4915 = vmatprep.subr.bf16.mxu0 %v4831_v16 }
 0x600   :  { %4916 = vmatpush1.bf16.msra.mxu0 %v4830_v52 }
 0x601   :  { %4917 = vmatprep.subr.bf16.mxu0 %v4833_v17 }
 0x604   :  { %4918 = vmatpush1.bf16.msra.mxu0 %v4832_v18 }
 0x605   :  { %4919 = vmatprep.subr.bf16.mxu0 %v4835_v27 }
 0x608   :  { %4920 = vmatpush1.bf16.msra.mxu0 %v4834_v28 }
 0x609   :  { %4921 = vmatprep.subr.bf16.mxu0 %v4837_v29 }
 0x60c   :  { %4922 = vmatpush1.bf16.msra.mxu0 %v4836_v30 }
 0x60d   :  { %4923 = vmatprep.subr.bf16.mxu0 %v4839_v31 }
 0x610   :  { %4924 = vmatpush1.bf16.msra.mxu0 %v4838_v32 }
 0x611   :  { %4925 = vmatprep.subr.bf16.mxu0 %v4841_v33 }
 0x614   :  { %4926 = vmatpush1.bf16.msra.mxu0 %v4840_v35 }
 0x615   :  { %4927 = vmatprep.subr.bf16.mxu0 %v4843_v36 }
 0x618   :  { %4928 = vmatpush1.bf16.msra.mxu0 %v4842_v23 }
 0x619   :  { %4929 = vmatprep.subr.bf16.mxu0 %v4845_v37 }
 0x61c   :  { %4930 = vmatpush1.bf16.msra.mxu0 %v4844_v40 }
 0x61d   :  { %4931 = vmatprep.subr.bf16.mxu0 %v4847_v41 }
 0x620   :  { %4932 = vmatpush1.bf16.msra.mxu0 %v4846_v42 }
 0x621   :  { %4933 = vmatprep.subr.bf16.mxu0 %v4849_v46 }
 0x624   :  { %4934 = vmatpush1.bf16.msra.mxu0 %v4848_v49 }
 0x625   :  { %4935 = vmatprep.subr.bf16.mxu0 %v4851_v50 }
 0x628   :  { %4936 = vmatpush1.bf16.msra.mxu0 %v4850_v38 }
 0x629   :  { %4937 = vmatprep.subr.bf16.mxu0 %v4853_v1 }
 0x62c   :  { %4938 = vmatpush1.bf16.msra.mxu0 %v4852_v45 }
 0x62d   :  { %4939 = vmatprep.subr.bf16.mxu0 %v4855_v22 }
 0x630   :  { %4940 = vmatpush1.bf16.msra.mxu0 %v4854_v48 }
 0x633   :  { %4942 = vmatmul.mubr.bf16.vlgmr.msra.gmra.mrb[44].mxu0 %v4790_v51 }
 0x706   :  { %v4943_v57 = vpop.f32.mrb[44].mxu0 }
 0x707   :  { %v5904_v43 = vadd.f32 %v4943_v57, %v4861_v55  ;;  %v4945_v21 = vpop.f32.mrb[45].mxu0 }
 0x708   :  { %v5905_v60 = vadd.f32 %v4945_v21, %v4865_v56  ;;  %v4947_v19 = vpop.f32.mrb[46].mxu0 }
 0x709   :  { %v4950_v61 = vmax.f32 %v5904_v43, 0.0  ;;  %v4948_v63 = vpop.f32.mrb[47].mxu0 }
 0x70a   :  { %v4951_v0 = vmax.f32 %v5905_v60, 0.0 }
 0x70b   :  { %v4965_v26 = vmul.f32 %v4958_v59, %v4950_v61 }
 0x70c   :  { %v4966_v3 = vmul.f32 %v4962_v20, %v4951_v0 }
 0x70d   :  { %v4980_v39 = vadd.f32 %v4973_v62, %v4965_v26 }
 0x70e   :  { %v4981_v34 = vadd.f32 %v4977_v2, %v4966_v3 }
 0x70f   :  { %6880 = dma.done.wait [#allocation9 + $0x4], 2048 }
 0x710   :  { %6881 = vsyncadd [#allocation9 + $0x4], 4294965248  ;;  %v4987_v5 = vpack.c.bf16 %v4981_v34, %v4981_v34  ;;  %v4996_v6 = vld [vmem:[#allocation6 + $0x40] sm:$0xff]  ;;  %v4997_v10 = vld [vmem:[#allocation6 + $0x48] sm:$0xff]  ;;  %v4986_v17 = vpack.c.bf16 %v4980_v39, %v4980_v39 }
 0x711   :  { %v4988_v8 = vld [vmem:[#allocation6] sm:$0xff]  ;;  %5798 = vmatprep.subr.bf16.mxu1 %v4996_v6  ;;  %v4989_v12 = vld [vmem:[#allocation6 + $0x8] sm:$0xff]  ;;  %v4998_v44 = vld [vmem:[#allocation6 + $0x50] sm:$0xff] }
 0x712   :  { %5041 = vmatprep.mubr.bf16.mxu1 %v4987_v5  ;;  %5799 = vmatpush3.bf16.msra.mxu1 %v4988_v8  ;;  %v4990_v4 = vld [vmem:[#allocation6 + $0x10] sm:$0xff]  ;;  %v4999_v47 = vld [vmem:[#allocation6 + $0x58] sm:$0xff]  ;;  %v5000_v54 = vld [vmem:[#allocation6 + $0x60] sm:$0xff] }
 0x713   :  { %5800 = vmatprep.subr.bf16.mxu1 %v4997_v10  ;;  %v4991_v25 = vld [vmem:[#allocation6 + $0x18] sm:$0xff]  ;;  %v4992_v9 = vld [vmem:[#allocation6 + $0x20] sm:$0xff]  ;;  %v5001_v7 = vld [vmem:[#allocation6 + $0x68] sm:$0xff] }
 0x714   :  { %v4993_v13 = vld [vmem:[#allocation6 + $0x28] sm:$0xff]  ;;  %v5002_v14 = vld [vmem:[#allocation6 + $0x70] sm:$0xff]  ;;  %v5003_v16 = vld [vmem:[#allocation6 + $0x78] sm:$0xff] }
 0x715   :  { %v4994_v15 = vld [vmem:[#allocation6 + $0x30] sm:$0xff]  ;;  %v4995_v52 = vld [vmem:[#allocation6 + $0x38] sm:$0xff]  ;;  %v5707_v27 = vld [vmem:[#allocation21] ss:$0 sm:$0xff] }
 0x716   :  { %5801 = vmatpush3.bf16.msra.mxu1 %v4989_v12  ;;  %v5708_v33 = vld [vmem:[#allocation21 + $0x1] ss:$0 sm:$0xff]  ;;  %v5709_v36 = vld [vmem:[#allocation21 + $0x2] ss:$0 sm:$0xff] }
 0x717   :  { %5802 = vmatprep.subr.bf16.mxu1 %v4998_v44 }
 0x71a   :  { %5803 = vmatpush3.bf16.msra.mxu1 %v4990_v4 }
 0x71b   :  { %5804 = vmatprep.subr.bf16.mxu1 %v4999_v47 }
 0x71e   :  { %5805 = vmatpush3.bf16.msra.mxu1 %v4991_v25 }
 0x71f   :  { %5806 = vmatprep.subr.bf16.mxu1 %v5000_v54 }
 0x722   :  { %5807 = vmatpush3.bf16.msra.mxu1 %v4992_v9 }
 0x723   :  { %5808 = vmatprep.subr.bf16.mxu1 %v5001_v7 }
 0x726   :  { %5809 = vmatpush3.bf16.msra.mxu1 %v4993_v13 }
 0x727   :  { %5810 = vmatprep.subr.bf16.mxu1 %v5002_v14 }
 0x72a   :  { %5811 = vmatpush3.bf16.msra.mxu1 %v4994_v15 }
 0x72b   :  { %5812 = vmatprep.subr.bf16.mxu1 %v5003_v16 }
 0x72e   :  { %5813 = vmatpush3.bf16.msra.mxu1 %v4995_v52 }
 0x731   :  { %5042 = vmatmul.mubr.bf16.vlgmr.msra.gmra.mrb[24].mxu1 %v4986_v17 }
 0x804   :  { %v5814_v18 = vpop.f32.mrb[24].mxu1 }
 0x805   :  { %v5815_v28 = vpop.f32.mrb[25].mxu1 }
 0x806   :  { %v5816_v29 = vadd.f32 %v5815_v28, %v5814_v18  ;;  %v5817_v30 = vpop.f32.mrb[26].mxu1 }
 0x807   :  { %v5818_v31 = vpop.f32.mrb[27].mxu1 }
 0x808   :  { %v5044_v32 = vadd.f32 %v5816_v29, %v5707_v27 }
 0x80a   :  { %v5049_v35 = vmax.f32 %v5044_v32, 0.0 }
 0x80c   :  { %v5055_v23 = vmul.f32 %v5708_v33, %v5049_v35 }
 0x80e   :  { %v5061_v37 = vadd.f32 %v5709_v36, %v5055_v23 }
 0x80f   :  { %6882 = dma.done.wait [#allocation9 + $0x5], 1024 }
 0x810   :  { %6883 = vsyncadd [#allocation9 + $0x5], 4294966272  ;;  %5858 = vmatprep.subr.bf16.mxu1 %v6914_v11  ;;  %5874 = vmatprep.mubr.msk.bf16.mxu1 %vm6915_vm0, %v6914_v11  ;;  %v5066_v40 = vld [vmem:[#allocation7] sm:$0xff]  ;;  %v5067_v41 = vld [vmem:[#allocation7 + $0x8] sm:$0xff]  ;;  %v5065_v45 = vpack.c.bf16 %v5061_v37, %v5061_v37 }
 0x811   :  { %5859 = vmatpush3.bf16.msra.mxu1 %v5066_v40  ;;  %v5068_v42 = vld [vmem:[#allocation7 + $0x10] sm:$0xff]  ;;  %v5069_v46 = vld [vmem:[#allocation7 + $0x18] sm:$0xff]  ;;  %v5070_v49 = vld [vmem:[#allocation7 + $0x20] sm:$0xff] }
 0x812   :  { %5860 = vmatprep.subr.bf16.mxu1 %v6914_v11  ;;  %v5071_v50 = vld [vmem:[#allocation7 + $0x28] sm:$0xff]  ;;  %v5072_v38 = vld [vmem:[#allocation7 + $0x30] sm:$0xff]  ;;  %v5073_v1 = vld [vmem:[#allocation7 + $0x38] sm:$0xff] }
 0x813   :  { %v5710_v22 = vld [vmem:[#allocation23] ss:$0 sm:$0xff]  ;;  %v5711_v55 = vld [vmem:[#allocation23 + $0x1] ss:$0 sm:$0xff]  ;;  %v5712_v58 = vld [vmem:[#allocation23 + $0x2] ss:$0 sm:$0xff] }
 0x815   :  { %5861 = vmatpush3.bf16.msra.mxu1 %v5067_v41 }
 0x816   :  { %5862 = vmatprep.subr.bf16.mxu1 %v6914_v11 }
 0x819   :  { %5863 = vmatpush3.bf16.msra.mxu1 %v5068_v42 }
 0x81a   :  { %5864 = vmatprep.subr.bf16.mxu1 %v6914_v11 }
 0x81d   :  { %5865 = vmatpush3.bf16.msra.mxu1 %v5069_v46 }
 0x81e   :  { %5866 = vmatprep.subr.bf16.mxu1 %v6914_v11 }
 0x821   :  { %5867 = vmatpush3.bf16.msra.mxu1 %v5070_v49 }
 0x822   :  { %5868 = vmatprep.subr.bf16.mxu1 %v6914_v11 }
 0x825   :  { %5869 = vmatpush3.bf16.msra.mxu1 %v5071_v50 }
 0x826   :  { %5870 = vmatprep.subr.bf16.mxu1 %v6914_v11 }
 0x829   :  { %5871 = vmatpush3.bf16.msra.mxu1 %v5072_v38 }
 0x82a   :  { %5872 = vmatprep.subr.bf16.mxu1 %v6914_v11 }
 0x82d   :  { %5873 = vmatpush3.bf16.msra.mxu1 %v5073_v1 }
 0x830   :  { %5875 = vmatmul.mubr.bf16.vlgmr.msra.gmra.mrb[28].mxu1 %v5065_v45 }
 0x903   :  { %v5113_v48 = vpop.f32.mrb[28].mxu1 }
 0x904   :  { %v5114_v51 = vadd.f32 %v5710_v22, %v5113_v48  ;;  %v5876_v53 = vpop.f32.mrb[29].mxu1 }
 0x905   :  { %v5116_v24 = vpop.f32.mrb[30].mxu1 }
 0x906   :  { %v5119_v56 = vmax.f32 %v5114_v51, 0.0  ;;  %v5877_v57 = vpop.f32.mrb[31].mxu1 }
 0x908   :  { %v5125_v43 = vmul.f32 %v5711_v55, %v5119_v56 }
 0x90a   :  { %v5131_v59 = vadd.f32 %v5712_v58, %v5125_v43 }
 0x90b   :  { %6884 = dma.done.wait [#allocation9 + $0x6], 1024 }
 0x90c   :  { %6885 = vsyncadd [#allocation9 + $0x6], 4294966272  ;;  %5878 = vmatprep.subr.bf16.mxu1 %v6914_v11  ;;  %5894 = vmatprep.mubr.msk.bf16.mxu1 %vm6915_vm0, %v6914_v11  ;;  %v5135_v21 = vld [vmem:[#allocation8] sm:$0xff]  ;;  %v5136_v60 = vld [vmem:[#allocation8 + $0x8] sm:$0xff]  ;;  %v5134_v2 = vpack.c.bf16 %v5131_v59, %v5131_v59 }
 0x90d   :  { %5879 = vmatpush3.bf16.msra.mxu1 %v5135_v21  ;;  %v5137_v20 = vld [vmem:[#allocation8 + $0x10] sm:$0xff]  ;;  %v5138_v19 = vld [vmem:[#allocation8 + $0x18] sm:$0xff]  ;;  %v5139_v61 = vld [vmem:[#allocation8 + $0x20] sm:$0xff] }
 0x90e   :  { %5880 = vmatprep.subr.bf16.mxu1 %v6914_v11  ;;  %v5140_v62 = vld [vmem:[#allocation8 + $0x28] sm:$0xff]  ;;  %v5141_v63 = vld [vmem:[#allocation8 + $0x30] sm:$0xff]  ;;  %v5142_v0 = vld [vmem:[#allocation8 + $0x38] sm:$0xff] }
 0x90f   :  { %v5713_v26 = vld [vmem:[#allocation24] ss:$0 sm:$0xff]  ;;  %v5714_v5 = vld [vmem:[#allocation24 + $0x1] ss:$0 sm:$0xff]  ;;  %v5715_v12 = vld [vmem:[#allocation24 + $0x2] ss:$0 sm:$0xff] }
 0x911   :  { %5881 = vmatpush3.bf16.msra.mxu1 %v5136_v60 }
 0x912   :  { %5882 = vmatprep.subr.bf16.mxu1 %v6914_v11 }
 0x915   :  { %5883 = vmatpush3.bf16.msra.mxu1 %v5137_v20 }
 0x916   :  { %5884 = vmatprep.subr.bf16.mxu1 %v6914_v11 }
 0x919   :  { %5885 = vmatpush3.bf16.msra.mxu1 %v5138_v19 }
 0x91a   :  { %5886 = vmatprep.subr.bf16.mxu1 %v6914_v11 }
 0x91d   :  { %5887 = vmatpush3.bf16.msra.mxu1 %v5139_v61 }
 0x91e   :  { %5888 = vmatprep.subr.bf16.mxu1 %v6914_v11 }
 0x921   :  { %5889 = vmatpush3.bf16.msra.mxu1 %v5140_v62 }
 0x922   :  { %5890 = vmatprep.subr.bf16.mxu1 %v6914_v11 }
 0x925   :  { %5891 = vmatpush3.bf16.msra.mxu1 %v5141_v63 }
 0x926   :  { %5892 = vmatprep.subr.bf16.mxu1 %v6914_v11 }
 0x929   :  { %5893 = vmatpush3.bf16.msra.mxu1 %v5142_v0 }
 0x92c   :  { %5895 = vmatmul.mubr.bf16.vlgmr.msra.gmra.mrb[32].mxu1 %v5134_v2 }
 0x9ff   :  { %v5182_v3 = vpop.f32.mrb[32].mxu1 }
 0xa00   :  { %v5183_v39 = vadd.f32 %v5713_v26, %v5182_v3  ;;  %v5896_v34 = vpop.f32.mrb[33].mxu1 }
 0xa01   :  { %v5185_v6 = vpop.f32.mrb[34].mxu1 }
 0xa02   :  { %v5188_v8 = vmax.f32 %v5183_v39, 0.0  ;;  %v5897_v10 = vpop.f32.mrb[35].mxu1 }
 0xa04   :  { %v5194_v44 = vmul.f32 %v5714_v5, %v5188_v8 }
 0xa06   :  { %v5200_v4 = vadd.f32 %v5715_v12, %v5194_v44 }
 0xa08   :  { %5201 = vst [vmem:[%s7661_s21] sm:$0xff] %v5200_v4 }
 0xa09   :  { %5206 = vsyncpa [#allocation11], 1 }
 0xa0a   :  { %5207 = vsyncpa [#allocation13], 1 }
 0xa0b   :  { %5208 = vsyncpa [#allocation16], 1 }
 0xa0c   :  { %5209 = vsyncpa [#allocation19], 1 }
 0xa0d   :  { %5210 = vsyncpa [#allocation22], 1 }
 0xa0e   :  { %5211 = vsyncpa [#allocation25], 1 }
 0xa0f   :  { %5212 = vsyncmov [#allocation9] }
 0xa12   :  { %s5213_s9 = vpop.sfrf %5212 }
 0xa13   :  { %p5716_p6 = scmp.ne.s32.totalorder %s5213_s9, 0 }
 0xa15   :  { %5217 = shalt.err (%p5716_p6)  }
 0xa16   :  { %5219 = vsyncmov [#allocation9 + $0x1] }
 0xa19   :  { %s5220_s25 = vpop.sfrf %5219 }
 0xa1a   :  { %p5717_p7 = scmp.ne.s32.totalorder %s5220_s25, 0 }
 0xa1c   :  { %5224 = shalt.err (%p5717_p7)  }
 0xa1d   :  { %5226 = vsyncmov [#allocation9 + $0x2] }
 0xa20   :  { %s5227_s29 = vpop.sfrf %5226 }
 0xa21   :  { %p5718_p8 = scmp.ne.s32.totalorder %s5227_s29, 0 }
 0xa23   :  { %5231 = shalt.err (%p5718_p8)  }
 0xa24   :  { %5233 = vsyncmov [#allocation9 + $0x3] }
 0xa27   :  { %s5234_s21 = vpop.sfrf %5233 }
 0xa28   :  { %p5719_p9 = scmp.ne.s32.totalorder %s5234_s21, 0 }
 0xa2a   :  { %5238 = shalt.err (%p5719_p9)  }
 0xa2b   :  { %5240 = vsyncmov [#allocation9 + $0x4] }
 0xa2e   :  { %s5241_s22 = vpop.sfrf %5240 }
 0xa2f   :  { %p5720_p10 = scmp.ne.s32.totalorder %s5241_s22, 0 }
 0xa31   :  { %5245 = shalt.err (%p5720_p10)  }
 0xa32   :  { %5247 = vsyncmov [#allocation9 + $0x5] }
 0xa35   :  { %s5248_s7 = vpop.sfrf %5247 }
 0xa36   :  { %p5721_p11 = scmp.ne.s32.totalorder %s5248_s7, 0 }
 0xa38   :  { %5252 = shalt.err (%p5721_p11)  }
 0xa39   :  { %5254 = vsyncmov [#allocation9 + $0x6] }
 0xa3c   :  { %s5255_s3 = vpop.sfrf %5254 }
 0xa3d   :  { %p5722_p12 = scmp.ne.s32.totalorder %s5255_s3, 0 }
 0xa3f   :  { %5259 = shalt.err (%p5722_p12)  }

</bundles_post_ra>
